<compile_context>
chip_gen: v6e
topology: v6e:2x2x1
jax: 0.10.0
libtpu: 0.0.40
codegen_flags: <defaults>
</compile_context>

<pallas_src>
import jax
import jax.numpy as jnp
from jax import lax
from jax.experimental import pallas as pl
from jax.experimental.pallas import tpu as pltpu

EPS = 1e-5  # torch.nn.LayerNorm default

_HAS_BUFFERED = hasattr(pl, "Buffered")  # one-time capability check


def _make_kernel(num_col_tiles):
    """Kernel factory. num_col_tiles is the static column-tile count of W."""

    def kernel(x_ref, w_ref, b_ref, o_ref):
        # x_ref: (row_tile, D); w_ref: (D, col_tile); b_ref: (1, col_tile) f32.
        d = x_ref.shape[-1]
        xf = x_ref[...].astype(jnp.float32)

        # --- LayerNorm stats, one pass: independent lane reductions (XLU) ---
        inv_d = jnp.float32(1.0 / d)
        s = jnp.sum(xf, axis=-1, keepdims=True)
        sq = jnp.sum(xf * xf, axis=-1, keepdims=True)
        mean = s * inv_d
        var = sq * inv_d - mean * mean          # biased variance (torch LN)
        inv_std = lax.rsqrt(var + EPS)
        normed = (xf - mean) * inv_std          # gamma/beta folded into W'/b'

        # --- fn: Linear on the MXU in the (folded) weight dtype, f32 acc ---
        y = jnp.dot(normed.astype(w_ref.dtype), w_ref[...],
                    preferred_element_type=jnp.float32)
        y = y + b_ref[...]

        # --- Residual: out = fn(x) + x (x tile already resident in VMEM) ---
        if num_col_tiles == 1:
            x_slab = xf
        else:
            tn = o_ref.shape[-1]
            j0 = pl.multiple_of(pl.program_id(1) * tn, tn)
            x_slab = x_ref[:, pl.ds(j0, tn)].astype(jnp.float32)
        o_ref[...] = (y + x_slab).astype(o_ref.dtype)

    return kernel


def _pick_row_tile(rows, *, sublane=8, target=2048, min_steps=2):
    """Largest multiple-of-`sublane` divisor of rows that is <= target while
    leaving >= min_steps grid steps (use min_steps=4 on v7x: >=2 steps/TC)."""
    if rows <= sublane or rows % sublane != 0:
        return rows
    cap = min(target, rows)
    if rows >= min_steps * sublane:
        cap = min(cap, rows // min_steps)
    cap = max(cap - cap % sublane, sublane)
    for t in range(cap, sublane - 1, -sublane):
        if rows % t == 0:
            return t
    return rows


def _pick_col_tile(D, w_bytes, budget_bytes=24 << 20):
    """Column tile for W. Full weight if it fits the VMEM budget; otherwise the
    largest multiple-of-128 divisor of D whose double-buffered (D, tn) block
    fits (sized against v7x's 64 MiB physical / 32 MiB scoped default)."""
    if D * D * w_bytes <= budget_bytes:
        return D
    if D % 128 != 0:
        return D  # rely on the full-extent block exemption
    max_tn = max(budget_bytes // (2 * D * w_bytes), 1)
    tn = max((max_tn // 128) * 128, 128)
    while D % tn != 0:
        tn -= 128
    return max(tn, 128)


def _build_call(rows, D, row_tile, col_tile, x_dtype, w_dtype, out_dtype):
    nr = rows // row_tile
    nc = D // col_tile

    x_bytes = jnp.dtype(x_dtype).itemsize
    w_bytes = jnp.dtype(w_dtype).itemsize
    o_bytes = jnp.dtype(out_dtype).itemsize
    w_block_bytes = D * col_tile * w_bytes

    # Single-buffer the weight only when it is grid-invariant AND large enough
    # for the VMEM saving to matter (never triggers at the demo size).
    use_single_buffer_w = (_HAS_BUFFERED and nc == 1
                           and w_block_bytes >= (4 << 20))
    w_kwargs = dict(pipeline_mode=pl.Buffered(1)) if use_single_buffer_w else {}
    w_bufs = 1 if use_single_buffer_w else 2

    if nc == 1:
        grid = (nr,)
        x_spec = pl.BlockSpec((row_tile, D), lambda i: (i, 0))
        w_spec = pl.BlockSpec((D, D), lambda i: (0, 0), **w_kwargs)
        b_spec = pl.BlockSpec((1, D), lambda i: (0, 0))
        o_spec = pl.BlockSpec((row_tile, D), lambda i: (i, 0))
        dims = ("parallel",)
    else:
        # 2-D grid: rows x weight-columns. Output blocks are independent
        # (no reduction axis); x is re-read per column tile (LN recomputed),
        # which keeps the fused kernel viable at large D on v7x's 64 MiB VMEM.
        grid = (nr, nc)
        x_spec = pl.BlockSpec((row_tile, D), lambda i, j: (i, 0))
        w_spec = pl.BlockSpec((D, col_tile), lambda i, j: (0, j))
        b_spec = pl.BlockSpec((1, col_tile), lambda i, j: (0, j))
        o_spec = pl.BlockSpec((row_tile, col_tile), lambda i, j: (i, j))
        dims = ("parallel", "parallel")

    # Explicit scoped-VMEM sizing: double buffers for pipelined operands,
    # single/double for the weight, bias padded to an (8,128) tile, + headroom.
    need = (2 * row_tile * D * x_bytes
            + 2 * row_tile * col_tile * o_bytes
            + w_bufs * w_block_bytes
            + 2 * 8 * max(col_tile, 128) * 4)
    vmem_limit = int(min(max(need + (4 << 20), 16 << 20), 64 << 20))

    return pl.pallas_call(
        _make_kernel(nc),
        out_shape=jax.ShapeDtypeStruct((rows, D), out_dtype),
        grid_spec=pltpu.PrefetchScalarGridSpec(
            num_scalar_prefetch=0,
            grid=grid,
            in_specs=[x_spec, w_spec, b_spec],
            out_specs=o_spec,
        ),
        compiler_params=pltpu.CompilerParams(
            dimension_semantics=dims,
            vmem_limit_bytes=vmem_limit),
    )


def residual_block(x, gamma, beta, w, b, *, row_tile=None, min_row_steps=2,
                   mxu_dtype=None):
    """out = Linear(LayerNorm(x)) + x over the last dim D of (B, S, D).

    mxu_dtype: optionally force the matmul operand dtype (e.g. jnp.bfloat16 on
    v5e for f32 activations). min_row_steps=4 is recommended on v7x (2 TCs).
    """
    B, S, D = x.shape
    rows = B * S
    x2 = x.reshape(rows, D)

    sublane = 16 if x.dtype == jnp.bfloat16 else 8
    if row_tile is None:
        row_tile = _pick_row_tile(rows, sublane=sublane, target=2048,
                                  min_steps=min_row_steps)
    assert rows % row_tile == 0

    # Fold the LayerNorm affine into the Linear (done once in the wrapper):
    #   (z*gamma + beta) @ W + b == z @ (gamma[:,None]*W) + (beta @ W + b)
    w_f32 = w.astype(jnp.float32)
    w_folded = gamma.astype(jnp.float32)[:, None] * w_f32
    b_folded = (beta.astype(jnp.float32) @ w_f32
                + b.astype(jnp.float32)).reshape(1, D)
    w_dtype = mxu_dtype if mxu_dtype is not None else w.dtype
    w_folded = w_folded.astype(w_dtype)

    col_tile = _pick_col_tile(D, jnp.dtype(w_dtype).itemsize)

    call = _build_call(rows, D, row_tile, col_tile, x.dtype, w_dtype, x.dtype)
    out2 = call(x2, w_folded, b_folded)
    return out2.reshape(B, S, D)


def residual_block_reference(x, gamma, beta, w, b):
    """Unfused two-pass reference: LayerNorm -> Linear -> residual add."""
    xf = x.astype(jnp.float32)
    mean = jnp.mean(xf, axis=-1, keepdims=True)
    var = jnp.mean((xf - mean) ** 2, axis=-1, keepdims=True)
    normed = (xf - mean) / jnp.sqrt(var + EPS) * gamma.astype(jnp.float32) \
             + beta.astype(jnp.float32)
    y = normed @ w.astype(jnp.float32) + b.astype(jnp.float32)
    return (y + xf).astype(x.dtype)


if __name__ == "__main__":
    key = jax.random.PRNGKey(0)
    # Lane-dense D (multiple of 128); rows = B*S = 2048 -> 2-step pipelined grid.
    B, S, D = 4, 512, 128

    k_x, k_w, k_b, k_g, k_be = jax.random.split(key, 5)
    x = jax.random.normal(k_x, (B, S, D), dtype=jnp.float32)

    # Non-trivial LN affine to exercise the gamma/beta -> W/bias fold.
    gamma = 1.0 + 0.1 * jax.random.normal(k_g, (D,), jnp.float32)
    beta = 0.1 * jax.random.normal(k_be, (D,), jnp.float32)

    # fn = Linear(D, D), deterministic init.
    w = jax.random.normal(k_w, (D, D), dtype=jnp.float32) * (1.0 / jnp.sqrt(D))
    b = jax.random.normal(k_b, (D,), dtype=jnp.float32) * 0.01

    # f32 path
    out = jax.block_until_ready(residual_block(x, gamma, beta, w, b))
    ref = residual_block_reference(x, gamma, beta, w, b)
    assert out.shape == (B, S, D)
    assert jnp.allclose(out, ref, atol=1e-3, rtol=1e-3), "f32 mismatch vs reference"

    # bf16 path: bf16 activations/weight on the MXU, f32 LN stats + accumulation.
    xb = x.astype(jnp.bfloat16)
    wb = w.astype(jnp.bfloat16)
    out_b = jax.block_until_ready(residual_block(xb, gamma, beta, wb, b))
    ref_b = residual_block_reference(xb, gamma, beta, wb, b)
    assert out_b.shape == (B, S, D) and out_b.dtype == jnp.bfloat16
    assert jnp.allclose(out_b.astype(jnp.float32), ref_b.astype(jnp.float32),
                        atol=1e-1, rtol=1e-1), "bf16 mismatch vs reference"

    print("KERNEL_OK")
</pallas_src>

<mosaic_0001>
module attributes {stable_mosaic.version = 11 : i64} {
  func.func @kernel(%arg0: i32, %arg1: memref<1024x128xf32, #tpu.memory_space<vmem>>, %arg2: memref<128x128xf32, #tpu.memory_space<vmem>>, %arg3: memref<1x128xf32, #tpu.memory_space<vmem>>, %arg4: memref<1024x128xf32, #tpu.memory_space<vmem>>) attributes {dimension_semantics = [#tpu.dimension_semantics<parallel>], iteration_bounds = array<i64: 2>, scalar_prefetch = 0 : i64, scratch_operands = 0 : i64, tpu.core_type = #tpu.core_type<tc>, window_params = [{transform_indices = @transform_0, window_bounds = array<i64: 1024, 128>}, {pipeline_mode = #tpu.pipeline_mode<synchronous>, transform_indices = @transform_1, window_bounds = array<i64: 128, 128>}, {pipeline_mode = #tpu.pipeline_mode<synchronous>, transform_indices = @transform_2, window_bounds = array<i64: 1, 128>}, {transform_indices = @transform_3, window_bounds = array<i64: 1024, 128>}]} {
    %c0 = arith.constant 0 : index
    %c0_0 = arith.constant 0 : index
    %0 = vector.load %arg1[%c0, %c0_0] : memref<1024x128xf32, #tpu.memory_space<vmem>>, vector<1024x128xf32>
    %cst = arith.constant dense<0.000000e+00> : vector<1024xf32>
    %1 = vector.multi_reduction <add>, %0, %cst [1] : vector<1024x128xf32> to vector<1024xf32>
    %2 = vector.shape_cast %1 : vector<1024xf32> to vector<1024x1xf32>
    %3 = arith.mulf %0, %0 : vector<1024x128xf32>
    %cst_1 = arith.constant dense<0.000000e+00> : vector<1024xf32>
    %4 = vector.multi_reduction <add>, %3, %cst_1 [1] : vector<1024x128xf32> to vector<1024xf32>
    %5 = vector.shape_cast %4 : vector<1024xf32> to vector<1024x1xf32>
    %cst_2 = arith.constant 7.812500e-03 : f32
    %6 = vector.broadcast %cst_2 : f32 to vector<1024x1xf32>
    %7 = arith.mulf %2, %6 : vector<1024x1xf32>
    %cst_3 = arith.constant 7.812500e-03 : f32
    %8 = vector.broadcast %cst_3 : f32 to vector<1024x1xf32>
    %9 = arith.mulf %5, %8 : vector<1024x1xf32>
    %10 = arith.mulf %7, %7 : vector<1024x1xf32>
    %11 = arith.subf %9, %10 : vector<1024x1xf32>
    %cst_4 = arith.constant 9.99999974E-6 : f32
    %12 = vector.broadcast %cst_4 : f32 to vector<1024x1xf32>
    %13 = arith.addf %11, %12 : vector<1024x1xf32>
    %14 = math.rsqrt %13 : vector<1024x1xf32>
    %15 = vector.broadcast %7 : vector<1024x1xf32> to vector<1024x128xf32>
    %16 = arith.subf %0, %15 : vector<1024x128xf32>
    %17 = vector.broadcast %14 : vector<1024x1xf32> to vector<1024x128xf32>
    %18 = arith.mulf %16, %17 : vector<1024x128xf32>
    %c0_5 = arith.constant 0 : index
    %c0_6 = arith.constant 0 : index
    %19 = vector.load %arg2[%c0_5, %c0_6] : memref<128x128xf32, #tpu.memory_space<vmem>>, vector<128x128xf32>
    %cst_7 = arith.constant dense<0.000000e+00> : vector<1024x128xf32>
    %20 = tpu.matmul %18, %19, %cst_7 {dimension_numbers = #tpu.dot_dimension_numbers<[1], [0], [0], [1], [0, 0, 1, 1], [], []>} : vector<1024x128xf32>, vector<128x128xf32>, vector<1024x128xf32> -> vector<1024x128xf32>
    %c0_8 = arith.constant 0 : index
    %c0_9 = arith.constant 0 : index
    %21 = vector.load %arg3[%c0_8, %c0_9] : memref<1x128xf32, #tpu.memory_space<vmem>>, vector<1x128xf32>
    %22 = vector.broadcast %21 : vector<1x128xf32> to vector<1024x128xf32>
    %23 = arith.addf %20, %22 : vector<1024x128xf32>
    %24 = arith.addf %23, %0 : vector<1024x128xf32>
    %c0_10 = arith.constant 0 : index
    %c0_11 = arith.constant 0 : index
    %25 = vector.load %arg4[%c0_10, %c0_11] : memref<1024x128xf32, #tpu.memory_space<vmem>>, vector<1024x128xf32>
    tpu.vector_store %arg4[%c0_10, %c0_11], %24 {strides = array<i32>} : memref<1024x128xf32, #tpu.memory_space<vmem>>, vector<1024x128xf32>,
    return
  }
  func.func @transform_0(%arg0: i32) -> (i32, i32) {
    %c0_i32 = arith.constant 0 : i32
    %c0_i32_0 = arith.constant 0 : i32
    return %arg0, %c0_i32 : i32, i32
  }
  func.func @transform_1(%arg0: i32) -> (i32, i32) {
    %c0_i32 = arith.constant 0 : i32
    %c0_i32_0 = arith.constant 0 : i32
    %c0_i32_1 = arith.constant 0 : i32
    return %c0_i32, %c0_i32_0 : i32, i32
  }
  func.func @transform_2(%arg0: i32) -> (i32, i32) {
    %c0_i32 = arith.constant 0 : i32
    %c0_i32_0 = arith.constant 0 : i32
    %c0_i32_1 = arith.constant 0 : i32
    return %c0_i32, %c0_i32_0 : i32, i32
  }
  func.func @transform_3(%arg0: i32) -> (i32, i32) {
    %c0_i32 = arith.constant 0 : i32
    %c0_i32_0 = arith.constant 0 : i32
    return %arg0, %c0_i32 : i32, i32
  }
}

</mosaic_0001>

<bundles_post_ra>
// kernel: tpu_custom_call.1
= control target key start
LH: loop header
LB: loop body
LE: loop exit
PB: predicated region body
PF: predicated region fallthrough
CT: control target
= control target key end

     0   :  { %8 = vsyncpa [#allocation3], 0  ;;  %s6146_s0 = inlined_call_operand.hbm [shape: f32[2048,128], index: 0, kind: input, shape index: {}]   ;;  %s6147_s1 = inlined_call_operand.hbm [shape: f32[128,128], index: 1, kind: input, shape index: {}]   ;;  %s6148_s2 = inlined_call_operand.vmem [shape: f32[1,128], index: 2, kind: input, shape index: {}]   ;;  %s6149_s3 = inlined_call_operand.hbm [shape: f32[2048,128], index: 3, kind: output, shape index: {}]  }
   0x1   :  { %10 = vsyncpa [#allocation3 + $0x1], 0 }
   0x2   :  { %11 = vsyncpa [#allocation6], 0 }
   0x3   :  { %12 = vsyncpa [#allocation4], 0 }
   0x4   :  { %14 = vsyncpa [#allocation4 + $0x1], 0  ;;  %s4199_s12 = smov 0   ;;  %s4201_s13 = smov 0  }
   0x5   :  { %s4203_s14 = smov 0   ;;  %s4205_s15 = smov 0  }
   0x6 LB: > { %s4220_s16 = sadd.s32 4294967295, %s4170_s15   ;;  %s3079_s17 = sadd.s32 4294967294, %s4170_s15   ;;  %s4170_s15 = sphi %s4205_s15, %s6227_s15   ;;  %s4166_s14 = sphi %s4203_s14, %s6226_s14   ;;  %s4162_s13 = sphi %s4201_s13, %s6225_s13   ;;  %s4158_s12 = sphi %s4199_s12, %s6224_s12  }
   0x7   : > { %p40_p0 = scmp.ne.s32.totalorder %s4162_s13, %s4158_s12  ;;  %p6150_p1 = scmp.eq.s32.totalorder %s4220_s16, 0 }
   0x8   : > { %p112_p3 = scmp.eq.s32.totalorder %s3079_s17, 1  ;;  %p3080_p5 = scmp.ge.s32.totalorder %s4170_s15, 1 }
   0x9   : > { %p4229_p4 = por %p6150_p1, %p40_p0  ;;  %p119_p7 = scmp.lt.s32.totalorder %s4170_s15, 3 }
   0xa   : > { %p4234_p6 = por %p112_p3, %p40_p0  ;;  %s4172_s21 = smov [#allocation5]  }
   0xb   : > { %s6154_s18 = scalar_select %p4229_p4, 1, 0 }
   0xc   : > { %s6155_s19 = scalar_select %p4234_p6, 1, 0 }
   0xd   : > { %p4239_p8 = pnand %p3080_p5, %p119_p7  ;;  %s131_s22 = sshll.u32 %s4172_s21, 4  ;;  %s132_s22 = int_to_ptr.vmem [resolvable:$true] %s131_s22 }
   0xe   : > { %s4253_s24 = sadd.s32 1, %s4170_s15   ;;  %s27_s25 = sadd.s32 1, %s4166_s14 }
   0xf   : > { %s6156_s20 = scalar_select %p4239_p8, 1, 0 }
  0x10   : > { %p3506_p9 = pneg %p4239_p8  ;;  %s24_s26 = ssub.s32 %s4170_s15, %s4253_s24 }
  0x11   : > { %s4059_s27 = scalar_lea.vmem %s132_s22, 2048  ;;  %p4067_p5 = scmp.lt.s32.totalorder %s132_s22, %s132_s22 }
  0x12   : > { %p4248_p11 = pnand %p3506_p9, %p6150_p1  ;;  %p4060_p13 = scmp.ne.s32.totalorder %s132_s22, %s4059_s27 }
  0x13   : > { %p4068_p7 = scmp.lt.s32.totalorder %s4059_s27, %s4059_s27 }
  0x14   : > { %p4050_p12 = pneg %p4248_p11 }
  0x15   : > { %p4069_p10 = por %p4068_p7, %p4067_p5 }
  0x16   : > { %p4062_p0 = pnand %p4060_p13, %p4050_p12 }
  0x18   : > { %p4063_p3 = pneg %p4062_p0 }
  0x1a   : > { %p4070_p2 = pnand %p4069_p10, %p4063_p3 }
  0x1c   : > { %4073 = shalt.err (!%p4070_p2)
}
  0x1d   : > { %s4173_s28 = smov 128   ;;  %s4174_s29 = smov 8  }
  0x1e   : > { %3509 = dma.hbm_to_vmem [thread:$0]  (!%p4248_p11), %s6147_s1, 2048, %s132_s22, [#allocation6], %s4173_s28, %s4173_s28, %s4174_s29  }
  0x1f   : > { %p25_p2 = scmp.eq.s32.totalorder %s24_s26, 0  ;;  %p34_p9 = scmp.ne.s32.totalorder %s4166_s14, %s4162_s13 }
  0x20   : > { %p35_p10 = scmp.eq.s32.totalorder %s4170_s15, 0  ;;  %p3519_p12 = scmp.lt.s32.totalorder %s4170_s15, 2 }
  0x21   : > { %s4273_s5 = scalar_select %p25_p2, %s4166_s14, %s27_s25  }
  0x22   : > { %p36_p13 = por %p35_p10, %p34_p9  ;;  %p6158_p0 = scmp.eq.s32.totalorder %s4220_s16, 1 }
  0x23   : > { %s148_s7 = sand.u32 1, %s4166_s14   ;;  %s3096_s8 = sshll.u32 %s4170_s15, 14 }
  0x24   : > { %p4277_p3 = por %p6158_p0, %p34_p9  ;;  %s3083_s9 = sshll.u32 %s148_s7, 10 }
  0x25   : > { %s4286_s17 = scalar_lea.hbm %s6146_s0, %s3096_s8  ;;  %s152_s21 = scalar_lea.vmem [#allocation2], %s3083_s9 }
  0x26   : > { %s6159_s6 = scalar_select %p4277_p3, 1, 0 }
  0x27   : > { %s159_s22 = sshll.u32 %s152_s21, 4  ;;  %p4288_p11 = pnand %p3519_p12, %p36_p13  ;;  %s4292_s22 = int_to_ptr.vmem [resolvable:$true] %s159_s22 }
  0x28   : > { %s4294_s25 = scalar_lea.sflag [#allocation3], %s148_s7  ;;  %s4074_s26 = scalar_lea.hbm %s4286_s17, 16384 }
  0x29   : > { %p4075_p5 = scmp.ne.s32.totalorder %s4286_s17, %s4074_s26  ;;  %p4076_p7 = pneg %p4288_p11 }
  0x2a   : > { %s4079_s4 = scalar_lea.hbm %s6146_s0, 32768  ;;  %p4080_p10 = scmp.lt.s32.totalorder %s4286_s17, %s6146_s0 }
  0x2b   : > { %p4077_p2 = pnand %p4076_p7, %p4075_p5  ;;  %p4081_p12 = scmp.lt.s32.totalorder %s4079_s4, %s4074_s26 }
  0x2d   : > { %p4078_p9 = pneg %p4077_p2  ;;  %p4082_p13 = por %p4081_p12, %p4080_p10 }
  0x2f   : > { %p4083_p0 = pnand %p4082_p13, %p4078_p9 }
  0x31   : > { %4086 = shalt.err (!%p4083_p0)
}
  0x32   : > { %s4087_s7 = scalar_lea.vmem %s4292_s22, 16384  ;;  %s4175_s10 = smov [#allocation2]  }
  0x33   : > { %p4088_p1 = scmp.ne.s32.totalorder %s4292_s22, %s4087_s7  ;;  %s4092_s11 = sshll.u32 %s4175_s10, 4  ;;  %s4093_s11 = int_to_ptr.vmem [resolvable:$false] %s4092_s11 }
  0x34   : > { %s4094_s21 = scalar_lea.vmem %s4093_s11, 32768  ;;  %p4095_p2 = scmp.lt.s32.totalorder %s4292_s22, %s4093_s11 }
  0x35   : > { %p4090_p6 = pnand %p4088_p1, %p4076_p7  ;;  %p4096_p3 = scmp.lt.s32.totalorder %s4094_s21, %s4087_s7 }
  0x37   : > { %p4091_p5 = pneg %p4090_p6  ;;  %p4097_p4 = por %p4096_p3, %p4095_p2 }
  0x39   : > { %p4098_p8 = pnand %p4097_p4, %p4091_p5 }
  0x3b   : > { %4101 = shalt.err (!%p4098_p8)
}
  0x3c   : > { %3513 = dma.hbm_to_vmem [thread:$0]  (!%p4288_p11), %s4286_s17, 16384, %s4292_s22, %s4294_s25, %s4173_s28, %s4173_s28, %s4174_s29  }
  0x3d   : > { %p6161_p1 = scmp.ne.s32.totalorder %s6156_s20, 0 }
  0x3f   : > { %171 = sbr.rel (%p6161_p1) target bundleno = 959 (0x3bf), region = 32 }
  0x44   : > { %s4321_s26 = sand.u32 1, %s4162_s13   ;;  %p6162_p4 = scmp.ne.s32.totalorder %s6154_s18, 0 }
  0x45   : > { %s3087_s27 = sshll.u32 %s4321_s26, 10  ;;  %s174_s30 = scalar_lea.sflag [#allocation3], %s4321_s26 }
  0x46   : > { %s4327_s23 = scalar_lea.vmem [#allocation2], %s3087_s27 }
  0x47   : > { %4145 = dma.done.wait (%p6162_p4), %s174_s30, 16384  }
  0x48   : > { %4147 = vsyncadd (%p6162_p4), %s174_s30, 4294950912  ;;  %p6163_p6 = scmp.eq.s32.totalorder %s4220_s16, 0 }
  0x4a   : > { %4149 = dma.done.wait (%p6163_p6), [#allocation6], 2048   ;;  %p6164_p8 = pmov %p6163_p6 }
  0x4b   : > { %v4338_v0 = vld [vmem:[%s4327_s23 + $0x10] sm:$0xff]  ;;  %v4341_v1 = vld [vmem:[%s4327_s23] sm:$0xff]  ;;  %v4346_v2 = vld [vmem:[%s4327_s23 + $0x18] sm:$0xff]  ;;  %s5273_s28 = scalar_lea.vmem [#allocation7], %s3087_s27  ;;  %s3097_s4 = sshll.u32 %s4220_s16, 14 }
  0x4c   : > { %4151 = vsyncadd (%p6164_p8), [#allocation6], 4294965248  ;;  %338 = vadd.xlane.f32.xlu1 %v4338_v0  ;;  %334 = vadd.xlane.f32.xlu0 %v4341_v1  ;;  %v4349_v3 = vld [vmem:[%s4327_s23 + $0x8] sm:$0xff]  ;;  %v4357_v5 = vld [vmem:[%s4327_s23 + $0x20] sm:$0xff]  ;;  %v590_v48 = vmul.f32 %v4341_v1, %v4341_v1  ;;  %v592_v56 = vmul.f32 %v4338_v0, %v4338_v0  ;;  %v593_v61 = vmul.f32 %v4346_v2, %v4346_v2  ;;  %s2996_s8 = sshll.u32 %s5273_s28, 4  ;;  %s6097_s10 = scalar_lea.hbm %s6149_s3, %s3097_s4  ;;  %s6099_s8 = int_to_ptr.vmem [resolvable:$true] %s2996_s8 }
  0x4d   : > { %v4354_v4 = vld [vmem:[%s4327_s23 + $0x28] sm:$0xff]  ;;  %v4362_v6 = vld [vmem:[%s4327_s23 + $0x38] sm:$0xff]  ;;  %v4365_v7 = vld [vmem:[%s4327_s23 + $0x30] sm:$0xff]  ;;  %v591_v51 = vmul.f32 %v4349_v3, %v4349_v3  ;;  %s2983_s16 = scalar_lea.sflag [#allocation4], %s4321_s26  ;;  %s4102_s11 = scalar_lea.vmem %s6099_s8, 16384 }
  0x4e   : > { %v4370_v8 = vld [vmem:[%s4327_s23 + $0x48] sm:$0xff]  ;;  %v4373_v9 = vld [vmem:[%s4327_s23 + $0x40] sm:$0xff]  ;;  %v4378_v10 = vld [vmem:[%s4327_s23 + $0x58] sm:$0xff]  ;;  %p4103_p3 = scmp.ne.s32.totalorder %s6099_s8, %s4102_s11  ;;  %p6221_p11 = scmp.ne.s32.totalorder %s6159_s6, 0 }
  0x4f   : > { %v4381_v11 = vld [vmem:[%s4327_s23 + $0x50] sm:$0xff]  ;;  %v4386_v12 = vld [vmem:[%s4327_s23 + $0x68] sm:$0xff]  ;;  %v4389_v13 = vld [vmem:[%s4327_s23 + $0x60] sm:$0xff]  ;;  %s4176_s21 = smov [#allocation7]  }
  0x50   : > { %340 = vadd.xlane.f32.xlu1 %v4346_v2  ;;  %336 = vadd.xlane.f32.xlu0 %v4349_v3  ;;  %v4394_v14 = vld [vmem:[%s4327_s23 + $0x78] sm:$0xff]  ;;  %v4397_v15 = vld [vmem:[%s4327_s23 + $0x70] sm:$0xff]  ;;  %v4402_v16 = vld [vmem:[%s4327_s23 + $0x88] sm:$0xff]  ;;  %p4104_p7 = pnand %p4103_p3, %p6221_p11  ;;  %s4106_s27 = sshll.u32 %s4176_s21, 4  ;;  %s4107_s27 = int_to_ptr.vmem [resolvable:$false] %s4106_s27 }
  0x51   : > { %v4405_v17 = vld [vmem:[%s4327_s23 + $0x80] sm:$0xff]  ;;  %v4410_v18 = vld [vmem:[%s4327_s23 + $0x98] sm:$0xff]  ;;  %v4413_v19 = vld [vmem:[%s4327_s23 + $0x90] sm:$0xff]  ;;  %s4108_s30 = scalar_lea.vmem %s4107_s27, 32768  ;;  %p4109_p10 = scmp.lt.s32.totalorder %s6099_s8, %s4107_s27 }
  0x52   : > { %v4418_v20 = vld [vmem:[%s4327_s23 + $0xa8] sm:$0xff]  ;;  %v4421_v21 = vld [vmem:[%s4327_s23 + $0xa0] sm:$0xff]  ;;  %v4426_v22 = vld [vmem:[%s4327_s23 + $0xb8] sm:$0xff]  ;;  %p4105_p9 = pneg %p4104_p7  ;;  %p4110_p12 = scmp.lt.s32.totalorder %s4108_s30, %s4102_s11 }
  0x53   : > { %v4429_v23 = vld [vmem:[%s4327_s23 + $0xb0] sm:$0xff]  ;;  %v4434_v24 = vld [vmem:[%s4327_s23 + $0xc8] sm:$0xff]  ;;  %v4437_v25 = vld [vmem:[%s4327_s23 + $0xc0] sm:$0xff] }
  0x54   : > { %344 = vadd.xlane.f32.xlu1 %v4354_v4  ;;  %342 = vadd.xlane.f32.xlu0 %v4357_v5  ;;  %v4442_v26 = vld [vmem:[%s4327_s23 + $0xd8] sm:$0xff]  ;;  %v4445_v27 = vld [vmem:[%s4327_s23 + $0xd0] sm:$0xff]  ;;  %v4450_v28 = vld [vmem:[%s4327_s23 + $0xe8] sm:$0xff]  ;;  %p4111_p13 = por %p4110_p12, %p4109_p10 }
  0x55   : > { %v4453_v29 = vld [vmem:[%s4327_s23 + $0xe0] sm:$0xff]  ;;  %v4458_v30 = vld [vmem:[%s4327_s23 + $0xf8] sm:$0xff]  ;;  %v4461_v31 = vld [vmem:[%s4327_s23 + $0xf0] sm:$0xff] }
  0x56   : > { %v239_v32 = vld [vmem:[%s4327_s23 + $0x108] sm:$0xff]  ;;  %v238_v33 = vld [vmem:[%s4327_s23 + $0x100] sm:$0xff]  ;;  %v241_v34 = vld [vmem:[%s4327_s23 + $0x118] sm:$0xff]  ;;  %p4112_p0 = pnand %p4111_p13, %p4105_p9 }
  0x57   : > { %v240_v35 = vld [vmem:[%s4327_s23 + $0x110] sm:$0xff]  ;;  %v243_v36 = vld [vmem:[%s4327_s23 + $0x128] sm:$0xff]  ;;  %v242_v37 = vld [vmem:[%s4327_s23 + $0x120] sm:$0xff] }
  0x58   : > { %348 = vadd.xlane.f32.xlu1 %v4362_v6  ;;  %346 = vadd.xlane.f32.xlu0 %v4365_v7  ;;  %v245_v38 = vld [vmem:[%s4327_s23 + $0x138] sm:$0xff]  ;;  %v244_v39 = vld [vmem:[%s4327_s23 + $0x130] sm:$0xff]  ;;  %v247_v40 = vld [vmem:[%s4327_s23 + $0x148] sm:$0xff] }
  0x59   : > { %v246_v41 = vld [vmem:[%s4327_s23 + $0x140] sm:$0xff]  ;;  %v249_v42 = vld [vmem:[%s4327_s23 + $0x158] sm:$0xff]  ;;  %v248_v43 = vld [vmem:[%s4327_s23 + $0x150] sm:$0xff] }
  0x5a   : > { %v251_v44 = vld [vmem:[%s4327_s23 + $0x168] sm:$0xff]  ;;  %v250_v45 = vld [vmem:[%s4327_s23 + $0x160] sm:$0xff]  ;;  %v252_v47 = vld [vmem:[%s4327_s23 + $0x170] sm:$0xff] }
  0x5b   : > { %v4480_v46 = vld [vmem:[%s4327_s23 + $0x200] sm:$0xff]  ;;  %v4487_v49 = vld [vmem:[%s4327_s23 + $0x208] sm:$0xff]  ;;  %v2013_v53 = vld [vmem:[#allocation5 + $0x78] sm:$0xff] }
  0x5c   : > { %352 = vadd.xlane.f32.xlu1 %v4370_v8  ;;  %350 = vadd.xlane.f32.xlu0 %v4373_v9  ;;  %v654_v50 = vmul.f32 %v4480_v46, %v4480_v46  ;;  %v655_v52 = vmul.f32 %v4487_v49, %v4487_v49  ;;  %v4497_v54 = vld [vmem:[%s4327_s23 + $0x210] sm:$0xff]  ;;  %v2011_v57 = vld [vmem:[#allocation5 + $0x68] sm:$0xff]  ;;  %v4503_v58 = vld [vmem:[%s4327_s23 + $0x218] sm:$0xff] }
  0x5d   : > { %3242 = vmatprep.subr.mxu0 %v2013_v53  ;;  %3466 = vmatprep.subr.mxu1 %v2013_v53  ;;  %v2012_v55 = vld [vmem:[#allocation5 + $0x70] sm:$0xff]  ;;  %v2010_v59 = vld [vmem:[#allocation5 + $0x60] sm:$0xff]  ;;  %v656_v60 = vmul.f32 %v4497_v54, %v4497_v54  ;;  %v2009_v62 = vld [vmem:[#allocation5 + $0x58] sm:$0xff] }
  0x5e   : > { %3243 = vmatpush3.msra.mxu0 %v2013_v53  ;;  %3482 = vmatpush3.msra.mxu1 %v2013_v53  ;;  %v2008_v63 = vld [vmem:[#allocation5 + $0x50] sm:$0xff] }
  0x5f   : > { %3244 = vmatprep.subr.mxu0 %v2012_v55  ;;  %3467 = vmatprep.subr.mxu1 %v2012_v55 }
  0x60   : > { %356 = vadd.xlane.f32.xlu1 %v4378_v10  ;;  %354 = vadd.xlane.f32.xlu0 %v4381_v11 }
  0x61   : > { %3245 = vmatpush3.msra.mxu0 %v2012_v55  ;;  %3483 = vmatpush3.msra.mxu1 %v2012_v55 }
  0x62   : > { %3246 = vmatprep.subr.mxu0 %v2011_v57  ;;  %3468 = vmatprep.subr.mxu1 %v2011_v57 }
  0x63   : > { %3247 = vmatpush3.msra.mxu0 %v2011_v57  ;;  %3484 = vmatpush3.msra.mxu1 %v2011_v57 }
  0x64   : > { %360 = vadd.xlane.f32.xlu1 %v4386_v12  ;;  %358 = vadd.xlane.f32.xlu0 %v4389_v13 }
  0x65   : > { %3248 = vmatprep.subr.mxu0 %v2010_v59  ;;  %3469 = vmatprep.subr.mxu1 %v2010_v59 }
  0x66   : > { %3249 = vmatpush3.msra.mxu0 %v2010_v59  ;;  %3485 = vmatpush3.msra.mxu1 %v2010_v59 }
  0x67   : > { %3250 = vmatprep.subr.mxu0 %v2009_v62  ;;  %3470 = vmatprep.subr.mxu1 %v2009_v62 }
  0x68   : > { %364 = vadd.xlane.f32.xlu1 %v4394_v14  ;;  %362 = vadd.xlane.f32.xlu0 %v4397_v15 }
  0x69   : > { %3251 = vmatpush3.msra.mxu0 %v2009_v62  ;;  %3486 = vmatpush3.msra.mxu1 %v2009_v62 }
  0x6a   : > { %3252 = vmatprep.subr.mxu0 %v2008_v63  ;;  %3471 = vmatprep.subr.mxu1 %v2008_v63 }
  0x6b   : > { %3253 = vmatpush3.msra.mxu0 %v2008_v63  ;;  %3487 = vmatpush3.msra.mxu1 %v2008_v63 }
  0x6c   : > { %368 = vadd.xlane.f32.xlu1 %v4402_v16  ;;  %366 = vadd.xlane.f32.xlu0 %v4405_v17 }
  0x70   : > { %372 = vadd.xlane.f32.xlu1 %v4410_v18  ;;  %370 = vadd.xlane.f32.xlu0 %v4413_v19 }
  0x74   : > { %376 = vadd.xlane.f32.xlu1 %v4418_v20  ;;  %374 = vadd.xlane.f32.xlu0 %v4421_v21 }
  0x78   : > { %380 = vadd.xlane.f32.xlu1 %v4426_v22  ;;  %378 = vadd.xlane.f32.xlu0 %v4429_v23 }
  0x7c   : > { %384 = vadd.xlane.f32.xlu1 %v4434_v24  ;;  %382 = vadd.xlane.f32.xlu0 %v4437_v25 }
  0x80   : > { %388 = vadd.xlane.f32.xlu1 %v4442_v26  ;;  %386 = vadd.xlane.f32.xlu0 %v4445_v27 }
  0x84   : > { %392 = vadd.xlane.f32.xlu1 %v4450_v28  ;;  %390 = vadd.xlane.f32.xlu0 %v4453_v29 }
  0x88   : > { %396 = vadd.xlane.f32.xlu1 %v4458_v30  ;;  %394 = vadd.xlane.f32.xlu0 %v4461_v31 }
  0x8c   : > { %400 = vadd.xlane.f32.xlu1 %v239_v32  ;;  %398 = vadd.xlane.f32.xlu0 %v238_v33  ;;  %v657_v32 = vmul.f32 %v4503_v58, %v4503_v58  ;;  %v4513_v33 = vld [vmem:[%s4327_s23 + $0x220] sm:$0xff] }
  0x90   : > { %404 = vadd.xlane.f32.xlu1 %v241_v34  ;;  %402 = vadd.xlane.f32.xlu0 %v240_v35  ;;  %v2007_v34 = vld [vmem:[#allocation5 + $0x48] sm:$0xff]  ;;  %v594_v35 = vmul.f32 %v4357_v5, %v4357_v5  ;;  %v595_v5 = vmul.f32 %v4354_v4, %v4354_v4  ;;  %v2002_v4 = vld [vmem:[#allocation5 + $0x20] sm:$0xff] }
  0x91   : > { %3254 = vmatprep.subr.mxu0 %v2007_v34  ;;  %3472 = vmatprep.subr.mxu1 %v2007_v34 }
  0x92   : > { %3255 = vmatpush3.msra.mxu0 %v2007_v34  ;;  %3488 = vmatpush3.msra.mxu1 %v2007_v34  ;;  %v599_v34 = vmul.f32 %v4370_v8, %v4370_v8  ;;  %v4585_v8 = vld [vmem:[%s4327_s23 + $0x258] sm:$0xff] }
  0x94   : > { %408 = vadd.xlane.f32.xlu1 %v243_v36  ;;  %406 = vadd.xlane.f32.xlu0 %v242_v37  ;;  %v2006_v36 = vld [vmem:[#allocation5 + $0x40] sm:$0xff]  ;;  %v4519_v37 = vld [vmem:[%s4327_s23 + $0x228] sm:$0xff] }
  0x95   : > { %3256 = vmatprep.subr.mxu0 %v2006_v36  ;;  %3473 = vmatprep.subr.mxu1 %v2006_v36 }
  0x96   : > { %3257 = vmatpush3.msra.mxu0 %v2006_v36  ;;  %3489 = vmatpush3.msra.mxu1 %v2006_v36 }
  0x98   : > { %412 = vadd.xlane.f32.xlu1 %v245_v38  ;;  %410 = vadd.xlane.f32.xlu0 %v244_v39  ;;  %v2005_v38 = vld [vmem:[#allocation5 + $0x38] sm:$0xff]  ;;  %v658_v39 = vmul.f32 %v4513_v33, %v4513_v33 }
  0x99   : > { %3258 = vmatprep.subr.mxu0 %v2005_v38  ;;  %3474 = vmatprep.subr.mxu1 %v2005_v38 }
  0x9a   : > { %3259 = vmatpush3.msra.mxu0 %v2005_v38  ;;  %3490 = vmatpush3.msra.mxu1 %v2005_v38  ;;  %v4577_v38 = vld [vmem:[%s4327_s23 + $0x250] sm:$0xff] }
  0x9c   : > { %416 = vadd.xlane.f32.xlu1 %v247_v40  ;;  %414 = vadd.xlane.f32.xlu0 %v246_v41  ;;  %v2004_v40 = vld [vmem:[#allocation5 + $0x30] sm:$0xff]  ;;  %v659_v41 = vmul.f32 %v4519_v37, %v4519_v37 }
  0x9d   : > { %3260 = vmatprep.subr.mxu0 %v2004_v40  ;;  %3475 = vmatprep.subr.mxu1 %v2004_v40 }
  0x9e   : > { %3261 = vmatpush3.msra.mxu0 %v2004_v40  ;;  %3491 = vmatpush3.msra.mxu1 %v2004_v40  ;;  %v600_v40 = vmul.f32 %v4381_v11, %v4381_v11 }
  0xa0   : > { %420 = vadd.xlane.f32.xlu1 %v249_v42  ;;  %418 = vadd.xlane.f32.xlu0 %v248_v43  ;;  %v2003_v42 = vld [vmem:[#allocation5 + $0x28] sm:$0xff]  ;;  %v4529_v43 = vld [vmem:[%s4327_s23 + $0x230] sm:$0xff] }
  0xa1   : > { %3262 = vmatprep.subr.mxu0 %v2003_v42  ;;  %3476 = vmatprep.subr.mxu1 %v2003_v42 }
  0xa2   : > { %3263 = vmatpush3.msra.mxu0 %v2003_v42  ;;  %3492 = vmatpush3.msra.mxu1 %v2003_v42 }
  0xa3   : > { %3264 = vmatprep.subr.mxu0 %v2002_v4  ;;  %3477 = vmatprep.subr.mxu1 %v2002_v4 }
  0xa4   : > { %424 = vadd.xlane.f32.xlu1 %v251_v44  ;;  %422 = vadd.xlane.f32.xlu0 %v250_v45  ;;  %v596_v44 = vmul.f32 %v4365_v7, %v4365_v7  ;;  %v4535_v45 = vld [vmem:[%s4327_s23 + $0x238] sm:$0xff]  ;;  %v2000_v7 = vld [vmem:[#allocation5 + $0x10] sm:$0xff] }
  0xa5   : > { %3265 = vmatpush3.msra.mxu0 %v2002_v4  ;;  %3493 = vmatpush3.msra.mxu1 %v2002_v4 }
  0xa8   : > { %462 = vadd.xlane.f32.xlu1 %v4480_v46  ;;  %426 = vadd.xlane.f32.xlu0 %v252_v47  ;;  %v2001_v47 = vld [vmem:[#allocation5 + $0x18] sm:$0xff] }
  0xa9   : > { %3266 = vmatprep.subr.mxu0 %v2001_v47  ;;  %3478 = vmatprep.subr.mxu1 %v2001_v47 }
  0xaa   : > { %3267 = vmatpush3.msra.mxu0 %v2001_v47  ;;  %3494 = vmatpush3.msra.mxu1 %v2001_v47  ;;  %v665_v47 = vmul.f32 %v4585_v8, %v4585_v8 }
  0xab   : > { %3268 = vmatprep.subr.mxu0 %v2000_v7  ;;  %3479 = vmatprep.subr.mxu1 %v2000_v7 }
  0xac   : > { %464 = vadd.xlane.f32.xlu0 %v4487_v49  ;;  %718 = vadd.xlane.f32.xlu1 %v590_v48  ;;  %v660_v48 = vmul.f32 %v4529_v43, %v4529_v43 }
  0xad   : > { %3269 = vmatpush3.msra.mxu0 %v2000_v7  ;;  %3495 = vmatpush3.msra.mxu1 %v2000_v7 }
  0xb0   : > { %846 = vadd.xlane.f32.xlu0 %v654_v50  ;;  %720 = vadd.xlane.f32.xlu1 %v591_v51  ;;  %v597_v50 = vmul.f32 %v4362_v6, %v4362_v6  ;;  %v1999_v51 = vld [vmem:[#allocation5 + $0x8] sm:$0xff]  ;;  %v1998_v6 = vld [vmem:[#allocation5] sm:$0xff] }
  0xb1   : > { %3270 = vmatprep.subr.mxu0 %v1999_v51  ;;  %3480 = vmatprep.subr.mxu1 %v1999_v51 }
  0xb2   : > { %3271 = vmatpush3.msra.mxu0 %v1999_v51  ;;  %3496 = vmatpush3.msra.mxu1 %v1999_v51 }
  0xb3   : > { %3272 = vmatprep.subr.mxu0 %v1998_v6  ;;  %3481 = vmatprep.subr.mxu1 %v1998_v6 }
  0xb4   : > { %848 = vadd.xlane.f32.xlu0 %v655_v52  ;;  %466 = vadd.xlane.f32.xlu1 %v4497_v54  ;;  %v661_v52 = vmul.f32 %v4535_v45, %v4535_v45 }
  0xb5   : > { %3273 = vmatpush3.msra.mxu0 %v1998_v6  ;;  %3497 = vmatpush3.msra.mxu1 %v1998_v6 }
  0xb8   : > { %468 = vadd.xlane.f32.xlu0 %v4503_v58  ;;  %722 = vadd.xlane.f32.xlu1 %v592_v56  ;;  %v4549_v56 = vld [vmem:[%s4327_s23 + $0x240] sm:$0xff] }
  0xb9   : > { %v662_v62 = vmul.f32 %v4549_v56, %v4549_v56 }
  0xbc   : > { %850 = vadd.xlane.f32.xlu0 %v656_v60  ;;  %724 = vadd.xlane.f32.xlu1 %v593_v61  ;;  %v4557_v60 = vld [vmem:[%s4327_s23 + $0x248] sm:$0xff]  ;;  %v598_v61 = vmul.f32 %v4373_v9, %v4373_v9 }
  0xbd   : > { %v663_v9 = vmul.f32 %v4557_v60, %v4557_v60 }
  0xc0   : > { %852 = vadd.xlane.f32.xlu0 %v657_v32  ;;  %470 = vadd.xlane.f32.xlu1 %v4513_v33 }
  0xc4   : > { %472 = vadd.xlane.f32.xlu0 %v4519_v37  ;;  %726 = vadd.xlane.f32.xlu1 %v594_v35 }
  0xc8   : > { %854 = vadd.xlane.f32.xlu0 %v658_v39  ;;  %728 = vadd.xlane.f32.xlu1 %v595_v5 }
  0xcc   : > { %856 = vadd.xlane.f32.xlu0 %v659_v41  ;;  %474 = vadd.xlane.f32.xlu1 %v4529_v43  ;;  %v664_v41 = vmul.f32 %v4577_v38, %v4577_v38 }
  0xd0   : > { %476 = vadd.xlane.f32.xlu0 %v4535_v45  ;;  %730 = vadd.xlane.f32.xlu1 %v596_v44  ;;  %v601_v44 = vmul.f32 %v4378_v10, %v4378_v10  ;;  %v602_v10 = vmul.f32 %v4389_v13, %v4389_v13 }
  0xd4   : > { %858 = vadd.xlane.f32.xlu0 %v660_v48  ;;  %732 = vadd.xlane.f32.xlu1 %v597_v50  ;;  %v282_v50 = vld [vmem:[%s4327_s23 + $0x260] sm:$0xff] }
  0xd5   : > { %v4544_v53 = vpop.xlane.xlu1 %338  ;;  %v4546_v55 = vpop.xlane.xlu0 %334  ;;  %v666_v6 = vmul.f32 %v282_v50, %v282_v50 }
  0xd8   : > { %860 = vadd.xlane.f32.xlu0 %v661_v52  ;;  %478 = vadd.xlane.f32.xlu1 %v4549_v56  ;;  %v283_v52 = vld [vmem:[%s4327_s23 + $0x268] sm:$0xff] }
  0xd9   : > { %v4552_v57 = vpop.xlane.xlu1 %340  ;;  %v4554_v59 = vpop.xlane.xlu0 %336 }
  0xdc   : > { %480 = vadd.xlane.f32.xlu0 %v4557_v60  ;;  %734 = vadd.xlane.f32.xlu1 %v598_v61 }
  0xdd   : > { %v4564_v63 = vpop.xlane.xlu1 %344  ;;  %v4566_v32 = vpop.xlane.xlu0 %342 }
  0xe0   : > { %862 = vadd.xlane.f32.xlu0 %v662_v62  ;;  %736 = vadd.xlane.f32.xlu1 %v599_v34  ;;  %v603_v34 = vmul.f32 %v4386_v12, %v4386_v12 }
  0xe1   : > { %v4572_v35 = vpop.xlane.xlu1 %348  ;;  %v4574_v36 = vpop.xlane.xlu0 %346 }
  0xe4   : > { %864 = vadd.xlane.f32.xlu0 %v663_v9  ;;  %482 = vadd.xlane.f32.xlu1 %v4577_v38  ;;  %v667_v9 = vmul.f32 %v283_v52, %v283_v52 }
  0xe5   : > { %v4580_v39 = vpop.xlane.xlu1 %352  ;;  %v4582_v5 = vpop.xlane.xlu0 %350 }
  0xe8   : > { %484 = vadd.xlane.f32.xlu0 %v4585_v8  ;;  %738 = vadd.xlane.f32.xlu1 %v600_v40 }
  0xe9   : > { %v4592_v42 = vpop.xlane.xlu1 %356  ;;  %v4594_v4 = vpop.xlane.xlu0 %354 }
  0xec   : > { %866 = vadd.xlane.f32.xlu0 %v664_v41  ;;  %740 = vadd.xlane.f32.xlu1 %v601_v44  ;;  %v284_v44 = vld [vmem:[%s4327_s23 + $0x270] sm:$0xff] }
  0xed   : > { %v4600_v11 = vpop.xlane.xlu1 %360  ;;  %v4602_v48 = vpop.xlane.xlu0 %358  ;;  %v668_v12 = vmul.f32 %v284_v44, %v284_v44 }
  0xf0   : > { %868 = vadd.xlane.f32.xlu0 %v665_v47  ;;  %486 = vadd.xlane.f32.xlu1 %v282_v50  ;;  %v285_v50 = vld [vmem:[%s4327_s23 + $0x278] sm:$0xff] }
  0xf1   : > { %v4605_v7 = vpop.xlane.xlu1 %364  ;;  %v4607_v51 = vpop.xlane.xlu0 %362 }
  0xf4   : > { %488 = vadd.xlane.f32.xlu0 %v283_v52  ;;  %742 = vadd.xlane.f32.xlu1 %v602_v10  ;;  %v604_v10 = vmul.f32 %v4397_v15, %v4397_v15 }
  0xf5   : > { %v4612_v61 = vpop.xlane.xlu1 %368  ;;  %v4614_v62 = vpop.xlane.xlu0 %366 }
  0xf8   : > { %870 = vadd.xlane.f32.xlu0 %v666_v6  ;;  %744 = vadd.xlane.f32.xlu1 %v603_v34  ;;  %v605_v34 = vmul.f32 %v4394_v14, %v4394_v14 }
  0xf9   : > { %v4618_v40 = vpop.xlane.xlu1 %372  ;;  %v4620_v41 = vpop.xlane.xlu0 %370 }
  0xfa   : > { %6165 = vst [vmem:[#allocation11_spill] sm:$0xff] %v4618_v40  ;;  %v286_v40 = vld [vmem:[%s4327_s23 + $0x280] sm:$0xff] }
  0xfb   : > { %v670_v14 = vmul.f32 %v286_v40, %v286_v40 }
  0xfc   : > { %872 = vadd.xlane.f32.xlu0 %v667_v9  ;;  %490 = vadd.xlane.f32.xlu1 %v284_v44  ;;  %v669_v9 = vmul.f32 %v285_v50, %v285_v50 }
  0xfd   : > { %v4623_v13 = vpop.xlane.xlu1 %376  ;;  %v4625_v47 = vpop.xlane.xlu0 %374 }
  0xfe   : > { %6166 = vst [vmem:[#allocation12_spill] sm:$0xff] %v4623_v13  ;;  %6167 = vst [vmem:[#allocation13_spill] sm:$0xff] %v4625_v47 }
 0x100   : > { %492 = vadd.xlane.f32.xlu0 %v285_v50  ;;  %746 = vadd.xlane.f32.xlu1 %v604_v10  ;;  %v287_v10 = vld [vmem:[%s4327_s23 + $0x288] sm:$0xff] }
 0x101   : > { %v4630_v52 = vpop.xlane.xlu1 %380  ;;  %v4632_v6 = vpop.xlane.xlu0 %378 }
 0x102   : > { %6168 = vst [vmem:[#allocation14_spill] sm:$0xff] %v4630_v52  ;;  %6169 = vst [vmem:[#allocation15_spill] sm:$0xff] %v4632_v6  ;;  %v606_v52 = vmul.f32 %v4405_v17, %v4405_v17  ;;  %v615_v6 = vmul.f32 %v4434_v24, %v4434_v24 }
 0x104   : > { %874 = vadd.xlane.f32.xlu0 %v668_v12  ;;  %748 = vadd.xlane.f32.xlu1 %v605_v34  ;;  %v607_v34 = vmul.f32 %v4402_v16, %v4402_v16 }
 0x105   : > { %v4636_v13 = vpop.xlane.xlu1 %384  ;;  %v4638_v47 = vpop.xlane.xlu0 %382 }
 0x106   : > { %6170 = vst [vmem:[#allocation16_spill] sm:$0xff] %v4636_v13  ;;  %6171 = vst [vmem:[#allocation17_spill] sm:$0xff] %v4638_v47  ;;  %v288_v13 = vld [vmem:[%s4327_s23 + $0x290] sm:$0xff] }
 0x107   : > { %v672_v16 = vmul.f32 %v288_v13, %v288_v13 }
 0x108   : > { %876 = vadd.xlane.f32.xlu0 %v669_v9  ;;  %494 = vadd.xlane.f32.xlu1 %v286_v40  ;;  %v671_v9 = vmul.f32 %v287_v10, %v287_v10 }
 0x109   : > { %v4641_v15 = vpop.xlane.xlu1 %388  ;;  %v4643_v44 = vpop.xlane.xlu0 %386 }
 0x10a   : > { %6172 = vst [vmem:[#allocation18_spill] sm:$0xff] %v4641_v15  ;;  %6173 = vst [vmem:[#allocation19_spill] sm:$0xff] %v4643_v44 }
 0x10c   : > { %496 = vadd.xlane.f32.xlu0 %v287_v10  ;;  %750 = vadd.xlane.f32.xlu1 %v606_v52  ;;  %v289_v52 = vld [vmem:[%s4327_s23 + $0x298] sm:$0xff] }
 0x10d   : > { %v4648_v50 = vpop.xlane.xlu1 %392  ;;  %v4650_v12 = vpop.xlane.xlu0 %390 }
 0x10e   : > { %6174 = vst [vmem:[#allocation20_spill] sm:$0xff] %v4648_v50  ;;  %6175 = vst [vmem:[#allocation21_spill] sm:$0xff] %v4650_v12  ;;  %v608_v50 = vmul.f32 %v4413_v19, %v4413_v19 }
 0x110   : > { %878 = vadd.xlane.f32.xlu0 %v670_v14  ;;  %752 = vadd.xlane.f32.xlu1 %v607_v34  ;;  %v609_v34 = vmul.f32 %v4410_v18, %v4410_v18 }
 0x111   : > { %v4654_v15 = vpop.xlane.xlu1 %396  ;;  %v4656_v44 = vpop.xlane.xlu0 %394 }
 0x112   : > { %6176 = vst [vmem:[#allocation22_spill] sm:$0xff] %v4654_v15  ;;  %6177 = vst [vmem:[#allocation23_spill] sm:$0xff] %v4656_v44  ;;  %v290_v15 = vld [vmem:[%s4327_s23 + $0x2a0] sm:$0xff]  ;;  %v4727_v44 = vmul.f32 0.0078125, %v4544_v53  ;;  %v4734_v53 = vmul.f32 0.0078125, %v4552_v57 }
 0x113   : > { %v674_v18 = vmul.f32 %v290_v15, %v290_v15 }
 0x114   : > { %880 = vadd.xlane.f32.xlu0 %v671_v9  ;;  %498 = vadd.xlane.f32.xlu1 %v288_v13  ;;  %v673_v9 = vmul.f32 %v289_v52, %v289_v52  ;;  %v1233_v57 = vmul.f32 %v4734_v53, %v4734_v53 }
 0x115   : > { %v4659_v17 = vpop.xlane.xlu1 %400  ;;  %v4661_v40 = vpop.xlane.xlu0 %398 }
 0x116   : > { %6178 = vst [vmem:[#allocation24_spill] sm:$0xff] %v4659_v17  ;;  %6179 = vst [vmem:[#allocation25_spill] sm:$0xff] %v4661_v40 }
 0x118   : > { %500 = vadd.xlane.f32.xlu0 %v289_v52  ;;  %754 = vadd.xlane.f32.xlu1 %v608_v50  ;;  %v291_v50 = vld [vmem:[%s4327_s23 + $0x2a8] sm:$0xff] }
 0x119   : > { %v4666_v10 = vpop.xlane.xlu1 %404  ;;  %v4668_v14 = vpop.xlane.xlu0 %402 }
 0x11a   : > { %6180 = vst [vmem:[#allocation26_spill] sm:$0xff] %v4666_v10  ;;  %6181 = vst [vmem:[#allocation27_spill] sm:$0xff] %v4668_v14  ;;  %v610_v10 = vmul.f32 %v4421_v21, %v4421_v21 }
 0x11c   : > { %882 = vadd.xlane.f32.xlu0 %v672_v16  ;;  %756 = vadd.xlane.f32.xlu1 %v609_v34  ;;  %v611_v34 = vmul.f32 %v4418_v20, %v4418_v20 }
 0x11d   : > { %v4672_v17 = vpop.xlane.xlu1 %408  ;;  %v4674_v40 = vpop.xlane.xlu0 %406 }
 0x11e   : > { %6182 = vst [vmem:[#allocation28_spill] sm:$0xff] %v4672_v17  ;;  %6183 = vst [vmem:[#allocation29_spill] sm:$0xff] %v4674_v40  ;;  %v292_v17 = vld [vmem:[%s4327_s23 + $0x2b0] sm:$0xff] }
 0x11f   : > { %v676_v20 = vmul.f32 %v292_v17, %v292_v17 }
 0x120   : > { %884 = vadd.xlane.f32.xlu0 %v673_v9  ;;  %502 = vadd.xlane.f32.xlu1 %v290_v15  ;;  %v675_v9 = vmul.f32 %v291_v50, %v291_v50 }
 0x121   : > { %v4677_v19 = vpop.xlane.xlu1 %412  ;;  %v4679_v13 = vpop.xlane.xlu0 %410 }
 0x122   : > { %6184 = vst [vmem:[#allocation30_spill] sm:$0xff] %v4677_v19  ;;  %6185 = vst [vmem:[#allocation31_spill] sm:$0xff] %v4679_v13 }
 0x124   : > { %504 = vadd.xlane.f32.xlu0 %v291_v50  ;;  %758 = vadd.xlane.f32.xlu1 %v610_v10  ;;  %v293_v10 = vld [vmem:[%s4327_s23 + $0x2b8] sm:$0xff] }
 0x125   : > { %v4684_v52 = vpop.xlane.xlu1 %416  ;;  %v4686_v16 = vpop.xlane.xlu0 %414 }
 0x126   : > { %6186 = vst [vmem:[#allocation32_spill] sm:$0xff] %v4684_v52  ;;  %6187 = vst [vmem:[#allocation33_spill] sm:$0xff] %v4686_v16  ;;  %v612_v52 = vmul.f32 %v4429_v23, %v4429_v23 }
 0x128   : > { %886 = vadd.xlane.f32.xlu0 %v674_v18  ;;  %760 = vadd.xlane.f32.xlu1 %v611_v34  ;;  %v613_v34 = vmul.f32 %v4426_v22, %v4426_v22 }
 0x129   : > { %v4690_v19 = vpop.xlane.xlu1 %420  ;;  %v4692_v13 = vpop.xlane.xlu0 %418 }
 0x12a   : > { %6188 = vst [vmem:[#allocation34_spill] sm:$0xff] %v4690_v19  ;;  %6189 = vst [vmem:[#allocation35_spill] sm:$0xff] %v4692_v13  ;;  %v294_v13 = vld [vmem:[%s4327_s23 + $0x2c0] sm:$0xff] }
 0x12c   : > { %888 = vadd.xlane.f32.xlu0 %v675_v9  ;;  %506 = vadd.xlane.f32.xlu1 %v292_v17  ;;  %v4707_v9 = vmul.f32 0.0078125, %v4546_v55 }
 0x12d   : > { %v4695_v21 = vpop.xlane.xlu1 %424  ;;  %v4697_v15 = vpop.xlane.xlu0 %422 }
 0x12e   : > { %6190 = vst [vmem:[#allocation36_spill] sm:$0xff] %v4695_v21  ;;  %6191 = vst [vmem:[#allocation37_spill] sm:$0xff] %v4697_v15  ;;  %v677_v21 = vmul.f32 %v293_v10, %v293_v10  ;;  %v4710_v15 = vmul.f32 0.0078125, %v4554_v59 }
 0x130   : > { %508 = vadd.xlane.f32.xlu0 %v293_v10  ;;  %762 = vadd.xlane.f32.xlu1 %v612_v52  ;;  %v1231_v55 = vmul.f32 %v4710_v15, %v4710_v15 }
 0x131   : > { %v463_v50 = vpop.xlane.xlu1 %462  ;;  %v4702_v18 = vpop.xlane.xlu0 %426 }
 0x132   : > { %6192 = vst [vmem:[#allocation38_spill] sm:$0xff] %v4702_v18  ;;  %v4712_v23 = vmul.f32 0.0078125, %v463_v50  ;;  %v1230_v18 = vmul.f32 %v4707_v9, %v4707_v9  ;;  %v295_v50 = vld [vmem:[%s4327_s23 + $0x2c8] sm:$0xff] }
 0x134   : > { %890 = vadd.xlane.f32.xlu0 %v676_v20  ;;  %764 = vadd.xlane.f32.xlu1 %v613_v34  ;;  %v1294_v10 = vmul.f32 %v4712_v23, %v4712_v23  ;;  %v614_v34 = vmul.f32 %v4437_v25, %v4437_v25 }
 0x135   : > { %v465_v17 = vpop.xlane.xlu0 %464  ;;  %v719_v52 = vpop.xlane.xlu1 %718 }
 0x136   : > { %v1102_v19 = vmul.f32 0.0078125, %v719_v52  ;;  %v4724_v16 = vmul.f32 0.0078125, %v465_v17 }
 0x138   : > { %v1358_v22 = vsub.f32 %v1102_v19, %v1230_v18  ;;  %892 = vadd.xlane.f32.xlu0 %v677_v21  ;;  %510 = vadd.xlane.f32.xlu1 %v294_v13  ;;  %v678_v18 = vmul.f32 %v294_v13, %v294_v13  ;;  %v1295_v25 = vmul.f32 %v4724_v16, %v4724_v16 }
 0x139   : > { %v847_v59 = vpop.xlane.xlu0 %846  ;;  %v721_v20 = vpop.xlane.xlu1 %720  ;;  %v679_v13 = vmul.f32 %v295_v50, %v295_v50 }
 0x13a   : > { %v1486_v40 = vadd.f32 1e-05, %v1358_v22  ;;  %v1166_v52 = vmul.f32 0.0078125, %v847_v59  ;;  %v1103_v14 = vmul.f32 0.0078125, %v721_v20  ;;  %v1232_v59 = vmul.f32 %v4727_v44, %v4727_v44 }
 0x13c   : > { %3559 = vrsqrt.f32 %v1486_v40  ;;  %v1422_v19 = vsub.f32 %v1166_v52, %v1294_v10  ;;  %v1359_v21 = vsub.f32 %v1103_v14, %v1231_v55  ;;  %512 = vadd.xlane.f32.xlu0 %v295_v50  ;;  %766 = vadd.xlane.f32.xlu1 %v614_v34 }
 0x13d   : > { %v849_v12 = vpop.xlane.xlu0 %848  ;;  %v467_v47 = vpop.xlane.xlu1 %466 }
 0x13e   : > { %v1550_v17 = vadd.f32 1e-05, %v1422_v19  ;;  %v1487_v22 = vadd.f32 1e-05, %v1359_v21  ;;  %v1167_v40 = vmul.f32 0.0078125, %v849_v12  ;;  %v4736_v55 = vmul.f32 0.0078125, %v467_v47 }
 0x13f   : > { %v296_v12 = vld [vmem:[%s4327_s23 + $0x2d0] sm:$0xff]  ;;  %v297_v19 = vld [vmem:[%s4327_s23 + $0x2d8] sm:$0xff]  ;;  %v616_v21 = vmul.f32 %v4445_v27, %v4445_v27  ;;  %v617_v27 = vmul.f32 %v4442_v26, %v4442_v26  ;;  %v1743_v26 = vsub.f32 %v4349_v3, %v4710_v15 }
 0x140   : > { %3561 = vrsqrt.f32 %v1550_v17  ;;  %v1423_v14 = vsub.f32 %v1167_v40, %v1295_v25  ;;  %894 = vadd.xlane.f32.xlu0 %v678_v18  ;;  %768 = vadd.xlane.f32.xlu1 %v615_v6  ;;  %v1296_v47 = vmul.f32 %v4736_v55, %v4736_v55 }
 0x141   : > { %3563 = vrsqrt.f32 %v1487_v22  ;;  %v469_v24 = vpop.xlane.xlu0 %468  ;;  %v723_v10 = vpop.xlane.xlu1 %722 }
 0x142   : > { %v1551_v20 = vadd.f32 1e-05, %v1423_v14  ;;  %v1104_v34 = vmul.f32 0.0078125, %v723_v10  ;;  %v4748_v18 = vmul.f32 0.0078125, %v469_v24  ;;  %v1742_v24 = vsub.f32 %v4341_v1, %v4707_v9 }
 0x143   : > { %v4764_v1 = vmul.f32 0.0078125, %v4564_v63  ;;  %v1807_v63 = vsub.f32 %v4487_v49, %v4724_v16  ;;  %v618_v49 = vmul.f32 %v4453_v29, %v4453_v29 }
 0x144   : > { %3565 = vrsqrt.f32 %v1551_v20  ;;  %v1360_v52 = vsub.f32 %v1104_v34, %v1232_v59  ;;  %896 = vadd.xlane.f32.xlu0 %v679_v13  ;;  %514 = vadd.xlane.f32.xlu1 %v296_v12  ;;  %v680_v13 = vmul.f32 %v296_v12, %v296_v12  ;;  %v4751_v59 = vmul.f32 0.0078125, %v4566_v32 }
 0x145   : > { %v851_v50 = vpop.xlane.xlu0 %850  ;;  %v725_v6 = vpop.xlane.xlu1 %724  ;;  %v681_v32 = vmul.f32 %v297_v19, %v297_v19 }
 0x146   : > { %v1488_v25 = vadd.f32 1e-05, %v1360_v52  ;;  %v1168_v17 = vmul.f32 0.0078125, %v851_v50  ;;  %v1105_v22 = vmul.f32 0.0078125, %v725_v6  ;;  %v1297_v52 = vmul.f32 %v4748_v18, %v4748_v18 }
 0x148   : > { %3567 = vrsqrt.f32 %v1488_v25  ;;  %v1424_v40 = vsub.f32 %v1168_v17, %v1296_v47  ;;  %v1361_v14 = vsub.f32 %v1105_v22, %v1233_v57  ;;  %516 = vadd.xlane.f32.xlu0 %v297_v19  ;;  %770 = vadd.xlane.f32.xlu1 %v616_v21  ;;  %v1806_v21 = vsub.f32 %v4480_v46, %v4712_v23 }
 0x149   : > { %v3560_v10 = vpop.eup %3559  ;;  %v853_v20 = vpop.xlane.xlu0 %852  ;;  %v1234_v19 = vmul.f32 %v4751_v59, %v4751_v59 }
 0x14a   : > { %v471_v34 = vpop.xlane.xlu1 %470  ;;  %v1552_v47 = vadd.f32 1e-05, %v1424_v40  ;;  %v1489_v57 = vadd.f32 1e-05, %v1361_v14  ;;  %v1169_v50 = vmul.f32 0.0078125, %v853_v20  ;;  %v1870_v12 = vmul.f32 %v3560_v10, %v1742_v24 }
 0x14b   : > { %v4766_v9 = vmul.f32 0.0078125, %v471_v34  ;;  %v1235_v20 = vmul.f32 %v4764_v1, %v4764_v1 }
 0x14c   : > { %3569 = vrsqrt.f32 %v1552_v47  ;;  %v1425_v6 = vsub.f32 %v1169_v50, %v1297_v52  ;;  %898 = vadd.xlane.f32.xlu0 %v680_v13  ;;  %772 = vadd.xlane.f32.xlu1 %v617_v27  ;;  %v298_v13 = vld [vmem:[%s4327_s23 + $0x2e0] sm:$0xff]  ;;  %v299_v47 = vld [vmem:[%s4327_s23 + $0x2e8] sm:$0xff] }
 0x14d   : > { %v3562_v25 = vpop.eup %3561  ;;  %3571 = vrsqrt.f32 %v1489_v57  ;;  %3274 = vmatprep.mubr.f32.mxu0 %v1870_v12  ;;  %v473_v17 = vpop.xlane.xlu0 %472  ;;  %v1298_v34 = vmul.f32 %v4766_v9, %v4766_v9 }
 0x14e   : > { %v727_v22 = vpop.xlane.xlu1 %726  ;;  %v3564_v40 = vpop.eup %3563  ;;  %v1553_v14 = vadd.f32 1e-05, %v1425_v6  ;;  %v1934_v23 = vmul.f32 %v3562_v25, %v1806_v21  ;;  %v4777_v27 = vmul.f32 0.0078125, %v473_v17  ;;  %v682_v21 = vmul.f32 %v298_v13, %v298_v13 }
 0x14f   : > { %v1106_v46 = vmul.f32 0.0078125, %v727_v22  ;;  %v1871_v3 = vmul.f32 %v3564_v40, %v1743_v26  ;;  %v1744_v26 = vsub.f32 %v4338_v0, %v4727_v44  ;;  %v4785_v17 = vmul.f32 0.0078125, %v4574_v36 }
 0x150   : > { %3573 = vrsqrt.f32 %v1553_v14  ;;  %900 = vadd.xlane.f32.xlu0 %v681_v32  ;;  %3370 = vmatprep.mubr.f32.mxu1 %v1934_v23  ;;  %v619_v40 = vmul.f32 %v4450_v28, %v4450_v28  ;;  %v683_v36 = vmul.f32 %v299_v47, %v299_v47  ;;  %v4796_v28 = vmul.f32 0.0078125, %v4572_v35 }
 0x151   : > { %v1362_v15 = vsub.f32 %v1106_v46, %v1234_v19  ;;  %v3566_v10 = vpop.eup %3565  ;;  %518 = vadd.xlane.f32.xlu1 %v298_v13  ;;  %3275 = vmatmul.mubr.f32.vlgmr.msra.gmra.mxu0 %v1871_v3  ;;  %v855_v24 = vpop.xlane.xlu0 %854  ;;  %v1299_v19 = vmul.f32 %v4777_v27, %v4777_v27  ;;  %v1808_v3 = vsub.f32 %v4497_v54, %v4736_v55 }
 0x152   : > { %v729_v52 = vpop.xlane.xlu1 %728  ;;  %v1170_v57 = vmul.f32 0.0078125, %v855_v24  ;;  %v1935_v12 = vmul.f32 %v3566_v10, %v1807_v63  ;;  %v1745_v63 = vsub.f32 %v4346_v2, %v4734_v53  ;;  %v1236_v55 = vmul.f32 %v4785_v17, %v4785_v17 }
 0x153   : > { %v1490_v16 = vadd.f32 1e-05, %v1362_v15  ;;  %v1107_v50 = vmul.f32 0.0078125, %v729_v52  ;;  %v300_v52 = vld [vmem:[%s4327_s23 + $0x2f0] sm:$0xff]  ;;  %v1809_v35 = vsub.f32 %v4503_v58, %v4748_v18  ;;  %v620_v58 = vmul.f32 %v4461_v31, %v4461_v31 }
 0x154   : > { %v1426_v6 = vsub.f32 %v1170_v57, %v1298_v34  ;;  %520 = vadd.xlane.f32.xlu0 %v299_v47  ;;  %3371 = vmatmul.mubr.f32.vlgmr.msra.gmra.mxu1 %v1935_v12  ;;  %v621_v31 = vmul.f32 %v4458_v30, %v4458_v30  ;;  %v3816_v30 = vld [vmem:[%s4327_s23 + $0x28] sm:$0xff] }
 0x155   : > { %3575 = vrsqrt.f32 %v1490_v16  ;;  %v1363_v32 = vsub.f32 %v1107_v50, %v1235_v20  ;;  %v3568_v25 = vpop.eup %3567  ;;  %774 = vadd.xlane.f32.xlu1 %v618_v49  ;;  %v857_v22 = vpop.xlane.xlu0 %856  ;;  %v1237_v16 = vmul.f32 %v4796_v28, %v4796_v28 }
 0x156   : > { %v475_v29 = vpop.xlane.xlu1 %474  ;;  %v1554_v14 = vadd.f32 1e-05, %v1426_v6  ;;  %v1171_v23 = vmul.f32 0.0078125, %v857_v22  ;;  %v1872_v13 = vmul.f32 %v3568_v25, %v1744_v26 }
 0x157   : > { %v1491_v46 = vadd.f32 1e-05, %v1363_v32  ;;  %v4798_v15 = vmul.f32 0.0078125, %v475_v29  ;;  %v301_v32 = vld [vmem:[%s4327_s23 + $0x2f8] sm:$0xff] }
 0x158   : > { %3577 = vrsqrt.f32 %v1554_v14  ;;  %v1427_v0 = vsub.f32 %v1171_v23, %v1299_v19  ;;  %902 = vadd.xlane.f32.xlu0 %v682_v21  ;;  %3277 = vmatprep.mubr.f32.mxu0 %v1872_v13  ;;  %v3815_v14 = vld [vmem:[%s4327_s23 + $0x20] sm:$0xff] }
 0x159   : > { %v3570_v44 = vpop.eup %3569  ;;  %3579 = vrsqrt.f32 %v1491_v46  ;;  %776 = vadd.xlane.f32.xlu1 %v619_v40  ;;  %v477_v10 = vpop.xlane.xlu0 %476  ;;  %v1300_v57 = vmul.f32 %v4798_v15, %v4798_v15  ;;  %v684_v40 = vmul.f32 %v300_v52, %v300_v52  ;;  %v1746_v46 = vsub.f32 %v3815_v14, %v4751_v59 }
 0x15a   : > { %v731_v20 = vpop.xlane.xlu1 %730  ;;  %v3572_v54 = vpop.eup %3571  ;;  %v1555_v34 = vadd.f32 1e-05, %v1427_v0  ;;  %v1936_v47 = vmul.f32 %v3570_v44, %v1808_v3  ;;  %v4809_v50 = vmul.f32 0.0078125, %v477_v10  ;;  %v1810_v59 = vsub.f32 %v4513_v33, %v4766_v9  ;;  %v302_v33 = vld [vmem:[%s4327_s23 + $0x300] sm:$0xff] }
 0x15b   : > { %v1108_v24 = vmul.f32 0.0078125, %v731_v20  ;;  %v1873_v2 = vmul.f32 %v3572_v54, %v1745_v63  ;;  %v4821_v63 = vmul.f32 0.0078125, %v4582_v5  ;;  %v685_v54 = vmul.f32 %v301_v32, %v301_v32 }
 0x15c   : > { %3581 = vrsqrt.f32 %v1555_v34  ;;  %904 = vadd.xlane.f32.xlu0 %v683_v36  ;;  %3373 = vmatprep.mubr.f32.mxu1 %v1936_v47  ;;  %v1301_v3 = vmul.f32 %v4809_v50, %v4809_v50  ;;  %v1747_v34 = vsub.f32 %v3816_v30, %v4764_v1 }
 0x15d   : > { %v1364_v53 = vsub.f32 %v1108_v24, %v1236_v55  ;;  %v3574_v49 = vpop.eup %3573  ;;  %522 = vadd.xlane.f32.xlu1 %v300_v52  ;;  %3278 = vmatmul.mubr.f32.gmra.mxu0 %v1873_v2  ;;  %v859_v12 = vpop.xlane.xlu0 %858 }
 0x15e   : > { %v733_v6 = vpop.xlane.xlu1 %732  ;;  %v1172_v21 = vmul.f32 0.0078125, %v859_v12  ;;  %v1937_v26 = vmul.f32 %v3574_v49, %v1809_v35  ;;  %v4831_v35 = vmul.f32 0.0078125, %v4580_v39  ;;  %v3817_v39 = vld [vmem:[%s4327_s23 + $0x100] sm:$0xff] }
 0x15f   : > { %v1492_v18 = vadd.f32 1e-05, %v1364_v53  ;;  %v1109_v25 = vmul.f32 0.0078125, %v733_v6  ;;  %v1238_v53 = vmul.f32 %v4821_v63, %v4821_v63 }
 0x160   : > { %v1428_v22 = vsub.f32 %v1172_v21, %v1300_v57  ;;  %524 = vadd.xlane.f32.xlu0 %v301_v32  ;;  %3374 = vmatmul.mubr.f32.gmra.mxu1 %v1937_v26  ;;  %v303_v32 = vld [vmem:[%s4327_s23 + $0x308] sm:$0xff] }
 0x161   : > { %3583 = vrsqrt.f32 %v1492_v18  ;;  %v1365_v29 = vsub.f32 %v1109_v25, %v1237_v16  ;;  %778 = vadd.xlane.f32.xlu1 %v620_v58  ;;  %v861_v23 = vpop.xlane.xlu0 %860  ;;  %v1811_v16 = vsub.f32 %v4519_v37, %v4777_v27  ;;  %v622_v58 = vmul.f32 %v3817_v39, %v3817_v39  ;;  %v305_v39 = vld [vmem:[%s4327_s23 + $0x318] sm:$0xff] }
 0x162   : > { %v3576_v19 = vpop.eup %3575  ;;  %v479_v13 = vpop.xlane.xlu1 %478  ;;  %v1556_v0 = vadd.f32 1e-05, %v1428_v22  ;;  %v1173_v44 = vmul.f32 0.0078125, %v861_v23  ;;  %v1239_v27 = vmul.f32 %v4831_v35, %v4831_v35 }
 0x163   : > { %v1493_v36 = vadd.f32 1e-05, %v1365_v29  ;;  %v1874_v10 = vmul.f32 %v3576_v19, %v1746_v46  ;;  %v4827_v47 = vmul.f32 0.0078125, %v479_v13  ;;  %v686_v46 = vmul.f32 %v302_v33, %v302_v33 }
 0x164   : > { %3585 = vrsqrt.f32 %v1556_v0  ;;  %v1429_v20 = vsub.f32 %v1173_v44, %v1301_v3  ;;  %906 = vadd.xlane.f32.xlu0 %v684_v40  ;;  %v3818_v40 = vld [vmem:[%s4327_s23 + $0x30] sm:$0xff]  ;;  %v3819_v3 = vld [vmem:[%s4327_s23 + $0x108] sm:$0xff] }
 0x165   : > { %v3578_v55 = vpop.eup %3577  ;;  %3587 = vrsqrt.f32 %v1493_v36  ;;  %780 = vadd.xlane.f32.xlu1 %v621_v31  ;;  %3280 = vmatprep.mubr.f32.mxu0 %v1874_v10  ;;  %v481_v24 = vpop.xlane.xlu0 %480  ;;  %v1302_v18 = vmul.f32 %v4827_v47, %v4827_v47  ;;  %v1748_v19 = vsub.f32 %v3818_v40, %v4785_v17  ;;  %v623_v0 = vmul.f32 %v3819_v3, %v3819_v3 }
 0x166   : > { %v3580_v52 = vpop.eup %3579  ;;  %v1557_v5 = vadd.f32 1e-05, %v1429_v20  ;;  %v735_v2 = vpop.xlane.xlu1 %734  ;;  %v1938_v9 = vmul.f32 %v3578_v55, %v1810_v59  ;;  %v4841_v21 = vmul.f32 0.0078125, %v481_v24  ;;  %v4851_v17 = vmul.f32 0.0078125, %v4594_v4 }
 0x167   : > { %v1110_v1 = vmul.f32 0.0078125, %v735_v2  ;;  %v1875_v49 = vmul.f32 %v3580_v52, %v1747_v34  ;;  %v1812_v55 = vsub.f32 %v4529_v43, %v4798_v15  ;;  %v687_v34 = vmul.f32 %v303_v32, %v303_v32  ;;  %v3820_v52 = vld [vmem:[%s4327_s23 + $0x38] sm:$0xff]  ;;  %v304_v43 = vld [vmem:[%s4327_s23 + $0x310] sm:$0xff] }
 0x168   : > { %3589 = vrsqrt.f32 %v1557_v5  ;;  %908 = vadd.xlane.f32.xlu0 %v685_v54  ;;  %3376 = vmatprep.mubr.f32.mxu1 %v1938_v9  ;;  %v1303_v36 = vmul.f32 %v4841_v21, %v4841_v21  ;;  %v1749_v5 = vsub.f32 %v3820_v52, %v4796_v28  ;;  %v688_v40 = vmul.f32 %v304_v43, %v304_v43 }
 0x169   : > { %v3582_v57 = vpop.eup %3581  ;;  %v1366_v12 = vsub.f32 %v1110_v1, %v1238_v53  ;;  %526 = vadd.xlane.f32.xlu1 %v302_v33  ;;  %3281 = vmatmul.mubr.f32.gmra.mxu0 %v1875_v49  ;;  %v863_v6 = vpop.xlane.xlu0 %862  ;;  %v4861_v1 = vmul.f32 0.0078125, %v4592_v42  ;;  %v1240_v49 = vmul.f32 %v4851_v17, %v4851_v17  ;;  %v3821_v42 = vld [vmem:[%s4327_s23 + $0x110] sm:$0xff] }
 0x16a   : > { %v1174_v25 = vmul.f32 0.0078125, %v863_v6  ;;  %v737_v26 = vpop.xlane.xlu1 %736  ;;  %v1939_v37 = vmul.f32 %v3582_v57, %v1811_v16  ;;  %v1813_v57 = vsub.f32 %v4535_v45, %v4809_v50 }
 0x16b   : > { %v1494_v22 = vadd.f32 1e-05, %v1366_v12  ;;  %v1111_v29 = vmul.f32 0.0078125, %v737_v26 }
 0x16c   : > { %v1430_v14 = vsub.f32 %v1174_v25, %v1302_v18  ;;  %528 = vadd.xlane.f32.xlu0 %v303_v32  ;;  %3377 = vmatmul.mubr.f32.gmra.mxu1 %v1939_v37  ;;  %v1241_v37 = vmul.f32 %v4861_v1, %v4861_v1 }
 0x16d   : > { %3591 = vrsqrt.f32 %v1494_v22  ;;  %v1367_v13 = vsub.f32 %v1111_v29, %v1239_v27  ;;  %782 = vadd.xlane.f32.xlu1 %v622_v58  ;;  %v865_v31 = vpop.xlane.xlu0 %864  ;;  %v624_v58 = vmul.f32 %v3821_v42, %v3821_v42 }
 0x16e   : > { %v3584_v23 = vpop.eup %3583  ;;  %v1558_v44 = vadd.f32 1e-05, %v1430_v14  ;;  %v1175_v10 = vmul.f32 0.0078125, %v865_v31  ;;  %v483_v59 = vpop.xlane.xlu1 %482 }
 0x16f   : > { %v1876_v20 = vmul.f32 %v3584_v23, %v1748_v19  ;;  %v1495_v54 = vadd.f32 1e-05, %v1367_v13  ;;  %v4857_v9 = vmul.f32 0.0078125, %v483_v59  ;;  %v3822_v19 = vld [vmem:[%s4327_s23 + $0x40] sm:$0xff]  ;;  %v3823_v13 = vld [vmem:[%s4327_s23 + $0x118] sm:$0xff]  ;;  %v4881_v59 = vmul.f32 0.0078125, %v4602_v48 }
 0x170   : > { %3593 = vrsqrt.f32 %v1558_v44  ;;  %v1431_v30 = vsub.f32 %v1175_v10, %v1303_v36  ;;  %910 = vadd.xlane.f32.xlu0 %v686_v46  ;;  %v1750_v14 = vsub.f32 %v3822_v19, %v4821_v63  ;;  %v625_v31 = vmul.f32 %v3823_v13, %v3823_v13 }
 0x171   : > { %3283 = vmatprep.mubr.f32.mxu0 %v1876_v20  ;;  %v3586_v24 = vpop.eup %3585  ;;  %3595 = vrsqrt.f32 %v1495_v54  ;;  %784 = vadd.xlane.f32.xlu1 %v623_v0  ;;  %v485_v2 = vpop.xlane.xlu0 %484  ;;  %v1304_v18 = vmul.f32 %v4857_v9, %v4857_v9  ;;  %v1814_v63 = vsub.f32 %v4549_v56, %v4827_v47  ;;  %v306_v56 = vld [vmem:[%s4327_s23 + $0x320] sm:$0xff] }
 0x172   : > { %v3588_v33 = vpop.eup %3587  ;;  %v1559_v4 = vadd.f32 1e-05, %v1431_v30  ;;  %v739_v53 = vpop.xlane.xlu1 %738  ;;  %v1940_v15 = vmul.f32 %v3586_v24, %v1812_v55  ;;  %v4871_v25 = vmul.f32 0.0078125, %v485_v2  ;;  %v689_v30 = vmul.f32 %v305_v39, %v305_v39  ;;  %v3824_v24 = vld [vmem:[%s4327_s23 + $0x48] sm:$0xff] }
 0x173   : > { %v1112_v16 = vmul.f32 0.0078125, %v739_v53  ;;  %v1877_v28 = vmul.f32 %v3588_v33, %v1749_v5  ;;  %v1751_v52 = vsub.f32 %v3824_v24, %v4831_v35  ;;  %v4891_v53 = vmul.f32 0.0078125, %v4600_v11  ;;  %v3825_v11 = vld [vmem:[%s4327_s23 + $0x120] sm:$0xff] }
 0x174   : > { %3597 = vrsqrt.f32 %v1559_v4  ;;  %912 = vadd.xlane.f32.xlu0 %v687_v34  ;;  %3379 = vmatprep.mubr.f32.mxu1 %v1940_v15  ;;  %v1305_v0 = vmul.f32 %v4871_v25, %v4871_v25 }
 0x175   : > { %v3590_v12 = vpop.eup %3589  ;;  %v1368_v6 = vsub.f32 %v1112_v16, %v1240_v49  ;;  %530 = vadd.xlane.f32.xlu1 %v304_v43  ;;  %3284 = vmatmul.mubr.f32.gmra.mxu0 %v1877_v28  ;;  %v867_v32 = vpop.xlane.xlu0 %866  ;;  %v1242_v43 = vmul.f32 %v4881_v59, %v4881_v59  ;;  %v1815_v49 = vsub.f32 %v4557_v60, %v4841_v21 }
 0x176   : > { %v1176_v26 = vmul.f32 0.0078125, %v867_v32  ;;  %v741_v45 = vpop.xlane.xlu1 %740  ;;  %v1941_v50 = vmul.f32 %v3590_v12, %v1813_v57  ;;  %v307_v12 = vld [vmem:[%s4327_s23 + $0x328] sm:$0xff] }
 0x177   : > { %v1496_v27 = vadd.f32 1e-05, %v1368_v6  ;;  %v1113_v22 = vmul.f32 0.0078125, %v741_v45  ;;  %v626_v6 = vmul.f32 %v3825_v11, %v3825_v11 }
 0x178   : > { %v1432_v29 = vsub.f32 %v1176_v26, %v1304_v18  ;;  %532 = vadd.xlane.f32.xlu0 %v305_v39  ;;  %3380 = vmatmul.mubr.f32.gmra.mxu1 %v1941_v50  ;;  %v690_v50 = vmul.f32 %v306_v56, %v306_v56 }
 0x179   : > { %3599 = vrsqrt.f32 %v1496_v27  ;;  %v1369_v46 = vsub.f32 %v1113_v22, %v1241_v37  ;;  %786 = vadd.xlane.f32.xlu1 %v624_v58  ;;  %v869_v23 = vpop.xlane.xlu0 %868  ;;  %v1243_v58 = vmul.f32 %v4891_v53, %v4891_v53  ;;  %v3826_v37 = vld [vmem:[%s4327_s23 + $0x50] sm:$0xff] }
 0x17a   : > { %v3592_v3 = vpop.eup %3591  ;;  %v1560_v36 = vadd.f32 1e-05, %v1432_v29  ;;  %v1177_v44 = vmul.f32 0.0078125, %v869_v23  ;;  %v487_v10 = vpop.xlane.xlu1 %486  ;;  %v1752_v27 = vsub.f32 %v3826_v37, %v4851_v17  ;;  %v1816_v17 = vsub.f32 %v4577_v38, %v4857_v9  ;;  %v308_v38 = vld [vmem:[%s4327_s23 + $0x330] sm:$0xff] }
 0x17b   : > { %v1497_v20 = vadd.f32 1e-05, %v1369_v46  ;;  %v1878_v54 = vmul.f32 %v3592_v3, %v1750_v14  ;;  %v4887_v33 = vmul.f32 0.0078125, %v487_v10  ;;  %v4911_v3 = vmul.f32 0.0078125, %v4607_v51 }
 0x17c   : > { %3601 = vrsqrt.f32 %v1560_v36  ;;  %v1433_v55 = vsub.f32 %v1177_v44, %v1305_v0  ;;  %914 = vadd.xlane.f32.xlu0 %v688_v40  ;;  %v3827_v40 = vld [vmem:[%s4327_s23 + $0x128] sm:$0xff]  ;;  %v691_v10 = vmul.f32 %v307_v12, %v307_v12 }
 0x17d   : > { %v3594_v34 = vpop.eup %3593  ;;  %3603 = vrsqrt.f32 %v1497_v20  ;;  %788 = vadd.xlane.f32.xlu1 %v625_v31  ;;  %3286 = vmatprep.mubr.f32.mxu0 %v1878_v54  ;;  %v489_v5 = vpop.xlane.xlu0 %488  ;;  %v1306_v32 = vmul.f32 %v4887_v33, %v4887_v33  ;;  %v627_v19 = vmul.f32 %v3827_v40, %v3827_v40  ;;  %v3828_v54 = vld [vmem:[%s4327_s23 + $0x58] sm:$0xff] }
 0x17e   : > { %v3596_v48 = vpop.eup %3595  ;;  %v1561_v2 = vadd.f32 1e-05, %v1433_v55  ;;  %v743_v4 = vpop.xlane.xlu1 %742  ;;  %v1942_v47 = vmul.f32 %v3594_v34, %v1814_v63  ;;  %v4901_v39 = vmul.f32 0.0078125, %v489_v5  ;;  %v1753_v63 = vsub.f32 %v3828_v54, %v4861_v1 }
 0x17f   : > { %v1114_v35 = vmul.f32 0.0078125, %v743_v4  ;;  %v1879_v15 = vmul.f32 %v3596_v48, %v1751_v52  ;;  %v4921_v52 = vmul.f32 0.0078125, %v4605_v7  ;;  %v1244_v5 = vmul.f32 %v4911_v3, %v4911_v3  ;;  %v3829_v7 = vld [vmem:[%s4327_s23 + $0x130] sm:$0xff] }
 0x180   : > { %3605 = vrsqrt.f32 %v1561_v2  ;;  %916 = vadd.xlane.f32.xlu0 %v689_v30  ;;  %3382 = vmatprep.mubr.f32.mxu1 %v1942_v47  ;;  %v1307_v46 = vmul.f32 %v4901_v39, %v4901_v39  ;;  %v1817_v2 = vsub.f32 %v4585_v8, %v4871_v25 }
 0x181   : > { %v3598_v16 = vpop.eup %3597  ;;  %v1370_v28 = vsub.f32 %v1114_v35, %v1242_v43  ;;  %534 = vadd.xlane.f32.xlu1 %v306_v56  ;;  %3287 = vmatmul.mubr.f32.gmra.mxu0 %v1879_v15  ;;  %v871_v57 = vpop.xlane.xlu0 %870  ;;  %v309_v43 = vld [vmem:[%s4327_s23 + $0x338] sm:$0xff]  ;;  %v628_v35 = vmul.f32 %v3829_v7, %v3829_v7 }
 0x182   : > { %v1178_v42 = vmul.f32 0.0078125, %v871_v57  ;;  %v745_v60 = vpop.xlane.xlu1 %744  ;;  %v1943_v21 = vmul.f32 %v3598_v16, %v1815_v49 }
 0x183   : > { %v1498_v18 = vadd.f32 1e-05, %v1370_v28  ;;  %v1115_v26 = vmul.f32 0.0078125, %v745_v60  ;;  %v1245_v28 = vmul.f32 %v4921_v52, %v4921_v52 }
 0x184   : > { %v1434_v45 = vsub.f32 %v1178_v42, %v1306_v32  ;;  %536 = vadd.xlane.f32.xlu0 %v307_v12  ;;  %3383 = vmatmul.mubr.f32.gmra.mxu1 %v1943_v21  ;;  %v3830_v32 = vld [vmem:[%s4327_s23 + $0x60] sm:$0xff] }
 0x185   : > { %3607 = vrsqrt.f32 %v1498_v18  ;;  %v1371_v22 = vsub.f32 %v1115_v26, %v1243_v58  ;;  %790 = vadd.xlane.f32.xlu1 %v626_v6  ;;  %v873_v29 = vpop.xlane.xlu0 %872  ;;  %v692_v6 = vmul.f32 %v308_v38, %v308_v38  ;;  %v1754_v42 = vsub.f32 %v3830_v32, %v4881_v59  ;;  %v3831_v58 = vld [vmem:[%s4327_s23 + $0x138] sm:$0xff]  ;;  %v3832_v59 = vld [vmem:[%s4327_s23 + $0x260] sm:$0xff] }
 0x186   : > { %v3600_v14 = vpop.eup %3599  ;;  %v1562_v23 = vadd.f32 1e-05, %v1434_v45  ;;  %v1179_v13 = vmul.f32 0.0078125, %v873_v29  ;;  %v491_v31 = vpop.xlane.xlu1 %490  ;;  %v629_v18 = vmul.f32 %v3831_v58, %v3831_v58 }
 0x187   : > { %v1499_v0 = vadd.f32 1e-05, %v1371_v22  ;;  %v1880_v36 = vmul.f32 %v3600_v14, %v1752_v27  ;;  %v4917_v34 = vmul.f32 0.0078125, %v491_v31  ;;  %v4941_v22 = vmul.f32 0.0078125, %v4614_v62 }
 0x188   : > { %3609 = vrsqrt.f32 %v1562_v23  ;;  %v1435_v44 = vsub.f32 %v1179_v13, %v1307_v46  ;;  %918 = vadd.xlane.f32.xlu0 %v690_v50  ;;  %v693_v46 = vmul.f32 %v309_v43, %v309_v43  ;;  %v3833_v13 = vld [vmem:[%s4327_s23 + $0x68] sm:$0xff] }
 0x189   : > { %v3602_v20 = vpop.eup %3601  ;;  %3611 = vrsqrt.f32 %v1499_v0  ;;  %792 = vadd.xlane.f32.xlu1 %v627_v19  ;;  %3289 = vmatprep.mubr.f32.mxu0 %v1880_v36  ;;  %v493_v55 = vpop.xlane.xlu0 %492  ;;  %v1308_v15 = vmul.f32 %v4917_v34, %v4917_v34  ;;  %v1818_v19 = vsub.f32 %v3832_v59, %v4887_v33  ;;  %v1755_v31 = vsub.f32 %v3833_v13, %v4891_v53  ;;  %v310_v33 = vld [vmem:[%s4327_s23 + $0x340] sm:$0xff] }
 0x18a   : > { %v3604_v51 = vpop.eup %3603  ;;  %v1563_v30 = vadd.f32 1e-05, %v1435_v44  ;;  %v747_v24 = vpop.xlane.xlu1 %746  ;;  %v1944_v9 = vmul.f32 %v3602_v20, %v1816_v17  ;;  %v4931_v49 = vmul.f32 0.0078125, %v493_v55  ;;  %v4951_v20 = vmul.f32 0.0078125, %v4612_v61  ;;  %v3834_v55 = vld [vmem:[%s4327_s23 + $0x268] sm:$0xff]  ;;  %v3835_v61 = vld [vmem:[%s4327_s23 + $0x140] sm:$0xff] }
 0x18b   : > { %v1116_v1 = vmul.f32 0.0078125, %v747_v24  ;;  %v1881_v48 = vmul.f32 %v3604_v51, %v1753_v63  ;;  %v1246_v54 = vmul.f32 %v4941_v22, %v4941_v22  ;;  %v1819_v51 = vsub.f32 %v3834_v55, %v4901_v39 }
 0x18c   : > { %3613 = vrsqrt.f32 %v1563_v30  ;;  %920 = vadd.xlane.f32.xlu0 %v691_v10  ;;  %3385 = vmatprep.mubr.f32.mxu1 %v1944_v9  ;;  %v1309_v45 = vmul.f32 %v4931_v49, %v4931_v49  ;;  %v311_v9 = vld [vmem:[%s4327_s23 + $0x348] sm:$0xff] }
 0x18d   : > { %v3606_v4 = vpop.eup %3605  ;;  %v1372_v56 = vsub.f32 %v1116_v1, %v1244_v5  ;;  %538 = vadd.xlane.f32.xlu1 %v308_v38  ;;  %3290 = vmatmul.mubr.f32.gmra.mxu0 %v1881_v48  ;;  %v875_v47 = vpop.xlane.xlu0 %874  ;;  %v630_v5 = vmul.f32 %v3835_v61, %v3835_v61 }
 0x18e   : > { %v1180_v16 = vmul.f32 0.0078125, %v875_v47  ;;  %v749_v8 = vpop.xlane.xlu1 %748  ;;  %v1945_v25 = vmul.f32 %v3606_v4, %v1817_v2 }
 0x18f   : > { %v1500_v57 = vadd.f32 1e-05, %v1372_v56  ;;  %v1117_v12 = vmul.f32 0.0078125, %v749_v8  ;;  %v1247_v56 = vmul.f32 %v4951_v20, %v4951_v20 }
 0x190   : > { %v1436_v11 = vsub.f32 %v1180_v16, %v1308_v15  ;;  %540 = vadd.xlane.f32.xlu0 %v309_v43  ;;  %3386 = vmatmul.mubr.f32.gmra.mxu1 %v1945_v25  ;;  %v3836_v15 = vld [vmem:[%s4327_s23 + $0x70] sm:$0xff] }
 0x191   : > { %3615 = vrsqrt.f32 %v1500_v57  ;;  %v1373_v60 = vsub.f32 %v1117_v12, %v1245_v28  ;;  %794 = vadd.xlane.f32.xlu1 %v628_v35  ;;  %v877_v21 = vpop.xlane.xlu0 %876  ;;  %v694_v35 = vmul.f32 %v310_v33, %v310_v33  ;;  %v1756_v16 = vsub.f32 %v3836_v15, %v4911_v3  ;;  %v3837_v28 = vld [vmem:[%s4327_s23 + $0x148] sm:$0xff]  ;;  %v3838_v3 = vld [vmem:[%s4327_s23 + $0x270] sm:$0xff] }
 0x192   : > { %v3608_v26 = vpop.eup %3607  ;;  %v1564_v50 = vadd.f32 1e-05, %v1436_v11  ;;  %v1181_v37 = vmul.f32 0.0078125, %v877_v21  ;;  %v495_v27 = vpop.xlane.xlu1 %494  ;;  %v631_v57 = vmul.f32 %v3837_v28, %v3837_v28 }
 0x193   : > { %v1501_v29 = vadd.f32 1e-05, %v1373_v60  ;;  %v1882_v40 = vmul.f32 %v3608_v26, %v1754_v42  ;;  %v4947_v17 = vmul.f32 0.0078125, %v495_v27  ;;  %v4971_v60 = vmul.f32 0.0078125, %v4620_v41 }
 0x194   : > { %3617 = vrsqrt.f32 %v1564_v50  ;;  %v1437_v14 = vsub.f32 %v1181_v37, %v1309_v45  ;;  %922 = vadd.xlane.f32.xlu0 %v692_v6  ;;  %v695_v45 = vmul.f32 %v311_v9, %v311_v9  ;;  %v3839_v37 = vld [vmem:[%s4327_s23 + $0x78] sm:$0xff] }
 0x195   : > { %v3610_v23 = vpop.eup %3609  ;;  %3619 = vrsqrt.f32 %v1501_v29  ;;  %796 = vadd.xlane.f32.xlu1 %v629_v18  ;;  %3292 = vmatprep.mubr.f32.mxu0 %v1882_v40  ;;  %v497_v62 = vpop.xlane.xlu0 %496  ;;  %v1310_v1 = vmul.f32 %v4947_v17, %v4947_v17  ;;  %v1820_v18 = vsub.f32 %v3838_v3, %v4917_v34  ;;  %v1757_v27 = vsub.f32 %v3839_v37, %v4921_v52  ;;  %v312_v34 = vld [vmem:[%s4327_s23 + $0x350] sm:$0xff]  ;;  %v6195_v37 = vld [vmem:[#allocation12_spill] sm:$0xff] }
 0x196   : > { %v3612_v0 = vpop.eup %3611  ;;  %v1565_v36 = vadd.f32 1e-05, %v1437_v14  ;;  %v751_v44 = vpop.xlane.xlu1 %750  ;;  %v1946_v10 = vmul.f32 %v3610_v23, %v1818_v19  ;;  %v4961_v48 = vmul.f32 0.0078125, %v497_v62  ;;  %v1248_v13 = vmul.f32 %v4971_v60, %v4971_v60  ;;  %v3840_v62 = vld [vmem:[%s4327_s23 + $0x278] sm:$0xff] }
 0x197   : > { %v1118_v53 = vmul.f32 0.0078125, %v751_v44  ;;  %v1883_v63 = vmul.f32 %v3612_v0, %v1755_v31  ;;  %v1821_v0 = vsub.f32 %v3840_v62, %v4931_v49 }
 0x198   : > { %3621 = vrsqrt.f32 %v1565_v36  ;;  %924 = vadd.xlane.f32.xlu0 %v693_v46  ;;  %3388 = vmatprep.mubr.f32.mxu1 %v1946_v10  ;;  %v1311_v11 = vmul.f32 %v4961_v48, %v4961_v48  ;;  %v6193_v46 = vld [vmem:[#allocation11_spill] sm:$0xff]  ;;  %v313_v10 = vld [vmem:[%s4327_s23 + $0x358] sm:$0xff] }
 0x199   : > { %v3614_v30 = vpop.eup %3613  ;;  %v1374_v24 = vsub.f32 %v1118_v53, %v1246_v54  ;;  %542 = vadd.xlane.f32.xlu1 %v310_v33  ;;  %3293 = vmatmul.mubr.f32.gmra.mxu0 %v1883_v63  ;;  %v879_v38 = vpop.xlane.xlu0 %878  ;;  %v4981_v23 = vmul.f32 0.0078125, %v6193_v46  ;;  %v3841_v54 = vld [vmem:[%s4327_s23 + $0x150] sm:$0xff] }
 0x19a   : > { %v1182_v2 = vmul.f32 0.0078125, %v879_v38  ;;  %v753_v39 = vpop.xlane.xlu1 %752  ;;  %v1947_v4 = vmul.f32 %v3614_v30, %v1819_v51  ;;  %v632_v53 = vmul.f32 %v3841_v54, %v3841_v54 }
 0x19b   : > { %v1502_v47 = vadd.f32 1e-05, %v1374_v24  ;;  %v1119_v43 = vmul.f32 0.0078125, %v753_v39  ;;  %v1249_v24 = vmul.f32 %v4981_v23, %v4981_v23 }
 0x19c   : > { %v1438_v7 = vsub.f32 %v1182_v2, %v1310_v1  ;;  %544 = vadd.xlane.f32.xlu0 %v311_v9  ;;  %3389 = vmatmul.mubr.f32.gmra.mxu1 %v1947_v4  ;;  %v3842_v1 = vld [vmem:[%s4327_s23 + $0x80] sm:$0xff] }
 0x19d   : > { %3623 = vrsqrt.f32 %v1502_v47  ;;  %v1375_v8 = vsub.f32 %v1119_v43, %v1247_v56  ;;  %798 = vadd.xlane.f32.xlu1 %v630_v5  ;;  %v881_v25 = vpop.xlane.xlu0 %880  ;;  %v696_v5 = vmul.f32 %v312_v34, %v312_v34  ;;  %v1758_v2 = vsub.f32 %v3842_v1, %v4941_v22  ;;  %v3843_v56 = vld [vmem:[%s4327_s23 + $0x158] sm:$0xff]  ;;  %v3844_v22 = vld [vmem:[%s4327_s23 + $0x280] sm:$0xff] }
 0x19e   : > { %v3616_v12 = vpop.eup %3615  ;;  %v1566_v6 = vadd.f32 1e-05, %v1438_v7  ;;  %v1183_v32 = vmul.f32 0.0078125, %v881_v25  ;;  %v499_v42 = vpop.xlane.xlu1 %498  ;;  %v633_v47 = vmul.f32 %v3843_v56, %v3843_v56 }
 0x19f   : > { %v1503_v21 = vadd.f32 1e-05, %v1375_v8  ;;  %v1884_v58 = vmul.f32 %v3616_v12, %v1756_v16  ;;  %v4977_v59 = vmul.f32 0.0078125, %v499_v42  ;;  %v6194_v8 = vld [vmem:[#allocation13_spill] sm:$0xff]  ;;  %v1822_v12 = vsub.f32 %v3844_v22, %v4947_v17  ;;  %v3845_v42 = vld [vmem:[%s4327_s23 + $0x88] sm:$0xff]  ;;  %v314_v17 = vld [vmem:[%s4327_s23 + $0x360] sm:$0xff] }
 0x1a0   : > { %3625 = vrsqrt.f32 %v1566_v6  ;;  %v1439_v26 = vsub.f32 %v1183_v32, %v1311_v11  ;;  %926 = vadd.xlane.f32.xlu0 %v694_v35  ;;  %v5001_v25 = vmul.f32 0.0078125, %v6194_v8  ;;  %v697_v6 = vmul.f32 %v313_v10, %v313_v10  ;;  %v3851_v8 = vld [vmem:[%s4327_s23 + $0x98] sm:$0xff] }
 0x1a1   : > { %v3618_v50 = vpop.eup %3617  ;;  %3627 = vrsqrt.f32 %v1503_v21  ;;  %800 = vadd.xlane.f32.xlu1 %v631_v57  ;;  %3295 = vmatprep.mubr.f32.mxu0 %v1884_v58  ;;  %v501_v41 = vpop.xlane.xlu0 %500  ;;  %v1312_v63 = vmul.f32 %v4977_v59, %v4977_v59  ;;  %v1759_v21 = vsub.f32 %v3845_v42, %v4951_v20  ;;  %v6197_v42 = vld [vmem:[#allocation14_spill] sm:$0xff] }
 0x1a2   : > { %v3620_v29 = vpop.eup %3619  ;;  %v1567_v40 = vadd.f32 1e-05, %v1439_v26  ;;  %v755_v19 = vpop.xlane.xlu1 %754  ;;  %v1948_v14 = vmul.f32 %v3618_v50, %v1820_v18  ;;  %v4991_v55 = vmul.f32 0.0078125, %v501_v41  ;;  %v1250_v41 = vmul.f32 %v5001_v25, %v5001_v25 }
 0x1a3   : > { %v1120_v52 = vmul.f32 0.0078125, %v755_v19  ;;  %v1885_v31 = vmul.f32 %v3620_v29, %v1757_v27  ;;  %v5011_v27 = vmul.f32 0.0078125, %v6195_v37 }
 0x1a4   : > { %3629 = vrsqrt.f32 %v1567_v40  ;;  %928 = vadd.xlane.f32.xlu0 %v695_v45  ;;  %3391 = vmatprep.mubr.f32.mxu1 %v1948_v14  ;;  %v1313_v7 = vmul.f32 %v4991_v55, %v4991_v55  ;;  %v3846_v40 = vld [vmem:[%s4327_s23 + $0x288] sm:$0xff] }
 0x1a5   : > { %v3622_v36 = vpop.eup %3621  ;;  %v1376_v44 = vsub.f32 %v1120_v52, %v1248_v13  ;;  %546 = vadd.xlane.f32.xlu1 %v312_v34  ;;  %3296 = vmatmul.mubr.f32.gmra.mxu0 %v1885_v31  ;;  %v883_v33 = vpop.xlane.xlu0 %882  ;;  %v1823_v19 = vsub.f32 %v3846_v40, %v4961_v48  ;;  %v315_v13 = vld [vmem:[%s4327_s23 + $0x368] sm:$0xff]  ;;  %v3847_v52 = vld [vmem:[%s4327_s23 + $0x160] sm:$0xff] }
 0x1a6   : > { %v1184_v51 = vmul.f32 0.0078125, %v883_v33  ;;  %v757_v49 = vpop.xlane.xlu1 %756  ;;  %v1949_v30 = vmul.f32 %v3622_v36, %v1821_v0  ;;  %v634_v31 = vmul.f32 %v3847_v52, %v3847_v52  ;;  %v1251_v33 = vmul.f32 %v5011_v27, %v5011_v27 }
 0x1a7   : > { %v1504_v38 = vadd.f32 1e-05, %v1376_v44  ;;  %v1121_v9 = vmul.f32 0.0078125, %v757_v49 }
 0x1a8   : > { %v1440_v61 = vsub.f32 %v1184_v51, %v1312_v63  ;;  %548 = vadd.xlane.f32.xlu0 %v313_v10  ;;  %3392 = vmatmul.mubr.f32.gmra.mxu1 %v1949_v30  ;;  %v698_v63 = vmul.f32 %v314_v17, %v314_v17  ;;  %v3848_v51 = vld [vmem:[%s4327_s23 + $0x90] sm:$0xff] }
 0x1a9   : > { %3631 = vrsqrt.f32 %v1504_v38  ;;  %v1377_v39 = vsub.f32 %v1121_v9, %v1249_v24  ;;  %802 = vadd.xlane.f32.xlu1 %v632_v53  ;;  %v885_v4 = vpop.xlane.xlu0 %884  ;;  %v1760_v49 = vsub.f32 %v3848_v51, %v4971_v60  ;;  %v3849_v38 = vld [vmem:[%s4327_s23 + $0x168] sm:$0xff]  ;;  %v3850_v60 = vld [vmem:[%s4327_s23 + $0x290] sm:$0xff] }
 0x1aa   : > { %v3624_v43 = vpop.eup %3623  ;;  %v1568_v35 = vadd.f32 1e-05, %v1440_v61  ;;  %v1185_v15 = vmul.f32 0.0078125, %v885_v4  ;;  %v503_v16 = vpop.xlane.xlu1 %502  ;;  %v635_v9 = vmul.f32 %v3849_v38, %v3849_v38  ;;  %v6196_v4 = vld [vmem:[#allocation15_spill] sm:$0xff] }
 0x1ab   : > { %v1505_v28 = vadd.f32 1e-05, %v1377_v39  ;;  %v1886_v57 = vmul.f32 %v3624_v43, %v1758_v2  ;;  %v5007_v26 = vmul.f32 0.0078125, %v503_v16  ;;  %v5031_v56 = vmul.f32 0.0078125, %v6196_v4 }
 0x1ac   : > { %3633 = vrsqrt.f32 %v1568_v35  ;;  %v1441_v11 = vsub.f32 %v1185_v15, %v1313_v7  ;;  %930 = vadd.xlane.f32.xlu0 %v696_v5  ;;  %v1824_v7 = vsub.f32 %v3850_v60, %v4977_v59  ;;  %v699_v15 = vmul.f32 %v315_v13, %v315_v13  ;;  %v316_v59 = vld [vmem:[%s4327_s23 + $0x370] sm:$0xff] }
 0x1ad   : > { %v3626_v32 = vpop.eup %3625  ;;  %3635 = vrsqrt.f32 %v1505_v28  ;;  %804 = vadd.xlane.f32.xlu1 %v633_v47  ;;  %3298 = vmatprep.mubr.f32.mxu0 %v1886_v57  ;;  %v505_v58 = vpop.xlane.xlu0 %504  ;;  %v1314_v62 = vmul.f32 %v5007_v26, %v5007_v26  ;;  %v1761_v28 = vsub.f32 %v3851_v8, %v4981_v23 }
 0x1ae   : > { %v3628_v3 = vpop.eup %3627  ;;  %v1569_v18 = vadd.f32 1e-05, %v1441_v11  ;;  %v759_v45 = vpop.xlane.xlu1 %758  ;;  %v1950_v50 = vmul.f32 %v3626_v32, %v1822_v12  ;;  %v5021_v0 = vmul.f32 0.0078125, %v505_v58  ;;  %v1252_v58 = vmul.f32 %v5031_v56, %v5031_v56 }
 0x1af   : > { %v1122_v20 = vmul.f32 0.0078125, %v759_v45  ;;  %v1887_v29 = vmul.f32 %v3628_v3, %v1759_v21  ;;  %v5041_v21 = vmul.f32 0.0078125, %v6197_v42  ;;  %v254_v42 = vld [vmem:[%s4327_s23 + $0x180] sm:$0xff] }
 0x1b0   : > { %3637 = vrsqrt.f32 %v1569_v18  ;;  %932 = vadd.xlane.f32.xlu0 %v697_v6  ;;  %3394 = vmatprep.mubr.f32.mxu1 %v1950_v50  ;;  %v1315_v5 = vmul.f32 %v5021_v0, %v5021_v0  ;;  %v3852_v18 = vld [vmem:[%s4327_s23 + $0x298] sm:$0xff] }
 0x1b1   : > { %v3630_v34 = vpop.eup %3629  ;;  %v1378_v14 = vsub.f32 %v1122_v20, %v1250_v41  ;;  %550 = vadd.xlane.f32.xlu1 %v314_v17  ;;  %3299 = vmatmul.mubr.f32.gmra.mxu0 %v1887_v29  ;;  %v887_v46 = vpop.xlane.xlu0 %886  ;;  %v1825_v45 = vsub.f32 %v3852_v18, %v4991_v55  ;;  %v253_v41 = vld [vmem:[%s4327_s23 + $0x178] sm:$0xff] }
 0x1b2   : > { %v1186_v36 = vmul.f32 0.0078125, %v887_v46  ;;  %v761_v48 = vpop.xlane.xlu1 %760  ;;  %v1951_v44 = vmul.f32 %v3630_v34, %v1823_v19  ;;  %v317_v34 = vld [vmem:[%s4327_s23 + $0x378] sm:$0xff] }
 0x1b3   : > { %v1506_v10 = vadd.f32 1e-05, %v1378_v14  ;;  %v1123_v54 = vmul.f32 0.0078125, %v761_v48  ;;  %v1253_v14 = vmul.f32 %v5041_v21, %v5041_v21 }
 0x1b4   : > { %v1442_v53 = vsub.f32 %v1186_v36, %v1314_v62  ;;  %552 = vadd.xlane.f32.xlu0 %v315_v13  ;;  %3395 = vmatmul.mubr.f32.gmra.mxu1 %v1951_v44  ;;  %v3854_v36 = vld [vmem:[%s4327_s23 + $0xa0] sm:$0xff] }
 0x1b5   : > { %3639 = vrsqrt.f32 %v1506_v10  ;;  %v1379_v30 = vsub.f32 %v1123_v54, %v1251_v33  ;;  %806 = vadd.xlane.f32.xlu1 %v634_v31  ;;  %v889_v24 = vpop.xlane.xlu0 %888  ;;  %v3853_v31 = vld [vmem:[%s4327_s23 + $0x170] sm:$0xff]  ;;  %v1762_v48 = vsub.f32 %v3854_v36, %v5001_v25  ;;  %v700_v10 = vmul.f32 %v316_v59, %v316_v59  ;;  %v6200_v36 = vld [vmem:[#allocation19_spill] sm:$0xff] }
 0x1b6   : > { %v3632_v61 = vpop.eup %3631  ;;  %v1570_v1 = vadd.f32 1e-05, %v1442_v53  ;;  %v1187_v2 = vmul.f32 0.0078125, %v889_v24  ;;  %v507_v39 = vpop.xlane.xlu1 %506  ;;  %v636_v62 = vmul.f32 %v3853_v31, %v3853_v31 }
 0x1b7   : > { %v1507_v47 = vadd.f32 1e-05, %v1379_v30  ;;  %v1888_v43 = vmul.f32 %v3632_v61, %v1760_v49  ;;  %v5037_v11 = vmul.f32 0.0078125, %v507_v39  ;;  %v6198_v30 = vld [vmem:[#allocation17_spill] sm:$0xff]  ;;  %v3855_v61 = vld [vmem:[%s4327_s23 + $0x2a0] sm:$0xff]  ;;  %v3856_v39 = vld [vmem:[%s4327_s23 + $0xa8] sm:$0xff] }
 0x1b8   : > { %3641 = vrsqrt.f32 %v1570_v1  ;;  %v1443_v35 = vsub.f32 %v1187_v2, %v1315_v5  ;;  %934 = vadd.xlane.f32.xlu0 %v698_v63  ;;  %v5061_v24 = vmul.f32 0.0078125, %v6198_v30  ;;  %v1826_v25 = vsub.f32 %v3855_v61, %v5007_v26 }
 0x1b9   : > { %v3634_v16 = vpop.eup %3633  ;;  %3643 = vrsqrt.f32 %v1507_v47  ;;  %808 = vadd.xlane.f32.xlu1 %v635_v9  ;;  %3301 = vmatprep.mubr.f32.mxu0 %v1888_v43  ;;  %v509_v57 = vpop.xlane.xlu0 %508  ;;  %v1316_v20 = vmul.f32 %v5037_v11, %v5037_v11  ;;  %v637_v1 = vmul.f32 %v253_v41, %v253_v41  ;;  %v1763_v4 = vsub.f32 %v3856_v39, %v5011_v27 }
 0x1ba   : > { %v3636_v22 = vpop.eup %3635  ;;  %v1571_v12 = vadd.f32 1e-05, %v1443_v35  ;;  %v763_v6 = vpop.xlane.xlu1 %762  ;;  %v1952_v32 = vmul.f32 %v3634_v16, %v1824_v7  ;;  %v5050_v29 = vmul.f32 0.0078125, %v509_v57  ;;  %v701_v43 = vmul.f32 %v317_v34, %v317_v34  ;;  %v6199_v16 = vld [vmem:[#allocation16_spill] sm:$0xff] }
 0x1bb   : > { %v1124_v3 = vmul.f32 0.0078125, %v763_v6  ;;  %v1889_v23 = vmul.f32 %v3636_v22, %v1761_v28  ;;  %v5070_v8 = vmul.f32 0.0078125, %v6199_v16  ;;  %v1254_v28 = vmul.f32 %v5061_v24, %v5061_v24  ;;  %v3857_v22 = vld [vmem:[%s4327_s23 + $0x2a8] sm:$0xff] }
 0x1bc   : > { %3645 = vrsqrt.f32 %v1571_v12  ;;  %936 = vadd.xlane.f32.xlu0 %v699_v15  ;;  %3397 = vmatprep.mubr.f32.mxu1 %v1952_v32  ;;  %v1317_v53 = vmul.f32 %v5050_v29, %v5050_v29  ;;  %v1827_v12 = vsub.f32 %v3857_v22, %v5021_v0 }
 0x1bd   : > { %v3638_v17 = vpop.eup %3637  ;;  %v1380_v50 = vsub.f32 %v1124_v3, %v1252_v58  ;;  %554 = vadd.xlane.f32.xlu1 %v316_v59  ;;  %3302 = vmatmul.mubr.f32.gmra.mxu0 %v1889_v23  ;;  %v891_v37 = vpop.xlane.xlu0 %890 }
 0x1be   : > { %v1188_v40 = vmul.f32 0.0078125, %v891_v37  ;;  %v765_v19 = vpop.xlane.xlu1 %764  ;;  %v1953_v55 = vmul.f32 %v3638_v17, %v1825_v45  ;;  %v318_v45 = vld [vmem:[%s4327_s23 + $0x380] sm:$0xff]  ;;  %v1255_v17 = vmul.f32 %v5070_v8, %v5070_v8 }
 0x1bf   : > { %v1508_v46 = vadd.f32 1e-05, %v1380_v50  ;;  %v1125_v13 = vmul.f32 0.0078125, %v765_v19 }
 0x1c0   : > { %v1444_v52 = vsub.f32 %v1188_v40, %v1316_v20  ;;  %428 = vadd.xlane.f32.xlu0 %v253_v41  ;;  %3398 = vmatmul.mubr.f32.gmra.mxu1 %v1953_v55  ;;  %v3858_v20 = vld [vmem:[%s4327_s23 + $0xb0] sm:$0xff]  ;;  %v255_v55 = vld [vmem:[%s4327_s23 + $0x188] sm:$0xff] }
 0x1c1   : > { %3647 = vrsqrt.f32 %v1508_v46  ;;  %v1381_v44 = vsub.f32 %v1125_v13, %v1253_v14  ;;  %556 = vadd.xlane.f32.xlu1 %v317_v34  ;;  %v893_v33 = vpop.xlane.xlu0 %892  ;;  %v1764_v40 = vsub.f32 %v3858_v20, %v5031_v56  ;;  %v3859_v56 = vld [vmem:[%s4327_s23 + $0x2b0] sm:$0xff] }
 0x1c2   : > { %v3640_v54 = vpop.eup %3639  ;;  %v1572_v63 = vadd.f32 1e-05, %v1444_v52  ;;  %v1189_v51 = vmul.f32 0.0078125, %v893_v33  ;;  %v511_v49 = vpop.xlane.xlu1 %510  ;;  %v320_v20 = vld [vmem:[%s4327_s23 + $0x390] sm:$0xff] }
 0x1c3   : > { %v1509_v38 = vadd.f32 1e-05, %v1381_v44  ;;  %v1890_v9 = vmul.f32 %v3640_v54, %v1762_v48  ;;  %v5067_v35 = vmul.f32 0.0078125, %v511_v49  ;;  %v5091_v48 = vmul.f32 0.0078125, %v6200_v36  ;;  %v257_v36 = vld [vmem:[%s4327_s23 + $0x198] sm:$0xff] }
 0x1c4   : > { %3649 = vrsqrt.f32 %v1572_v63  ;;  %v1445_v5 = vsub.f32 %v1189_v51, %v1317_v53  ;;  %810 = vadd.xlane.f32.xlu0 %v636_v62  ;;  %v319_v62 = vld [vmem:[%s4327_s23 + $0x388] sm:$0xff]  ;;  %v638_v53 = vmul.f32 %v254_v42, %v254_v42  ;;  %v3860_v51 = vld [vmem:[%s4327_s23 + $0xb8] sm:$0xff] }
 0x1c5   : > { %v3642_v2 = vpop.eup %3641  ;;  %3651 = vrsqrt.f32 %v1509_v38  ;;  %938 = vadd.xlane.f32.xlu1 %v700_v10  ;;  %3304 = vmatprep.mubr.f32.mxu0 %v1890_v9  ;;  %v513_v47 = vpop.xlane.xlu0 %512  ;;  %v1318_v58 = vmul.f32 %v5067_v35, %v5067_v35  ;;  %v1828_v10 = vsub.f32 %v3859_v56, %v5037_v11  ;;  %v1765_v49 = vsub.f32 %v3860_v51, %v5041_v21  ;;  %v3861_v21 = vld [vmem:[%s4327_s23 + $0x2b8] sm:$0xff] }
 0x1c6   : > { %v3644_v60 = vpop.eup %3643  ;;  %v1573_v7 = vadd.f32 1e-05, %v1445_v5  ;;  %v767_v15 = vpop.xlane.xlu1 %766  ;;  %v1954_v26 = vmul.f32 %v3642_v2, %v1826_v25  ;;  %v5079_v3 = vmul.f32 0.0078125, %v513_v47  ;;  %v702_v38 = vmul.f32 %v318_v45, %v318_v45 }
 0x1c7   : > { %v1126_v57 = vmul.f32 0.0078125, %v767_v15  ;;  %v1891_v27 = vmul.f32 %v3644_v60, %v1763_v4  ;;  %v1256_v39 = vmul.f32 %v5091_v48, %v5091_v48  ;;  %v639_v60 = vmul.f32 %v255_v55, %v255_v55 }
 0x1c8   : > { %3653 = vrsqrt.f32 %v1573_v7  ;;  %812 = vadd.xlane.f32.xlu0 %v637_v1  ;;  %3400 = vmatprep.mubr.f32.mxu1 %v1954_v26  ;;  %v1319_v46 = vmul.f32 %v5079_v3, %v5079_v3  ;;  %v6201_v1 = vld [vmem:[#allocation18_spill] sm:$0xff]  ;;  %v703_v16 = vmul.f32 %v319_v62, %v319_v62 }
 0x1c9   : > { %v3646_v6 = vpop.eup %3645  ;;  %v1382_v59 = vsub.f32 %v1126_v57, %v1254_v28  ;;  %940 = vadd.xlane.f32.xlu1 %v701_v43  ;;  %3305 = vmatmul.mubr.f32.gmra.mxu0 %v1891_v27  ;;  %v895_v32 = vpop.xlane.xlu0 %894  ;;  %v5100_v2 = vmul.f32 0.0078125, %v6201_v1  ;;  %v1829_v43 = vsub.f32 %v3861_v21, %v5050_v29  ;;  %v704_v1 = vmul.f32 %v320_v20, %v320_v20 }
 0x1ca   : > { %v1190_v23 = vmul.f32 0.0078125, %v895_v32  ;;  %v769_v18 = vpop.xlane.xlu1 %768  ;;  %v1955_v0 = vmul.f32 %v3646_v6, %v1827_v12 }
 0x1cb   : > { %v1510_v50 = vadd.f32 1e-05, %v1382_v59  ;;  %v1127_v37 = vmul.f32 0.0078125, %v769_v18  ;;  %v1257_v12 = vmul.f32 %v5100_v2, %v5100_v2 }
 0x1cc   : > { %v1446_v41 = vsub.f32 %v1190_v23, %v1318_v58  ;;  %430 = vadd.xlane.f32.xlu0 %v254_v42  ;;  %3401 = vmatmul.mubr.f32.gmra.mxu1 %v1955_v0  ;;  %v3862_v42 = vld [vmem:[%s4327_s23 + $0xc0] sm:$0xff] }
 0x1cd   : > { %3655 = vrsqrt.f32 %v1510_v50  ;;  %v1383_v19 = vsub.f32 %v1127_v37, %v1255_v17  ;;  %558 = vadd.xlane.f32.xlu1 %v318_v45  ;;  %v897_v34 = vpop.xlane.xlu0 %896  ;;  %v1766_v58 = vsub.f32 %v3862_v42, %v5061_v24  ;;  %v256_v45 = vld [vmem:[%s4327_s23 + $0x190] sm:$0xff] }
 0x1ce   : > { %v3648_v14 = vpop.eup %3647  ;;  %v1574_v13 = vadd.f32 1e-05, %v1446_v41  ;;  %v1191_v52 = vmul.f32 0.0078125, %v897_v34  ;;  %v515_v31 = vpop.xlane.xlu1 %514 }
 0x1cf   : > { %v1511_v44 = vadd.f32 1e-05, %v1383_v19  ;;  %v1892_v33 = vmul.f32 %v3648_v14, %v1764_v40  ;;  %v5097_v25 = vmul.f32 0.0078125, %v515_v31  ;;  %v6202_v40 = vld [vmem:[#allocation21_spill] sm:$0xff] }
 0x1d0   : > { %3657 = vrsqrt.f32 %v1574_v13  ;;  %v1447_v54 = vsub.f32 %v1191_v52, %v1319_v46  ;;  %432 = vadd.xlane.f32.xlu0 %v255_v55  ;;  %v5119_v19 = vmul.f32 0.0078125, %v6202_v40  ;;  %v3863_v55 = vld [vmem:[%s4327_s23 + $0x2c0] sm:$0xff]  ;;  %v3864_v52 = vld [vmem:[%s4327_s23 + $0xc8] sm:$0xff] }
 0x1d1   : > { %v3650_v63 = vpop.eup %3649  ;;  %3659 = vrsqrt.f32 %v1511_v44  ;;  %560 = vadd.xlane.f32.xlu1 %v319_v62  ;;  %3307 = vmatprep.mubr.f32.mxu0 %v1892_v33  ;;  %v517_v30 = vpop.xlane.xlu0 %516  ;;  %v1320_v28 = vmul.f32 %v5097_v25, %v5097_v25  ;;  %v1830_v14 = vsub.f32 %v3863_v55, %v5067_v35  ;;  %v1767_v31 = vsub.f32 %v3864_v52, %v5070_v8  ;;  %v321_v35 = vld [vmem:[%s4327_s23 + $0x398] sm:$0xff]  ;;  %v258_v40 = vld [vmem:[%s4327_s23 + $0x1a0] sm:$0xff] }
 0x1d2   : > { %v3652_v9 = vpop.eup %3651  ;;  %v1575_v61 = vadd.f32 1e-05, %v1447_v54  ;;  %v771_v5 = vpop.xlane.xlu1 %770  ;;  %v1956_v11 = vmul.f32 %v3650_v63, %v1828_v10  ;;  %v5108_v57 = vmul.f32 0.0078125, %v517_v30  ;;  %v1258_v51 = vmul.f32 %v5119_v19, %v5119_v19  ;;  %v3865_v30 = vld [vmem:[%s4327_s23 + $0x2c8] sm:$0xff] }
 0x1d3   : > { %v1128_v4 = vmul.f32 0.0078125, %v771_v5  ;;  %v1893_v47 = vmul.f32 %v3652_v9, %v1765_v49  ;;  %v640_v9 = vmul.f32 %v256_v45, %v256_v45 }
 0x1d4   : > { %3661 = vrsqrt.f32 %v1575_v61  ;;  %814 = vadd.xlane.f32.xlu0 %v638_v53  ;;  %3403 = vmatprep.mubr.f32.mxu1 %v1956_v11  ;;  %v1321_v17 = vmul.f32 %v5108_v57, %v5108_v57  ;;  %v6203_v53 = vld [vmem:[#allocation20_spill] sm:$0xff] }
 0x1d5   : > { %v3654_v7 = vpop.eup %3653  ;;  %v1384_v15 = vsub.f32 %v1128_v4, %v1256_v39  ;;  %942 = vadd.xlane.f32.xlu1 %v702_v38  ;;  %3308 = vmatmul.mubr.f32.gmra.mxu0 %v1893_v47  ;;  %v899_v26 = vpop.xlane.xlu0 %898  ;;  %v5130_v63 = vmul.f32 0.0078125, %v6203_v53  ;;  %v1831_v38 = vsub.f32 %v3865_v30, %v5079_v3  ;;  %v323_v30 = vld [vmem:[%s4327_s23 + $0x3a8] sm:$0xff] }
 0x1d6   : > { %v1192_v27 = vmul.f32 0.0078125, %v899_v26  ;;  %v773_v22 = vpop.xlane.xlu1 %772  ;;  %v1957_v29 = vmul.f32 %v3654_v7, %v1829_v43  ;;  %v641_v26 = vmul.f32 %v257_v36, %v257_v36 }
 0x1d7   : > { %v1512_v6 = vadd.f32 1e-05, %v1384_v15  ;;  %v1129_v59 = vmul.f32 0.0078125, %v773_v22  ;;  %v1259_v3 = vmul.f32 %v5130_v63, %v5130_v63 }
 0x1d8   : > { %v1448_v32 = vsub.f32 %v1192_v27, %v1320_v28  ;;  %816 = vadd.xlane.f32.xlu0 %v639_v60  ;;  %3404 = vmatmul.mubr.f32.gmra.mxu1 %v1957_v29  ;;  %v705_v29 = vmul.f32 %v321_v35, %v321_v35 }
 0x1d9   : > { %3663 = vrsqrt.f32 %v1512_v6  ;;  %v1385_v23 = vsub.f32 %v1129_v59, %v1257_v12  ;;  %944 = vadd.xlane.f32.xlu1 %v703_v16  ;;  %v901_v18 = vpop.xlane.xlu0 %900  ;;  %v3866_v16 = vld [vmem:[%s4327_s23 + $0xd0] sm:$0xff] }
 0x1da   : > { %v3656_v0 = vpop.eup %3655  ;;  %v1576_v50 = vadd.f32 1e-05, %v1448_v32  ;;  %v1193_v37 = vmul.f32 0.0078125, %v901_v18  ;;  %v519_v41 = vpop.xlane.xlu1 %518  ;;  %v1768_v28 = vsub.f32 %v3866_v16, %v5091_v48  ;;  %v3867_v48 = vld [vmem:[%s4327_s23 + $0x2d0] sm:$0xff] }
 0x1db   : > { %v1513_v34 = vadd.f32 1e-05, %v1385_v23  ;;  %v1894_v24 = vmul.f32 %v3656_v0, %v1766_v58  ;;  %v5126_v56 = vmul.f32 0.0078125, %v519_v41  ;;  %v6204_v58 = vld [vmem:[#allocation23_spill] sm:$0xff]  ;;  %v1832_v0 = vsub.f32 %v3867_v48, %v5097_v25  ;;  %v6206_v16 = vld [vmem:[#allocation25_spill] sm:$0xff] }
 0x1dc   : > { %3665 = vrsqrt.f32 %v1576_v50  ;;  %v1449_v46 = vsub.f32 %v1193_v37, %v1321_v17  ;;  %434 = vadd.xlane.f32.xlu0 %v256_v45  ;;  %v5147_v23 = vmul.f32 0.0078125, %v6204_v58  ;;  %v3868_v37 = vld [vmem:[%s4327_s23 + $0xd8] sm:$0xff]  ;;  %v322_v25 = vld [vmem:[%s4327_s23 + $0x3a0] sm:$0xff] }
 0x1dd   : > { %v3658_v13 = vpop.eup %3657  ;;  %3667 = vrsqrt.f32 %v1513_v34  ;;  %562 = vadd.xlane.f32.xlu1 %v320_v20  ;;  %3310 = vmatprep.mubr.f32.mxu0 %v1894_v24  ;;  %v521_v62 = vpop.xlane.xlu0 %520  ;;  %v1322_v39 = vmul.f32 %v5126_v56, %v5126_v56  ;;  %v1769_v41 = vsub.f32 %v3868_v37, %v5100_v2 }
 0x1de   : > { %v3660_v44 = vpop.eup %3659  ;;  %v1577_v33 = vadd.f32 1e-05, %v1449_v46  ;;  %v775_v10 = vpop.xlane.xlu1 %774  ;;  %v1958_v54 = vmul.f32 %v3658_v13, %v1830_v14  ;;  %v5138_v4 = vmul.f32 0.0078125, %v521_v62  ;;  %v6205_v13 = vld [vmem:[#allocation22_spill] sm:$0xff]  ;;  %v1260_v2 = vmul.f32 %v5147_v23, %v5147_v23 }
 0x1df   : > { %v1130_v8 = vmul.f32 0.0078125, %v775_v10  ;;  %v1895_v49 = vmul.f32 %v3660_v44, %v1767_v31  ;;  %v5158_v52 = vmul.f32 0.0078125, %v6205_v13 }
 0x1e0   : > { %3669 = vrsqrt.f32 %v1577_v33  ;;  %436 = vadd.xlane.f32.xlu0 %v257_v36  ;;  %3406 = vmatprep.mubr.f32.mxu1 %v1958_v54  ;;  %v1323_v6 = vmul.f32 %v5138_v4, %v5138_v4  ;;  %v3869_v36 = vld [vmem:[%s4327_s23 + $0x2d8] sm:$0xff]  ;;  %v259_v54 = vld [vmem:[%s4327_s23 + $0x1a8] sm:$0xff] }
 0x1e1   : > { %v3662_v61 = vpop.eup %3661  ;;  %v1386_v5 = vsub.f32 %v1130_v8, %v1258_v51  ;;  %564 = vadd.xlane.f32.xlu1 %v321_v35  ;;  %3311 = vmatmul.mubr.f32.gmra.mxu0 %v1895_v49  ;;  %v903_v11 = vpop.xlane.xlu0 %902  ;;  %v1833_v44 = vsub.f32 %v3869_v36, %v5108_v57  ;;  %v1261_v57 = vmul.f32 %v5158_v52, %v5158_v52  ;;  %v324_v36 = vld [vmem:[%s4327_s23 + $0x3b0] sm:$0xff] }
 0x1e2   : > { %v1194_v47 = vmul.f32 0.0078125, %v903_v11  ;;  %v777_v21 = vpop.xlane.xlu1 %776  ;;  %v1959_v43 = vmul.f32 %v3662_v61, %v1831_v38  ;;  %v642_v11 = vmul.f32 %v258_v40, %v258_v40 }
 0x1e3   : > { %v1514_v60 = vadd.f32 1e-05, %v1386_v5  ;;  %v1131_v7 = vmul.f32 0.0078125, %v777_v21 }
 0x1e4   : > { %v1450_v15 = vsub.f32 %v1194_v47, %v1322_v39  ;;  %818 = vadd.xlane.f32.xlu0 %v640_v9  ;;  %3407 = vmatmul.mubr.f32.gmra.mxu1 %v1959_v43  ;;  %v706_v43 = vmul.f32 %v322_v25, %v322_v25 }
 0x1e5   : > { %3671 = vrsqrt.f32 %v1514_v60  ;;  %v1387_v27 = vsub.f32 %v1131_v7, %v1259_v3  ;;  %946 = vadd.xlane.f32.xlu1 %v704_v1  ;;  %v905_v22 = vpop.xlane.xlu0 %904  ;;  %v3870_v1 = vld [vmem:[%s4327_s23 + $0xe0] sm:$0xff] }
 0x1e6   : > { %v3664_v12 = vpop.eup %3663  ;;  %v1578_v59 = vadd.f32 1e-05, %v1450_v15  ;;  %v1195_v32 = vmul.f32 0.0078125, %v905_v22  ;;  %v523_v42 = vpop.xlane.xlu1 %522  ;;  %v1770_v39 = vsub.f32 %v3870_v1, %v5119_v19  ;;  %v6208_v1 = vld [vmem:[#allocation27_spill] sm:$0xff] }
 0x1e7   : > { %v1515_v18 = vadd.f32 1e-05, %v1387_v27  ;;  %v1896_v45 = vmul.f32 %v3664_v12, %v1768_v28  ;;  %v5154_v55 = vmul.f32 0.0078125, %v523_v42  ;;  %v5177_v28 = vmul.f32 0.0078125, %v6206_v16 }
 0x1e8   : > { %3673 = vrsqrt.f32 %v1578_v59  ;;  %v1451_v17 = vsub.f32 %v1195_v32, %v1323_v6  ;;  %820 = vadd.xlane.f32.xlu0 %v641_v26  ;;  %v643_v6 = vmul.f32 %v259_v54, %v259_v54  ;;  %v3872_v32 = vld [vmem:[%s4327_s23 + $0xe8] sm:$0xff] }
 0x1e9   : > { %v3666_v50 = vpop.eup %3665  ;;  %3675 = vrsqrt.f32 %v1515_v18  ;;  %948 = vadd.xlane.f32.xlu1 %v705_v29  ;;  %3313 = vmatprep.mubr.f32.mxu0 %v1896_v45  ;;  %v525_v20 = vpop.xlane.xlu0 %524  ;;  %v1324_v53 = vmul.f32 %v5154_v55, %v5154_v55  ;;  %v3871_v29 = vld [vmem:[%s4327_s23 + $0x2e0] sm:$0xff]  ;;  %v1771_v42 = vsub.f32 %v3872_v32, %v5130_v63  ;;  %v707_v18 = vmul.f32 %v323_v30, %v323_v30 }
 0x1ea   : > { %v3668_v34 = vpop.eup %3667  ;;  %v1579_v24 = vadd.f32 1e-05, %v1451_v17  ;;  %v779_v14 = vpop.xlane.xlu1 %778  ;;  %v1960_v46 = vmul.f32 %v3666_v50, %v1832_v0  ;;  %v5167_v51 = vmul.f32 0.0078125, %v525_v20  ;;  %v1834_v19 = vsub.f32 %v3871_v29, %v5126_v56  ;;  %v6207_v50 = vld [vmem:[#allocation24_spill] sm:$0xff] }
 0x1eb   : > { %v1132_v31 = vmul.f32 0.0078125, %v779_v14  ;;  %v1897_v62 = vmul.f32 %v3668_v34, %v1769_v41  ;;  %v5186_v37 = vmul.f32 0.0078125, %v6207_v50  ;;  %v1262_v41 = vmul.f32 %v5177_v28, %v5177_v28 }
 0x1ec   : > { %3677 = vrsqrt.f32 %v1579_v24  ;;  %438 = vadd.xlane.f32.xlu0 %v258_v40  ;;  %3409 = vmatprep.mubr.f32.mxu1 %v1960_v46  ;;  %v1325_v60 = vmul.f32 %v5167_v51, %v5167_v51  ;;  %v3873_v40 = vld [vmem:[%s4327_s23 + $0x2e8] sm:$0xff]  ;;  %v260_v46 = vld [vmem:[%s4327_s23 + $0x1b0] sm:$0xff] }
 0x1ed   : > { %v3670_v33 = vpop.eup %3669  ;;  %v1388_v10 = vsub.f32 %v1132_v31, %v1260_v2  ;;  %566 = vadd.xlane.f32.xlu1 %v322_v25  ;;  %3314 = vmatmul.mubr.f32.gmra.mxu0 %v1897_v62  ;;  %v907_v35 = vpop.xlane.xlu0 %906  ;;  %v1835_v34 = vsub.f32 %v3873_v40, %v5138_v4 }
 0x1ee   : > { %v1196_v8 = vmul.f32 0.0078125, %v907_v35  ;;  %v781_v49 = vpop.xlane.xlu1 %780  ;;  %v1961_v38 = vmul.f32 %v3670_v33, %v1833_v44  ;;  %v1263_v44 = vmul.f32 %v5186_v37, %v5186_v37 }
 0x1ef   : > { %v1516_v9 = vadd.f32 1e-05, %v1388_v10  ;;  %v1133_v61 = vmul.f32 0.0078125, %v781_v49 }
 0x1f0   : > { %v1452_v5 = vsub.f32 %v1196_v8, %v1324_v53  ;;  %440 = vadd.xlane.f32.xlu0 %v259_v54  ;;  %3410 = vmatmul.mubr.f32.gmra.mxu1 %v1961_v38  ;;  %v3874_v54 = vld [vmem:[%s4327_s23 + $0xf0] sm:$0xff] }
 0x1f1   : > { %3679 = vrsqrt.f32 %v1516_v9  ;;  %v1389_v47 = vsub.f32 %v1133_v61, %v1261_v57  ;;  %568 = vadd.xlane.f32.xlu1 %v323_v30  ;;  %v909_v21 = vpop.xlane.xlu0 %908  ;;  %v1772_v53 = vsub.f32 %v3874_v54, %v5147_v23  ;;  %v261_v30 = vld [vmem:[%s4327_s23 + $0x1b8] sm:$0xff]  ;;  %v3875_v23 = vld [vmem:[%s4327_s23 + $0x2f0] sm:$0xff]  ;;  %v326_v54 = vld [vmem:[%s4327_s23 + $0x3c0] sm:$0xff] }
 0x1f2   : > { %v3672_v3 = vpop.eup %3671  ;;  %v1580_v7 = vadd.f32 1e-05, %v1452_v5  ;;  %v1197_v15 = vmul.f32 0.0078125, %v909_v21  ;;  %v527_v26 = vpop.xlane.xlu1 %526 }
 0x1f3   : > { %v1517_v27 = vadd.f32 1e-05, %v1389_v47  ;;  %v1898_v22 = vmul.f32 %v3672_v3, %v1770_v39  ;;  %v5183_v0 = vmul.f32 0.0078125, %v527_v26  ;;  %v5207_v39 = vmul.f32 0.0078125, %v6208_v1 }
 0x1f4   : > { %3681 = vrsqrt.f32 %v1580_v7  ;;  %v1453_v12 = vsub.f32 %v1197_v15, %v1325_v60  ;;  %822 = vadd.xlane.f32.xlu0 %v642_v11  ;;  %v325_v11 = vld [vmem:[%s4327_s23 + $0x3b8] sm:$0xff]  ;;  %v644_v60 = vmul.f32 %v260_v46, %v260_v46 }
 0x1f5   : > { %v3674_v59 = vpop.eup %3673  ;;  %3683 = vrsqrt.f32 %v1517_v27  ;;  %950 = vadd.xlane.f32.xlu1 %v706_v43  ;;  %3316 = vmatprep.mubr.f32.mxu0 %v1898_v22  ;;  %v529_v58 = vpop.xlane.xlu0 %528  ;;  %v1326_v13 = vmul.f32 %v5183_v0, %v5183_v0  ;;  %v1836_v43 = vsub.f32 %v3875_v23, %v5154_v55  ;;  %v3876_v15 = vld [vmem:[%s4327_s23 + $0xf8] sm:$0xff]  ;;  %v708_v27 = vmul.f32 %v324_v36, %v324_v36 }
 0x1f6   : > { %v3676_v45 = vpop.eup %3675  ;;  %v1581_v48 = vadd.f32 1e-05, %v1453_v12  ;;  %v783_v17 = vpop.xlane.xlu1 %782  ;;  %v1962_v56 = vmul.f32 %v3674_v59, %v1834_v19  ;;  %v5195_v2 = vmul.f32 0.0078125, %v529_v58  ;;  %v1773_v26 = vsub.f32 %v3876_v15, %v5158_v52  ;;  %v3877_v52 = vld [vmem:[%s4327_s23 + $0x2f8] sm:$0xff] }
 0x1f7   : > { %v1134_v20 = vmul.f32 0.0078125, %v783_v17  ;;  %v1899_v63 = vmul.f32 %v3676_v45, %v1771_v42  ;;  %v1264_v32 = vmul.f32 %v5207_v39, %v5207_v39  ;;  %v645_v45 = vmul.f32 %v261_v30, %v261_v30 }
 0x1f8   : > { %3685 = vrsqrt.f32 %v1581_v48  ;;  %824 = vadd.xlane.f32.xlu0 %v643_v6  ;;  %3412 = vmatprep.mubr.f32.mxu1 %v1962_v56  ;;  %v1327_v57 = vmul.f32 %v5195_v2, %v5195_v2  ;;  %v6209_v6 = vld [vmem:[#allocation26_spill] sm:$0xff]  ;;  %v709_v50 = vmul.f32 %v325_v11, %v325_v11 }
 0x1f9   : > { %v3678_v24 = vpop.eup %3677  ;;  %v1390_v14 = vsub.f32 %v1134_v20, %v1262_v41  ;;  %952 = vadd.xlane.f32.xlu1 %v707_v18  ;;  %3317 = vmatmul.mubr.f32.gmra.mxu0 %v1899_v63  ;;  %v911_v25 = vpop.xlane.xlu0 %910  ;;  %v5216_v59 = vmul.f32 0.0078125, %v6209_v6  ;;  %v1837_v18 = vsub.f32 %v3877_v52, %v5167_v51 }
 0x1fa   : > { %v1198_v31 = vmul.f32 0.0078125, %v911_v25  ;;  %v785_v62 = vpop.xlane.xlu1 %784  ;;  %v1963_v4 = vmul.f32 %v3678_v24, %v1835_v34 }
 0x1fb   : > { %v1518_v33 = vadd.f32 1e-05, %v1390_v14  ;;  %v1135_v10 = vmul.f32 0.0078125, %v785_v62  ;;  %v1265_v34 = vmul.f32 %v5216_v59, %v5216_v59 }
 0x1fc   : > { %v1454_v35 = vsub.f32 %v1198_v31, %v1326_v13  ;;  %442 = vadd.xlane.f32.xlu0 %v260_v46  ;;  %3413 = vmatmul.mubr.f32.gmra.mxu1 %v1963_v4  ;;  %v3878_v46 = vld [vmem:[%s4327_s23 + $0x100] sm:$0xff] }
 0x1fd   : > { %3687 = vrsqrt.f32 %v1518_v33  ;;  %v1391_v8 = vsub.f32 %v1135_v10, %v1263_v44  ;;  %570 = vadd.xlane.f32.xlu1 %v324_v36  ;;  %v913_v49 = vpop.xlane.xlu0 %912  ;;  %v1774_v13 = vsub.f32 %v3878_v46, %v5177_v28  ;;  %v262_v36 = vld [vmem:[%s4327_s23 + $0x1c0] sm:$0xff] }
 0x1fe   : > { %v3680_v38 = vpop.eup %3679  ;;  %v1582_v9 = vadd.f32 1e-05, %v1454_v35  ;;  %v1199_v61 = vmul.f32 0.0078125, %v913_v49  ;;  %v531_v5 = vpop.xlane.xlu1 %530 }
 0x1ff   : > { %v1519_v47 = vadd.f32 1e-05, %v1391_v8  ;;  %v1900_v21 = vmul.f32 %v3680_v38, %v1772_v53  ;;  %v5213_v19 = vmul.f32 0.0078125, %v531_v5  ;;  %v6210_v53 = vld [vmem:[#allocation29_spill] sm:$0xff] }
 0x200   : > { %3689 = vrsqrt.f32 %v1582_v9  ;;  %v1455_v3 = vsub.f32 %v1199_v61, %v1327_v57  ;;  %444 = vadd.xlane.f32.xlu0 %v261_v30  ;;  %v5235_v8 = vmul.f32 0.0078125, %v6210_v53  ;;  %v3879_v30 = vld [vmem:[%s4327_s23 + $0x300] sm:$0xff]  ;;  %v3880_v61 = vld [vmem:[%s4327_s23 + $0x108] sm:$0xff] }
 0x201   : > { %v3682_v7 = vpop.eup %3681  ;;  %3691 = vrsqrt.f32 %v1519_v47  ;;  %572 = vadd.xlane.f32.xlu1 %v325_v11  ;;  %3319 = vmatprep.mubr.f32.mxu0 %v1900_v21  ;;  %v533_v16 = vpop.xlane.xlu0 %532  ;;  %v1328_v41 = vmul.f32 %v5213_v19, %v5213_v19  ;;  %v1838_v38 = vsub.f32 %v3879_v30, %v5183_v0  ;;  %v1775_v5 = vsub.f32 %v3880_v61, %v5186_v37  ;;  %v263_v47 = vld [vmem:[%s4327_s23 + $0x1c8] sm:$0xff]  ;;  %v3886_v61 = vld [vmem:[%s4327_s23 + $0x310] sm:$0xff] }
 0x202   : > { %v3684_v22 = vpop.eup %3683  ;;  %v1583_v29 = vadd.f32 1e-05, %v1455_v3  ;;  %v787_v12 = vpop.xlane.xlu1 %786  ;;  %v1964_v55 = vmul.f32 %v3682_v7, %v1836_v43  ;;  %v5224_v20 = vmul.f32 0.0078125, %v533_v16  ;;  %v327_v43 = vld [vmem:[%s4327_s23 + $0x3c8] sm:$0xff]  ;;  %v1266_v37 = vmul.f32 %v5235_v8, %v5235_v8 }
 0x203   : > { %v1136_v42 = vmul.f32 0.0078125, %v787_v12  ;;  %v1901_v58 = vmul.f32 %v3684_v22, %v1773_v26  ;;  %v5253_v26 = vld [vmem:[%s6148_s2] ss:$0 sm:$0xff] }
 0x204   : > { %3693 = vrsqrt.f32 %v1583_v29  ;;  %826 = vadd.xlane.f32.xlu0 %v644_v60  ;;  %3415 = vmatprep.mubr.f32.mxu1 %v1964_v55  ;;  %v1329_v44 = vmul.f32 %v5224_v20, %v5224_v20  ;;  %v6211_v60 = vld [vmem:[#allocation28_spill] sm:$0xff]  ;;  %v646_v55 = vmul.f32 %v262_v36, %v262_v36 }
 0x205   : > { %v3686_v48 = vpop.eup %3685  ;;  %v1392_v17 = vsub.f32 %v1136_v42, %v1264_v32  ;;  %954 = vadd.xlane.f32.xlu1 %v708_v27  ;;  %3320 = vmatmul.mubr.f32.gmra.mxu0 %v1901_v58  ;;  %v915_v56 = vpop.xlane.xlu0 %914  ;;  %v5246_v7 = vmul.f32 0.0078125, %v6211_v60  ;;  %v3881_v27 = vld [vmem:[%s4327_s23 + $0x110] sm:$0xff]  ;;  %v3882_v29 = vld [vmem:[%s4327_s23 + $0x308] sm:$0xff] }
 0x206   : > { %v1200_v63 = vmul.f32 0.0078125, %v915_v56  ;;  %v789_v40 = vpop.xlane.xlu1 %788  ;;  %v1965_v51 = vmul.f32 %v3686_v48, %v1837_v18  ;;  %v1776_v22 = vsub.f32 %v3881_v27, %v5207_v39  ;;  %v1839_v12 = vsub.f32 %v3882_v29, %v5195_v2 }
 0x207   : > { %v1520_v24 = vadd.f32 1e-05, %v1392_v17  ;;  %v1137_v14 = vmul.f32 0.0078125, %v789_v40  ;;  %v710_v18 = vmul.f32 %v326_v54, %v326_v54  ;;  %v1267_v56 = vmul.f32 %v5246_v7, %v5246_v7 }
 0x208   : > { %v1456_v25 = vsub.f32 %v1200_v63, %v1328_v41  ;;  %828 = vadd.xlane.f32.xlu0 %v645_v45  ;;  %3416 = vmatmul.mubr.f32.gmra.mxu1 %v1965_v51  ;;  %v647_v40 = vmul.f32 %v263_v47, %v263_v47  ;;  %v3883_v51 = vld [vmem:[%s4327_s23 + $0x8] sm:$0xff] }
 0x209   : > { %3695 = vrsqrt.f32 %v1520_v24  ;;  %v1393_v31 = vsub.f32 %v1137_v14, %v1265_v34  ;;  %956 = vadd.xlane.f32.xlu1 %v709_v50  ;;  %v917_v62 = vpop.xlane.xlu0 %916 }
 0x20a   : > { %v3688_v4 = vpop.eup %3687  ;;  %v1584_v33 = vadd.f32 1e-05, %v1456_v25  ;;  %v1201_v10 = vmul.f32 0.0078125, %v917_v62  ;;  %v535_v35 = vpop.xlane.xlu1 %534  ;;  %v711_v62 = vmul.f32 %v327_v43, %v327_v43 }
 0x20b   : > { %v1521_v49 = vadd.f32 1e-05, %v1393_v31  ;;  %v1902_v28 = vmul.f32 %v3688_v4, %v1774_v13  ;;  %v5241_v11 = vmul.f32 0.0078125, %v535_v35 }
 0x20c   : > { %3697 = vrsqrt.f32 %v1584_v33  ;;  %v1457_v57 = vsub.f32 %v1201_v10, %v1329_v44  ;;  %446 = vadd.xlane.f32.xlu0 %v262_v36  ;;  %v3884_v33 = vld [vmem:[%s4327_s23] sm:$0xff] }
 0x20d   : > { %v3690_v9 = vpop.eup %3689  ;;  %3699 = vrsqrt.f32 %v1521_v49  ;;  %574 = vadd.xlane.f32.xlu1 %v326_v54  ;;  %3322 = vmatprep.mubr.f32.mxu0 %v1902_v28  ;;  %v537_v1 = vpop.xlane.xlu0 %536  ;;  %v1330_v32 = vmul.f32 %v5241_v11, %v5241_v11  ;;  %v6212_v49 = vld [vmem:[#allocation31_spill] sm:$0xff] }
 0x20e   : > { %v3692_v21 = vpop.eup %3691  ;;  %v1585_v23 = vadd.f32 1e-05, %v1457_v57  ;;  %v791_v0 = vpop.xlane.xlu1 %790  ;;  %v1966_v3 = vmul.f32 %v3690_v9, %v1838_v38  ;;  %v5261_v45 = vmul.f32 0.0078125, %v537_v1  ;;  %v5278_v28 = vmul.f32 0.0078125, %v6212_v49  ;;  %v3885_v38 = vld [vmem:[%s4327_s23 + $0x208] sm:$0xff] }
 0x20f   : > { %v1138_v15 = vmul.f32 0.0078125, %v791_v0  ;;  %v1903_v16 = vmul.f32 %v3692_v21, %v1775_v5  ;;  %v1840_v5 = vsub.f32 %v3886_v61, %v5213_v19  ;;  %v3893_v61 = vld [vmem:[%s4327_s23 + $0x10] sm:$0xff] }
 0x210   : > { %3701 = vrsqrt.f32 %v1585_v23  ;;  %448 = vadd.xlane.f32.xlu0 %v263_v47  ;;  %3418 = vmatprep.mubr.f32.mxu1 %v1966_v3  ;;  %v1331_v4 = vmul.f32 %v5261_v45, %v5261_v45  ;;  %v3887_v23 = vld [vmem:[%s4327_s23 + $0x118] sm:$0xff]  ;;  %v3888_v3 = vld [vmem:[%s4327_s23 + $0x200] sm:$0xff] }
 0x211   : > { %v3694_v6 = vpop.eup %3693  ;;  %v1394_v42 = vsub.f32 %v1138_v15, %v1266_v37  ;;  %v3276_v58 = vpop.f32.mrf.mxu0  ;;  %576 = vadd.xlane.f32.xlu1 %v327_v43  ;;  %3323 = vmatmul.mubr.f32.gmra.mxu0 %v1903_v16  ;;  %v1777_v0 = vsub.f32 %v3887_v23, %v5216_v59  ;;  %v264_v37 = vld [vmem:[%s4327_s23 + $0x1d0] sm:$0xff]  ;;  %v6213_v59 = vld [vmem:[#allocation30_spill] sm:$0xff] }
 0x212   : > { %v919_v52 = vpop.xlane.xlu0 %918  ;;  %v2093_v39 = vadd.f32 %v3276_v58, %v5253_v26  ;;  %v793_v48 = vpop.xlane.xlu1 %792  ;;  %v1967_v17 = vmul.f32 %v3694_v6, %v1839_v12  ;;  %v5294_v12 = vmul.f32 0.0078125, %v6213_v59  ;;  %v3896_v59 = vld [vmem:[%s4327_s23 + $0x210] sm:$0xff] }
 0x213   : > { %v1202_v2 = vmul.f32 0.0078125, %v919_v52  ;;  %v1522_v50 = vadd.f32 1e-05, %v1394_v42  ;;  %v1139_v41 = vmul.f32 0.0078125, %v793_v48  ;;  %v2087_v63 = vpop.f32.mrf.mxu0  ;;  %v5300_v42 = vld [vmem:[%s4327_s23 + $0x128] sm:$0xff]  ;;  %v3890_v52 = vld [vmem:[%s4327_s23 + $0x318] sm:$0xff] }
 0x214   : > { %v2727_v34 = vadd.f32 %v3883_v51, %v2093_v39  ;;  %v2088_v14 = vadd.f32 %v5253_v26, %v2087_v63  ;;  %v3372_v25 = vpop.f32.mrf.mxu1  ;;  %830 = vadd.xlane.f32.xlu0 %v646_v55  ;;  %3419 = vmatmul.mubr.f32.gmra.mxu1 %v1967_v17  ;;  %v1268_v55 = vmul.f32 %v5278_v28, %v5278_v28  ;;  %v265_v63 = vld [vmem:[%s4327_s23 + $0x1d8] sm:$0xff] }
 0x215   : > { %v1458_v24 = vsub.f32 %v1202_v2, %v1330_v32  ;;  %3703 = vrsqrt.f32 %v1522_v50  ;;  %v1395_v46 = vsub.f32 %v1139_v41, %v1267_v56  ;;  %v2413_v13 = vadd.f32 %v3372_v25, %v5253_v26  ;;  %958 = vadd.xlane.f32.xlu1 %v710_v18  ;;  %v3891_v2 = vld [vmem:[%s4327_s23 + $0x120] sm:$0xff] }
 0x216   : > { %v921_v31 = vpop.xlane.xlu0 %920  ;;  %v3696_v36 = vpop.eup %3695  ;;  %2855 = vst [vmem:[%s5273_s28 + $0x8] sm:$0xff] %v2727_v34  ;;  %v2726_v10 = vadd.f32 %v3884_v33, %v2088_v14  ;;  %v1779_v58 = vsub.f32 %v5300_v42, %v5246_v7  ;;  %v1841_v18 = vsub.f32 %v3890_v52, %v5224_v20  ;;  %v1778_v48 = vsub.f32 %v3891_v2, %v5235_v8  ;;  %v6215_v2 = vld [vmem:[#allocation32_spill] sm:$0xff] }
 0x217   : > { %v1586_v44 = vadd.f32 1e-05, %v1458_v24  ;;  %v1203_v35 = vmul.f32 0.0078125, %v921_v31  ;;  %v539_v54 = vpop.xlane.xlu1 %538  ;;  %v2407_v53 = vpop.f32.mrf.mxu1  ;;  %v1523_v30 = vadd.f32 1e-05, %v1395_v46  ;;  %v2791_v57 = vadd.f32 %v3885_v38, %v2413_v13  ;;  %v329_v24 = vld [vmem:[%s4327_s23 + $0x3d8] sm:$0xff] }
 0x218   : > { %v2408_v9 = vadd.f32 %v5253_v26, %v2407_v53  ;;  %2854 = vst [vmem:[%s5273_s28] sm:$0xff] %v2726_v10  ;;  %832 = vadd.xlane.f32.xlu0 %v647_v40  ;;  %v1904_v47 = vmul.f32 %v3696_v36, %v1776_v22  ;;  %v5288_v43 = vmul.f32 0.0078125, %v539_v54  ;;  %v328_v22 = vld [vmem:[%s4327_s23 + $0x3d0] sm:$0xff]  ;;  %v1269_v8 = vmul.f32 %v5294_v12, %v5294_v12 }
 0x219   : > { %3705 = vrsqrt.f32 %v1586_v44  ;;  %v1459_v1 = vsub.f32 %v1203_v35, %v1331_v4  ;;  %v3698_v21 = vpop.eup %3697  ;;  %2919 = vst [vmem:[%s5273_s28 + $0x208] sm:$0xff] %v2791_v57  ;;  %960 = vadd.xlane.f32.xlu1 %v711_v62  ;;  %v648_v31 = vmul.f32 %v264_v37, %v264_v37  ;;  %v6214_v62 = vld [vmem:[#allocation33_spill] sm:$0xff]  ;;  %v3892_v4 = vld [vmem:[%s4327_s23 + $0x18] sm:$0xff] }
 0x21a   : > { %3707 = vrsqrt.f32 %v1523_v30  ;;  %v2790_v60 = vadd.f32 %v3888_v3, %v2408_v9  ;;  %v541_v19 = vpop.xlane.xlu0 %540  ;;  %v3700_v15 = vpop.eup %3699  ;;  %3325 = vmatprep.mubr.f32.mxu0 %v1904_v47  ;;  %v1968_v29 = vmul.f32 %v3698_v21, %v1840_v5  ;;  %v1332_v17 = vmul.f32 %v5288_v43, %v5288_v43 }
 0x21b   : > { %v1587_v16 = vadd.f32 1e-05, %v1459_v1  ;;  %v795_v27 = vpop.xlane.xlu1 %794  ;;  %v1905_v32 = vmul.f32 %v3700_v15, %v1777_v0  ;;  %v5311_v40 = vmul.f32 0.0078125, %v541_v19  ;;  %v5318_v36 = vmul.f32 0.0078125, %v6214_v62  ;;  %v3894_v0 = vld [vmem:[%s4327_s23 + $0x218] sm:$0xff]  ;;  %v3899_v62 = vld [vmem:[%s4327_s23 + $0x130] sm:$0xff] }
 0x21c   : > { %2918 = vst [vmem:[%s5273_s28 + $0x200] sm:$0xff] %v2790_v60  ;;  %v1140_v6 = vmul.f32 0.0078125, %v795_v27  ;;  %450 = vadd.xlane.f32.xlu0 %v264_v37  ;;  %3421 = vmatprep.mubr.f32.mxu1 %v1968_v29  ;;  %v712_v30 = vmul.f32 %v328_v22, %v328_v22  ;;  %v649_v19 = vmul.f32 %v265_v63, %v265_v63  ;;  %v3895_v37 = vld [vmem:[%s4327_s23 + $0x320] sm:$0xff] }
 0x21d   : > { %3709 = vrsqrt.f32 %v1587_v16  ;;  %v3702_v39 = vpop.eup %3701  ;;  %v3279_v50 = vpop.f32.mrf.mxu0  ;;  %578 = vadd.xlane.f32.xlu1 %v328_v22  ;;  %3326 = vmatmul.mubr.f32.gmra.mxu0 %v1905_v32  ;;  %v1333_v57 = vmul.f32 %v5311_v40, %v5311_v40  ;;  %v1842_v15 = vsub.f32 %v3895_v37, %v5241_v11  ;;  %v713_v32 = vmul.f32 %v329_v24, %v329_v24 }
 0x21e   : > { %v1396_v56 = vsub.f32 %v1140_v6, %v1268_v55  ;;  %v923_v41 = vpop.xlane.xlu0 %922  ;;  %v2103_v20 = vadd.f32 %v3279_v50, %v5253_v26  ;;  %v1969_v14 = vmul.f32 %v3702_v39, %v1841_v18 }
 0x21f   : > { %v1204_v51 = vmul.f32 0.0078125, %v923_v41  ;;  %v797_v34 = vpop.xlane.xlu1 %796  ;;  %v2097_v13 = vpop.f32.mrf.mxu0  ;;  %v3897_v41 = vld [vmem:[%s4327_s23 + $0x328] sm:$0xff] }
 0x220   : > { %v1524_v25 = vadd.f32 1e-05, %v1396_v56  ;;  %v1141_v46 = vmul.f32 0.0078125, %v797_v34  ;;  %v2729_v44 = vadd.f32 %v3892_v4, %v2103_v20  ;;  %v2098_v10 = vadd.f32 %v5253_v26, %v2097_v13  ;;  %452 = vadd.xlane.f32.xlu0 %v265_v63  ;;  %v3375_v35 = vpop.f32.mrf.mxu1  ;;  %3422 = vmatmul.mubr.f32.gmra.mxu1 %v1969_v14  ;;  %v330_v13 = vld [vmem:[%s4327_s23 + $0x3e0] sm:$0xff] }
 0x221   : > { %v1460_v33 = vsub.f32 %v1204_v51, %v1332_v17  ;;  %v2423_v53 = vadd.f32 %v3375_v35, %v5253_v26  ;;  %580 = vadd.xlane.f32.xlu1 %v329_v24  ;;  %v1270_v17 = vmul.f32 %v5318_v36, %v5318_v36  ;;  %v1843_v63 = vsub.f32 %v3897_v41, %v5261_v45  ;;  %v5348_v51 = vld [vmem:[%s4327_s23 + $0x138] sm:$0xff] }
 0x222   : > { %3711 = vrsqrt.f32 %v1524_v25  ;;  %v1397_v54 = vsub.f32 %v1141_v46, %v1269_v8  ;;  %v925_v49 = vpop.xlane.xlu0 %924  ;;  %v3704_v38 = vpop.eup %3703  ;;  %2857 = vst [vmem:[%s5273_s28 + $0x18] sm:$0xff] %v2729_v44  ;;  %v2728_v5 = vadd.f32 %v3893_v61, %v2098_v10  ;;  %v1781_v34 = vsub.f32 %v5348_v51, %v5294_v12 }
 0x223   : > { %v1588_v9 = vadd.f32 1e-05, %v1460_v33  ;;  %v1205_v1 = vmul.f32 0.0078125, %v925_v49  ;;  %v543_v47 = vpop.xlane.xlu1 %542  ;;  %v2417_v21 = vpop.f32.mrf.mxu1  ;;  %v2793_v3 = vadd.f32 %v3894_v0, %v2423_v53  ;;  %v1906_v27 = vmul.f32 %v3704_v38, %v1778_v48  ;;  %v3901_v0 = vld [vmem:[%s4327_s23 + $0x20] sm:$0xff] }
 0x224   : > { %v1525_v23 = vadd.f32 1e-05, %v1397_v54  ;;  %v2418_v60 = vadd.f32 %v5253_v26, %v2417_v21  ;;  %2856 = vst [vmem:[%s5273_s28 + $0x10] sm:$0xff] %v2728_v5  ;;  %834 = vadd.xlane.f32.xlu0 %v648_v31  ;;  %v5333_v29 = vmul.f32 0.0078125, %v543_v47  ;;  %v5337_v48 = vmul.f32 0.0078125, %v6215_v2  ;;  %v3900_v54 = vld [vmem:[%s4327_s23 + $0x28] sm:$0xff] }
 0x225   : > { %3713 = vrsqrt.f32 %v1588_v9  ;;  %v1461_v16 = vsub.f32 %v1205_v1, %v1333_v57  ;;  %2921 = vst [vmem:[%s5273_s28 + $0x218] sm:$0xff] %v2793_v3  ;;  %962 = vadd.xlane.f32.xlu1 %v712_v30  ;;  %3328 = vmatprep.mubr.f32.mxu0 %v1906_v27  ;;  %v1780_v4 = vsub.f32 %v3899_v62, %v5278_v28  ;;  %v6216_v57 = vld [vmem:[#allocation35_spill] sm:$0xff]  ;;  %v267_v1 = vld [vmem:[%s4327_s23 + $0x1e8] sm:$0xff] }
 0x226   : > { %v3706_v22 = vpop.eup %3705  ;;  %3715 = vrsqrt.f32 %v1525_v23  ;;  %v2792_v55 = vadd.f32 %v3896_v59, %v2418_v60  ;;  %v545_v6 = vpop.xlane.xlu0 %544  ;;  %v1334_v24 = vmul.f32 %v5333_v29, %v5333_v29  ;;  %v1271_v44 = vmul.f32 %v5337_v48, %v5337_v48  ;;  %v3902_v27 = vld [vmem:[%s4327_s23 + $0x228] sm:$0xff]  ;;  %v3904_v2 = vld [vmem:[%s4327_s23 + $0x220] sm:$0xff] }
 0x227   : > { %v3708_v52 = vpop.eup %3707  ;;  %v1589_v11 = vadd.f32 1e-05, %v1461_v16  ;;  %v799_v18 = vpop.xlane.xlu1 %798  ;;  %v1970_v39 = vmul.f32 %v3706_v22, %v1842_v15  ;;  %v5355_v14 = vmul.f32 0.0078125, %v545_v6  ;;  %v5366_v9 = vmul.f32 0.0078125, %v6216_v57  ;;  %v331_v15 = vld [vmem:[%s4327_s23 + $0x3e8] sm:$0xff]  ;;  %v3903_v6 = vld [vmem:[%s4327_s23 + $0x330] sm:$0xff] }
 0x228   : > { %2920 = vst [vmem:[%s5273_s28 + $0x210] sm:$0xff] %v2792_v55  ;;  %v1142_v56 = vmul.f32 0.0078125, %v799_v18  ;;  %v1907_v50 = vmul.f32 %v3708_v52, %v1779_v58  ;;  %836 = vadd.xlane.f32.xlu0 %v649_v19  ;;  %v266_v58 = vld [vmem:[%s4327_s23 + $0x1e0] sm:$0xff] }
 0x229   : > { %3717 = vrsqrt.f32 %v1589_v11  ;;  %3424 = vmatprep.mubr.f32.mxu1 %v1970_v39  ;;  %v3282_v42 = vpop.f32.mrf.mxu0  ;;  %964 = vadd.xlane.f32.xlu1 %v713_v32  ;;  %v1335_v21 = vmul.f32 %v5355_v14, %v5355_v14  ;;  %v650_v55 = vmul.f32 %v266_v58, %v266_v58  ;;  %v1844_v32 = vsub.f32 %v3903_v6, %v5288_v43 }
 0x22a   : > { %v3710_v20 = vpop.eup %3709  ;;  %v1398_v7 = vsub.f32 %v1142_v56, %v1270_v17  ;;  %3329 = vmatmul.mubr.f32.gmra.mxu0 %v1907_v50  ;;  %v927_v45 = vpop.xlane.xlu0 %926  ;;  %v2113_v8 = vadd.f32 %v3282_v42, %v5253_v26  ;;  %v714_v50 = vmul.f32 %v330_v13, %v330_v13  ;;  %v1272_v42 = vmul.f32 %v5366_v9, %v5366_v9 }
 0x22b   : > { %v1206_v25 = vmul.f32 0.0078125, %v927_v45  ;;  %v801_v46 = vpop.xlane.xlu1 %800  ;;  %v1971_v31 = vmul.f32 %v3710_v20, %v1843_v63  ;;  %v2107_v35 = vpop.f32.mrf.mxu0 }
 0x22c   : > { %v1526_v33 = vadd.f32 1e-05, %v1398_v7  ;;  %v1143_v10 = vmul.f32 0.0078125, %v801_v46  ;;  %v2731_v53 = vadd.f32 %v3900_v54, %v2113_v8  ;;  %v2108_v30 = vadd.f32 %v5253_v26, %v2107_v35  ;;  %454 = vadd.xlane.f32.xlu0 %v266_v58  ;;  %v3378_v38 = vpop.f32.mrf.mxu1  ;;  %v3905_v8 = vld [vmem:[%s4327_s23 + $0x338] sm:$0xff] }
 0x22d   : > { %v1462_v49 = vsub.f32 %v1206_v25, %v1334_v24  ;;  %3425 = vmatmul.mubr.f32.gmra.mxu1 %v1971_v31  ;;  %v2433_v61 = vadd.f32 %v3378_v38, %v5253_v26  ;;  %582 = vadd.xlane.f32.xlu1 %v330_v13  ;;  %v6217_v24 = vld [vmem:[#allocation34_spill] sm:$0xff]  ;;  %v1845_v25 = vsub.f32 %v3905_v8, %v5311_v40 }
 0x22e   : > { %3719 = vrsqrt.f32 %v1526_v33  ;;  %v1399_v28 = vsub.f32 %v1143_v10, %v1271_v44  ;;  %v929_v5 = vpop.xlane.xlu0 %928  ;;  %2859 = vst [vmem:[%s5273_s28 + $0x28] sm:$0xff] %v2731_v53  ;;  %v2730_v3 = vadd.f32 %v3901_v0, %v2108_v30  ;;  %v2427_v37 = vpop.f32.mrf.mxu1  ;;  %v5385_v7 = vmul.f32 0.0078125, %v6217_v24  ;;  %v3906_v30 = vld [vmem:[%s4327_s23 + $0x38] sm:$0xff]  ;;  %v268_v0 = vld [vmem:[%s4327_s23 + $0x1f0] sm:$0xff] }
 0x22f   : > { %v3712_v47 = vpop.eup %3711  ;;  %v1590_v23 = vadd.f32 1e-05, %v1462_v49  ;;  %v1207_v60 = vmul.f32 0.0078125, %v929_v5  ;;  %v547_v19 = vpop.xlane.xlu1 %546  ;;  %v2795_v22 = vadd.f32 %v3902_v27, %v2433_v61  ;;  %v2428_v59 = vadd.f32 %v5253_v26, %v2427_v37  ;;  %v3907_v5 = vld [vmem:[%s4327_s23 + $0x140] sm:$0xff]  ;;  %v3908_v37 = vld [vmem:[%s4327_s23 + $0x30] sm:$0xff] }
 0x230   : > { %v1527_v16 = vadd.f32 1e-05, %v1399_v28  ;;  %2858 = vst [vmem:[%s5273_s28 + $0x20] sm:$0xff] %v2730_v3  ;;  %456 = vadd.xlane.f32.xlu0 %v267_v1  ;;  %v1908_v11 = vmul.f32 %v3712_v47, %v1780_v4  ;;  %v5381_v39 = vmul.f32 0.0078125, %v547_v19  ;;  %v651_v46 = vmul.f32 %v267_v1, %v267_v1 }
 0x231   : > { %3721 = vrsqrt.f32 %v1590_v23  ;;  %v1463_v52 = vsub.f32 %v1207_v60, %v1335_v21  ;;  %2923 = vst [vmem:[%s5273_s28 + $0x228] sm:$0xff] %v2795_v22  ;;  %v2794_v17 = vadd.f32 %v3904_v2, %v2428_v59  ;;  %584 = vadd.xlane.f32.xlu1 %v331_v15  ;;  %v715_v33 = vmul.f32 %v331_v15, %v331_v15  ;;  %v332_v22 = vld [vmem:[%s4327_s23 + $0x3f0] sm:$0xff] }
 0x232   : > { %v3714_v18 = vpop.eup %3713  ;;  %3723 = vrsqrt.f32 %v1527_v16  ;;  %v549_v56 = vpop.xlane.xlu0 %548  ;;  %3331 = vmatprep.mubr.f32.mxu0 %v1908_v11  ;;  %v1336_v31 = vmul.f32 %v5381_v39, %v5381_v39  ;;  %v1273_v35 = vmul.f32 %v5385_v7, %v5385_v7  ;;  %v1782_v1 = vsub.f32 %v3907_v5, %v5318_v36  ;;  %v6218_v59 = vld [vmem:[#allocation37_spill] sm:$0xff] }
 0x233   : > { %v3716_v41 = vpop.eup %3715  ;;  %v1591_v63 = vadd.f32 1e-05, %v1463_v52  ;;  %v803_v43 = vpop.xlane.xlu1 %802  ;;  %v1972_v20 = vmul.f32 %v3714_v18, %v1844_v32  ;;  %2922 = vst [vmem:[%s5273_s28 + $0x220] sm:$0xff] %v2794_v17  ;;  %v5397_v12 = vmul.f32 0.0078125, %v549_v56  ;;  %v3909_v32 = vld [vmem:[%s4327_s23 + $0x238] sm:$0xff]  ;;  %v3910_v18 = vld [vmem:[%s4327_s23 + $0x340] sm:$0xff] }
 0x234   : > { %v1144_v45 = vmul.f32 0.0078125, %v803_v43  ;;  %v1909_v58 = vmul.f32 %v3716_v41, %v1781_v34  ;;  %838 = vadd.xlane.f32.xlu0 %v650_v55  ;;  %v5414_v55 = vmul.f32 0.0078125, %v6218_v59  ;;  %v1846_v2 = vsub.f32 %v3910_v18, %v5333_v29  ;;  %v3911_v41 = vld [vmem:[%s4327_s23 + $0x148] sm:$0xff] }
 0x235   : > { %3725 = vrsqrt.f32 %v1591_v63  ;;  %3427 = vmatprep.mubr.f32.mxu1 %v1972_v20  ;;  %v3285_v4 = vpop.f32.mrf.mxu0  ;;  %966 = vadd.xlane.f32.xlu1 %v714_v50  ;;  %v1337_v60 = vmul.f32 %v5397_v12, %v5397_v12  ;;  %v1783_v63 = vsub.f32 %v3911_v41, %v5337_v48  ;;  %v3912_v20 = vld [vmem:[%s4327_s23 + $0x230] sm:$0xff] }
 0x236   : > { %v3718_v13 = vpop.eup %3717  ;;  %v1400_v62 = vsub.f32 %v1144_v45, %v1272_v42  ;;  %3332 = vmatmul.mubr.f32.gmra.mxu0 %v1909_v58  ;;  %v931_v44 = vpop.xlane.xlu0 %930  ;;  %v2123_v40 = vadd.f32 %v3285_v4, %v5253_v26  ;;  %v269_v42 = vld [vmem:[%s4327_s23 + $0x1f8] sm:$0xff]  ;;  %v3918_v41 = vld [vmem:[%s4327_s23 + $0x350] sm:$0xff] }
 0x237   : > { %v1208_v51 = vmul.f32 0.0078125, %v931_v44  ;;  %v805_v34 = vpop.xlane.xlu1 %804  ;;  %v1973_v10 = vmul.f32 %v3718_v13, %v1845_v25  ;;  %v2117_v49 = vpop.f32.mrf.mxu0  ;;  %v333_v25 = vld [vmem:[%s4327_s23 + $0x3f8] sm:$0xff]  ;;  %v6219_v13 = vld [vmem:[#allocation36_spill] sm:$0xff]  ;;  %v3913_v44 = vld [vmem:[%s4327_s23 + $0x150] sm:$0xff] }
 0x238   : > { %v1528_v54 = vadd.f32 1e-05, %v1400_v62  ;;  %v1145_v53 = vmul.f32 0.0078125, %v805_v34  ;;  %v2733_v38 = vadd.f32 %v3906_v30, %v2123_v40  ;;  %v2118_v28 = vadd.f32 %v5253_v26, %v2117_v49  ;;  %840 = vadd.xlane.f32.xlu0 %v651_v46  ;;  %v3381_v61 = vpop.f32.mrf.mxu1  ;;  %v3914_v40 = vld [vmem:[%s4327_s23 + $0x348] sm:$0xff] }
 0x239   : > { %v1464_v57 = vsub.f32 %v1208_v51, %v1336_v31  ;;  %3428 = vmatmul.mubr.f32.gmra.mxu1 %v1973_v10  ;;  %v2443_v21 = vadd.f32 %v3381_v61, %v5253_v26  ;;  %968 = vadd.xlane.f32.xlu1 %v715_v33  ;;  %v5430_v48 = vmul.f32 0.0078125, %v6219_v13  ;;  %v1274_v31 = vmul.f32 %v5414_v55, %v5414_v55 }
 0x23a   : > { %3727 = vrsqrt.f32 %v1528_v54  ;;  %v1401_v47 = vsub.f32 %v1145_v53, %v1273_v35  ;;  %v933_v23 = vpop.xlane.xlu0 %932  ;;  %2861 = vst [vmem:[%s5273_s28 + $0x38] sm:$0xff] %v2733_v38  ;;  %v2732_v15 = vadd.f32 %v3908_v37, %v2118_v28  ;;  %v2437_v27 = vpop.f32.mrf.mxu1  ;;  %v1784_v33 = vsub.f32 %v3913_v44, %v5366_v9 }
 0x23b   : > { %v3720_v3 = vpop.eup %3719  ;;  %v1592_v19 = vadd.f32 1e-05, %v1464_v57  ;;  %v1209_v36 = vmul.f32 0.0078125, %v933_v23  ;;  %v551_v16 = vpop.xlane.xlu1 %550  ;;  %v2797_v52 = vadd.f32 %v3909_v32, %v2443_v21  ;;  %v2438_v11 = vadd.f32 %v5253_v26, %v2437_v27  ;;  %v3915_v23 = vld [vmem:[%s4327_s23 + $0x48] sm:$0xff] }
 0x23c   : > { %v1529_v6 = vadd.f32 1e-05, %v1401_v47  ;;  %2860 = vst [vmem:[%s5273_s28 + $0x30] sm:$0xff] %v2732_v15  ;;  %458 = vadd.xlane.f32.xlu0 %v268_v0  ;;  %v1910_v56 = vmul.f32 %v3720_v3, %v1782_v1  ;;  %v5424_v43 = vmul.f32 0.0078125, %v551_v16  ;;  %v1847_v51 = vsub.f32 %v3914_v40, %v5355_v14 }
 0x23d   : > { %3729 = vrsqrt.f32 %v1592_v19  ;;  %v1465_v17 = vsub.f32 %v1209_v36, %v1337_v60  ;;  %2925 = vst [vmem:[%s5273_s28 + $0x238] sm:$0xff] %v2797_v52  ;;  %v2796_v24 = vadd.f32 %v3912_v20, %v2438_v11  ;;  %586 = vadd.xlane.f32.xlu1 %v332_v22  ;;  %v652_v34 = vmul.f32 %v268_v0, %v268_v0 }
 0x23e   : > { %v3722_v50 = vpop.eup %3721  ;;  %3731 = vrsqrt.f32 %v1529_v6  ;;  %v553_v29 = vpop.xlane.xlu0 %552  ;;  %3334 = vmatprep.mubr.f32.mxu0 %v1910_v56  ;;  %v1338_v35 = vmul.f32 %v5424_v43, %v5424_v43  ;;  %v716_v30 = vmul.f32 %v332_v22, %v332_v22  ;;  %v1275_v61 = vmul.f32 %v5430_v48, %v5430_v48  ;;  %v3916_v6 = vld [vmem:[%s4327_s23 + $0x40] sm:$0xff] }
 0x23f   : > { %v3724_v45 = vpop.eup %3723  ;;  %v1593_v58 = vadd.f32 1e-05, %v1465_v17  ;;  %v807_v8 = vpop.xlane.xlu1 %806  ;;  %v1974_v46 = vmul.f32 %v3722_v50, %v1846_v2  ;;  %2924 = vst [vmem:[%s5273_s28 + $0x230] sm:$0xff] %v2796_v24  ;;  %v5441_v38 = vmul.f32 0.0078125, %v553_v29  ;;  %v653_v21 = vmul.f32 %v269_v42, %v269_v42  ;;  %v3917_v17 = vld [vmem:[%s4327_s23 + $0x248] sm:$0xff] }
 0x240   : > { %v1146_v62 = vmul.f32 0.0078125, %v807_v8  ;;  %v1911_v4 = vmul.f32 %v3724_v45, %v1783_v63  ;;  %460 = vadd.xlane.f32.xlu0 %v269_v42  ;;  %v717_v16 = vmul.f32 %v333_v25, %v333_v25  ;;  %v1848_v63 = vsub.f32 %v3918_v41, %v5381_v39  ;;  %v3919_v42 = vld [vmem:[%s4327_s23 + $0x158] sm:$0xff] }
 0x241   : > { %3733 = vrsqrt.f32 %v1593_v58  ;;  %3430 = vmatprep.mubr.f32.mxu1 %v1974_v46  ;;  %v3288_v53 = vpop.f32.mrf.mxu0  ;;  %588 = vadd.xlane.f32.xlu1 %v333_v25  ;;  %v1339_v22 = vmul.f32 %v5441_v38, %v5441_v38  ;;  %v1785_v45 = vsub.f32 %v3919_v42, %v5385_v7  ;;  %v6220_v58 = vld [vmem:[#allocation38_spill] sm:$0xff]  ;;  %v3920_v25 = vld [vmem:[%s4327_s23 + $0x240] sm:$0xff]  ;;  %v3928_v42 = vld [vmem:[%s4327_s23 + $0x250] sm:$0xff] }
 0x242   : > { %v3726_v10 = vpop.eup %3725  ;;  %v1402_v54 = vsub.f32 %v1146_v62, %v1274_v31  ;;  %3335 = vmatmul.mubr.f32.gmra.mxu0 %v1911_v4  ;;  %v935_v49 = vpop.xlane.xlu0 %934  ;;  %v2133_v9 = vadd.f32 %v3288_v53, %v5253_v26  ;;  %v5461_v8 = vmul.f32 0.0078125, %v6220_v58  ;;  %v3921_v7 = vld [vmem:[%s4327_s23 + $0x358] sm:$0xff] }
 0x243   : > { %v1210_v14 = vmul.f32 0.0078125, %v935_v49  ;;  %v809_v57 = vpop.xlane.xlu1 %808  ;;  %v1975_v28 = vmul.f32 %v3726_v10, %v1847_v51  ;;  %v2127_v47 = vpop.f32.mrf.mxu0  ;;  %v1849_v40 = vsub.f32 %v3921_v7, %v5397_v12 }
 0x244   : > { %v1530_v5 = vadd.f32 1e-05, %v1402_v54  ;;  %v1147_v1 = vmul.f32 0.0078125, %v809_v57  ;;  %v2735_v0 = vadd.f32 %v3915_v23, %v2133_v9  ;;  %v2128_v60 = vadd.f32 %v5253_v26, %v2127_v47  ;;  %842 = vadd.xlane.f32.xlu0 %v652_v34  ;;  %v3384_v19 = vpop.f32.mrf.mxu1  ;;  %v3923_v23 = vld [vmem:[%s4327_s23 + $0x160] sm:$0xff] }
 0x245   : > { %v1466_v3 = vsub.f32 %v1210_v14, %v1338_v35  ;;  %3431 = vmatmul.mubr.f32.gmra.mxu1 %v1975_v28  ;;  %v2453_v15 = vadd.f32 %v3384_v19, %v5253_v26  ;;  %970 = vadd.xlane.f32.xlu1 %v716_v30  ;;  %v1276_v34 = vmul.f32 %v5461_v8, %v5461_v8 }
 0x246   : > { %3735 = vrsqrt.f32 %v1530_v5  ;;  %v1403_v37 = vsub.f32 %v1147_v1, %v1275_v61  ;;  %v937_v36 = vpop.xlane.xlu0 %936  ;;  %2863 = vst [vmem:[%s5273_s28 + $0x48] sm:$0xff] %v2735_v0  ;;  %v2734_v32 = vadd.f32 %v3916_v6, %v2128_v60  ;;  %v2447_v18 = vpop.f32.mrf.mxu1  ;;  %v3922_v61 = vld [vmem:[%s4327_s23 + $0x58] sm:$0xff]  ;;  %v1786_v0 = vsub.f32 %v3923_v23, %v5414_v55 }
 0x247   : > { %v3728_v27 = vpop.eup %3727  ;;  %v1594_v59 = vadd.f32 1e-05, %v1466_v3  ;;  %v1211_v52 = vmul.f32 0.0078125, %v937_v36  ;;  %v555_v11 = vpop.xlane.xlu1 %554  ;;  %v2799_v56 = vadd.f32 %v3917_v17, %v2453_v15  ;;  %v2448_v50 = vadd.f32 %v5253_v26, %v2447_v18  ;;  %v3926_v17 = vld [vmem:[%s4327_s23 + $0x360] sm:$0xff] }
 0x248   : > { %v1531_v2 = vadd.f32 1e-05, %v1403_v37  ;;  %2862 = vst [vmem:[%s5273_s28 + $0x40] sm:$0xff] %v2734_v32  ;;  %844 = vadd.xlane.f32.xlu0 %v653_v21  ;;  %v1912_v24 = vmul.f32 %v3728_v27, %v1784_v33  ;;  %v5465_v44 = vmul.f32 0.0078125, %v555_v11  ;;  %v3924_v27 = vld [vmem:[%s4327_s23 + $0x50] sm:$0xff] }
 0x249   : > { %3737 = vrsqrt.f32 %v1594_v59  ;;  %v1467_v20 = vsub.f32 %v1211_v52, %v1339_v22  ;;  %2927 = vst [vmem:[%s5273_s28 + $0x248] sm:$0xff] %v2799_v56  ;;  %v2798_v46 = vadd.f32 %v3920_v25, %v2448_v50  ;;  %972 = vadd.xlane.f32.xlu1 %v717_v16  ;;  %v3925_v52 = vld [vmem:[%s4327_s23 + $0x258] sm:$0xff]  ;;  %v1850_v56 = vsub.f32 %v3926_v17, %v5424_v43 }
 0x24a   : > { %v3730_v29 = vpop.eup %3729  ;;  %3739 = vrsqrt.f32 %v1531_v2  ;;  %v429_v39 = vpop.xlane.xlu0 %428  ;;  %3337 = vmatprep.mubr.f32.mxu0 %v1912_v24  ;;  %v1340_v14 = vmul.f32 %v5465_v44, %v5465_v44 }
 0x24b   : > { %v3732_v13 = vpop.eup %3731  ;;  %v1595_v31 = vadd.f32 1e-05, %v1467_v20  ;;  %v557_v62 = vpop.xlane.xlu1 %556  ;;  %v1976_v4 = vmul.f32 %v3730_v29, %v1848_v63  ;;  %2926 = vst [vmem:[%s5273_s28 + $0x240] sm:$0xff] %v2798_v46  ;;  %v5472_v10 = vmul.f32 0.0078125, %v429_v39  ;;  %v3927_v20 = vld [vmem:[%s4327_s23 + $0x168] sm:$0xff] }
 0x24c   : > { %v1913_v33 = vmul.f32 %v3732_v13, %v1785_v45  ;;  %v5474_v53 = vmul.f32 0.0078125, %v557_v62  ;;  %v1787_v24 = vsub.f32 %v3927_v20, %v5430_v48  ;;  %v3929_v62 = vld [vmem:[%s4327_s23 + $0x368] sm:$0xff] }
 0x24d   : > { %3741 = vrsqrt.f32 %v1595_v31  ;;  %3433 = vmatprep.mubr.f32.mxu1 %v1976_v4  ;;  %v3291_v35 = vpop.f32.mrf.mxu0  ;;  %v1277_v3 = vmul.f32 %v5472_v10, %v5472_v10  ;;  %v1851_v4 = vsub.f32 %v3929_v62, %v5441_v38 }
 0x24e   : > { %v3734_v51 = vpop.eup %3733  ;;  %3338 = vmatmul.mubr.f32.gmra.mxu0 %v1913_v33  ;;  %v811_v54 = vpop.xlane.xlu0 %810  ;;  %v2143_v49 = vadd.f32 %v3291_v35, %v5253_v26  ;;  %v1341_v36 = vmul.f32 %v5474_v53, %v5474_v53 }
 0x24f   : > { %v1148_v30 = vmul.f32 0.0078125, %v811_v54  ;;  %v939_v9 = vpop.xlane.xlu1 %938  ;;  %v1977_v12 = vmul.f32 %v3734_v51, %v1849_v40  ;;  %v2137_v28 = vpop.f32.mrf.mxu0 }
 0x250   : > { %v1212_v57 = vmul.f32 0.0078125, %v939_v9  ;;  %v2737_v5 = vadd.f32 %v3922_v61, %v2143_v49  ;;  %v2138_v47 = vadd.f32 %v5253_v26, %v2137_v28  ;;  %v3387_v21 = vpop.f32.mrf.mxu1 }
 0x251   : > { %v1404_v1 = vsub.f32 %v1148_v30, %v1276_v34  ;;  %3434 = vmatmul.mubr.f32.gmra.mxu1 %v1977_v12  ;;  %v2463_v19 = vadd.f32 %v3387_v21, %v5253_v26  ;;  %v3930_v30 = vld [vmem:[%s4327_s23 + $0x68] sm:$0xff] }
 0x252   : > { %v1468_v60 = vsub.f32 %v1212_v57, %v1340_v14  ;;  %v813_v37 = vpop.xlane.xlu0 %812  ;;  %2865 = vst [vmem:[%s5273_s28 + $0x58] sm:$0xff] %v2737_v5  ;;  %v2736_v22 = vadd.f32 %v3924_v27, %v2138_v47  ;;  %v2457_v6 = vpop.f32.mrf.mxu1 }
 0x253   : > { %v3736_v15 = vpop.eup %3735  ;;  %v1532_v16 = vadd.f32 1e-05, %v1404_v1  ;;  %v1149_v59 = vmul.f32 0.0078125, %v813_v37  ;;  %v941_v55 = vpop.xlane.xlu1 %940  ;;  %v2801_v11 = vadd.f32 %v3925_v52, %v2463_v19  ;;  %v2458_v2 = vadd.f32 %v5253_v26, %v2457_v6  ;;  %v3931_v1 = vld [vmem:[%s4327_s23 + $0x60] sm:$0xff] }
 0x254   : > { %v1596_v32 = vadd.f32 1e-05, %v1468_v60  ;;  %v1213_v18 = vmul.f32 0.0078125, %v941_v55  ;;  %2864 = vst [vmem:[%s5273_s28 + $0x50] sm:$0xff] %v2736_v22  ;;  %v1914_v41 = vmul.f32 %v3736_v15, %v1786_v0  ;;  %v3932_v60 = vld [vmem:[%s4327_s23 + $0x268] sm:$0xff] }
 0x255   : > { %3743 = vrsqrt.f32 %v1532_v16  ;;  %v1405_v50 = vsub.f32 %v1149_v59, %v1277_v3  ;;  %2929 = vst [vmem:[%s5273_s28 + $0x258] sm:$0xff] %v2801_v11  ;;  %v2800_v45 = vadd.f32 %v3928_v42, %v2458_v2  ;;  %v3934_v59 = vld [vmem:[%s4327_s23 + $0x370] sm:$0xff] }
 0x256   : > { %v3738_v63 = vpop.eup %3737  ;;  %3745 = vrsqrt.f32 %v1596_v32  ;;  %v1469_v29 = vsub.f32 %v1213_v18, %v1341_v36  ;;  %v431_v58 = vpop.xlane.xlu0 %430  ;;  %3340 = vmatprep.mubr.f32.mxu0 %v1914_v41  ;;  %v3933_v36 = vld [vmem:[%s4327_s23 + $0x170] sm:$0xff]  ;;  %v1852_v55 = vsub.f32 %v3934_v59, %v5465_v44  ;;  %v3935_v32 = vld [vmem:[%s4327_s23 + $0x260] sm:$0xff] }
 0x257   : > { %v3740_v25 = vpop.eup %3739  ;;  %v1533_v46 = vadd.f32 1e-05, %v1405_v50  ;;  %v559_v43 = vpop.xlane.xlu1 %558  ;;  %v1978_v39 = vmul.f32 %v3738_v63, %v1850_v56  ;;  %2928 = vst [vmem:[%s5273_s28 + $0x250] sm:$0xff] %v2800_v45  ;;  %v5502_v33 = vmul.f32 0.0078125, %v431_v58  ;;  %v1788_v16 = vsub.f32 %v3933_v36, %v5461_v8  ;;  %v3937_v58 = vld [vmem:[%s4327_s23 + $0x378] sm:$0xff] }
 0x258   : > { %v1597_v13 = vadd.f32 1e-05, %v1469_v29  ;;  %v1915_v31 = vmul.f32 %v3740_v25, %v1787_v24  ;;  %v5504_v51 = vmul.f32 0.0078125, %v559_v43  ;;  %v3936_v24 = vld [vmem:[%s4327_s23 + $0x178] sm:$0xff]  ;;  %v1853_v25 = vsub.f32 %v3937_v58, %v5474_v53 }
 0x259   : > { %3747 = vrsqrt.f32 %v1533_v46  ;;  %3436 = vmatprep.mubr.f32.mxu1 %v1978_v39  ;;  %v3294_v7 = vpop.f32.mrf.mxu0  ;;  %v1278_v14 = vmul.f32 %v5502_v33, %v5502_v33  ;;  %v1789_v29 = vsub.f32 %v3936_v24, %v5472_v10 }
 0x25a   : > { %v3742_v48 = vpop.eup %3741  ;;  %3749 = vrsqrt.f32 %v1597_v13  ;;  %3341 = vmatmul.mubr.f32.gmra.mxu0 %v1915_v31  ;;  %v433_v40 = vpop.xlane.xlu0 %432  ;;  %v2153_v34 = vadd.f32 %v3294_v7, %v5253_v26  ;;  %v1342_v61 = vmul.f32 %v5504_v51, %v5504_v51 }
 0x25b   : > { %v561_v35 = vpop.xlane.xlu1 %560  ;;  %v1979_v54 = vmul.f32 %v3742_v48, %v1851_v4  ;;  %v2147_v49 = vpop.f32.mrf.mxu0  ;;  %v5515_v5 = vmul.f32 0.0078125, %v433_v40 }
 0x25c   : > { %v2739_v38 = vadd.f32 %v3930_v30, %v2153_v34  ;;  %v2148_v9 = vadd.f32 %v5253_v26, %v2147_v49  ;;  %v3390_v12 = vpop.f32.mrf.mxu1  ;;  %v5518_v3 = vmul.f32 0.0078125, %v561_v35  ;;  %v3938_v34 = vld [vmem:[%s4327_s23 + $0x78] sm:$0xff] }
 0x25d   : > { %3437 = vmatmul.mubr.f32.gmra.mxu1 %v1979_v54  ;;  %v2473_v57 = vadd.f32 %v3390_v12, %v5253_v26  ;;  %v1279_v2 = vmul.f32 %v5515_v5, %v5515_v5 }
 0x25e   : > { %v815_v28 = vpop.xlane.xlu0 %814  ;;  %2867 = vst [vmem:[%s5273_s28 + $0x68] sm:$0xff] %v2739_v38  ;;  %v2738_v47 = vadd.f32 %v3931_v1, %v2148_v9  ;;  %v2467_v0 = vpop.f32.mrf.mxu1  ;;  %v1343_v41 = vmul.f32 %v5518_v3, %v5518_v3 }
 0x25f   : > { %v1150_v21 = vmul.f32 0.0078125, %v815_v28  ;;  %v943_v23 = vpop.xlane.xlu1 %942  ;;  %v2803_v19 = vadd.f32 %v3932_v60, %v2473_v57  ;;  %v2468_v15 = vadd.f32 %v5253_v26, %v2467_v0  ;;  %v3939_v57 = vld [vmem:[%s4327_s23 + $0x70] sm:$0xff] }
 0x260   : > { %v1214_v37 = vmul.f32 0.0078125, %v943_v23  ;;  %2866 = vst [vmem:[%s5273_s28 + $0x60] sm:$0xff] %v2738_v47  ;;  %v3941_v47 = vld [vmem:[%s4327_s23 + $0x278] sm:$0xff]  ;;  %v3942_v23 = vld [vmem:[%s4327_s23 + $0x270] sm:$0xff] }
 0x261   : > { %v1406_v27 = vsub.f32 %v1150_v21, %v1278_v14  ;;  %2931 = vst [vmem:[%s5273_s28 + $0x268] sm:$0xff] %v2803_v19  ;;  %v2802_v52 = vadd.f32 %v3935_v32, %v2468_v15  ;;  %v3944_v32 = vld [vmem:[%s4327_s23 + $0x380] sm:$0xff] }
 0x262   : > { %v3744_v22 = vpop.eup %3743  ;;  %v1470_v6 = vsub.f32 %v1214_v37, %v1342_v61  ;;  %v817_v11 = vpop.xlane.xlu0 %816  ;;  %v5551_v61 = vld [vmem:[%s6148_s2] ss:$0 sm:$0xff] }
 0x263   : > { %v3746_v18 = vpop.eup %3745  ;;  %v1534_v17 = vadd.f32 1e-05, %v1406_v27  ;;  %v1151_v8 = vmul.f32 0.0078125, %v817_v11  ;;  %v945_v56 = vpop.xlane.xlu1 %944  ;;  %v1916_v50 = vmul.f32 %v3744_v22, %v1788_v16  ;;  %2930 = vst [vmem:[%s5273_s28 + $0x260] sm:$0xff] %v2802_v52  ;;  %v3943_v22 = vld [vmem:[%s4327_s23 + $0x180] sm:$0xff]  ;;  %v1854_v52 = vsub.f32 %v3944_v32, %v5504_v51  ;;  %v3945_v11 = vld [vmem:[%s4327_s23 + $0x188] sm:$0xff] }
 0x264   : > { %v1598_v63 = vadd.f32 1e-05, %v1470_v6  ;;  %v1215_v44 = vmul.f32 0.0078125, %v945_v56  ;;  %v1980_v20 = vmul.f32 %v3746_v18, %v1852_v55  ;;  %v1790_v59 = vsub.f32 %v3943_v22, %v5502_v33 }
 0x265   : > { %3751 = vrsqrt.f32 %v1534_v17  ;;  %v1407_v42 = vsub.f32 %v1151_v8, %v1279_v2  ;;  %3343 = vmatprep.mubr.f32.mxu0 %v1916_v50  ;;  %v3297_v43 = vpop.f32.mrf.mxu0  ;;  %v1791_v18 = vsub.f32 %v3945_v11, %v5515_v5  ;;  %v3952_v11 = vld [vmem:[%s4327_s23 + $0x390] sm:$0xff] }
 0x266   : > { %v3748_v45 = vpop.eup %3747  ;;  %3753 = vrsqrt.f32 %v1598_v63  ;;  %v1471_v46 = vsub.f32 %v1215_v44, %v1343_v41  ;;  %3439 = vmatprep.mubr.f32.mxu1 %v1980_v20  ;;  %v435_v39 = vpop.xlane.xlu0 %434  ;;  %v2163_v62 = vadd.f32 %v3297_v43, %v5253_v26 }
 0x267   : > { %v3750_v13 = vpop.eup %3749  ;;  %v1535_v31 = vadd.f32 1e-05, %v1407_v42  ;;  %v563_v4 = vpop.xlane.xlu1 %562  ;;  %v1917_v10 = vmul.f32 %v3748_v45, %v1789_v29  ;;  %v5542_v30 = vmul.f32 0.0078125, %v435_v39  ;;  %v3946_v45 = vld [vmem:[%s4327_s23 + $0x88] sm:$0xff] }
 0x268   : > { %v1599_v48 = vadd.f32 1e-05, %v1471_v46  ;;  %v2157_v7 = vpop.f32.mrf.mxu0  ;;  %v1981_v40 = vmul.f32 %v3750_v13, %v1853_v25  ;;  %v2741_v35 = vadd.f32 %v3938_v34, %v2163_v62  ;;  %v3393_v53 = vpop.f32.mrf.mxu1  ;;  %v5545_v14 = vmul.f32 0.0078125, %v563_v4 }
 0x269   : > { %3755 = vrsqrt.f32 %v1535_v31  ;;  %3344 = vmatmul.mubr.f32.gmra.mxu0 %v1917_v10  ;;  %v2158_v54 = vadd.f32 %v5253_v26, %v2157_v7  ;;  %v2483_v38 = vadd.f32 %v3393_v53, %v5253_v26  ;;  %v1280_v19 = vmul.f32 %v5542_v30, %v5542_v30  ;;  %v3947_v10 = vld [vmem:[%s4327_s23 + $0x388] sm:$0xff] }
 0x26a   : > { %3757 = vrsqrt.f32 %v1599_v48  ;;  %3440 = vmatmul.mubr.f32.gmra.mxu1 %v1981_v40  ;;  %v437_v49 = vpop.xlane.xlu0 %436  ;;  %2869 = vst [vmem:[%s5273_s28 + $0x78] sm:$0xff] %v2741_v35  ;;  %v2477_v12 = vpop.f32.mrf.mxu1  ;;  %v1344_v36 = vmul.f32 %v5545_v14, %v5545_v14  ;;  %v1855_v48 = vsub.f32 %v3947_v10, %v5518_v3  ;;  %v3948_v40 = vld [vmem:[%s4327_s23 + $0x80] sm:$0xff] }
 0x26b   : > { %v565_v9 = vpop.xlane.xlu1 %564  ;;  %v2740_v28 = vadd.f32 %v3939_v57, %v2158_v54  ;;  %v2478_v1 = vadd.f32 %v5551_v61, %v2477_v12  ;;  %v2805_v21 = vadd.f32 %v3941_v47, %v2483_v38  ;;  %v5556_v26 = vmul.f32 0.0078125, %v437_v49  ;;  %v3949_v38 = vld [vmem:[%s4327_s23 + $0x288] sm:$0xff]  ;;  %v3950_v3 = vld [vmem:[%s4327_s23 + $0x280] sm:$0xff] }
 0x26c   : > { %v5564_v16 = vmul.f32 0.0078125, %v565_v9 }
 0x26d   : > { %2868 = vst [vmem:[%s5273_s28 + $0x70] sm:$0xff] %v2740_v28  ;;  %v2804_v0 = vadd.f32 %v3942_v23, %v2478_v1  ;;  %2933 = vst [vmem:[%s5273_s28 + $0x278] sm:$0xff] %v2805_v21  ;;  %v1281_v2 = vmul.f32 %v5556_v26, %v5556_v26 }
 0x26e   : > { %v819_v60 = vpop.xlane.xlu0 %818  ;;  %v1345_v51 = vmul.f32 %v5564_v16, %v5564_v16 }
 0x26f   : > { %v1152_v37 = vmul.f32 0.0078125, %v819_v60  ;;  %v947_v15 = vpop.xlane.xlu1 %946  ;;  %2932 = vst [vmem:[%s5273_s28 + $0x270] sm:$0xff] %v2804_v0 }
 0x270   : > { %v1216_v27 = vmul.f32 0.0078125, %v947_v15 }
 0x271   : > { %v1408_v55 = vsub.f32 %v1152_v37, %v1280_v19  ;;  %v3300_v8 = vpop.f32.mrf.mxu0 }
 0x272   : > { %v3752_v6 = vpop.eup %3751  ;;  %v1472_v17 = vsub.f32 %v1216_v27, %v1344_v36  ;;  %v821_v56 = vpop.xlane.xlu0 %820  ;;  %v2173_v63 = vadd.f32 %v5551_v61, %v3300_v8 }
 0x273   : > { %v3754_v50 = vpop.eup %3753  ;;  %v1536_v41 = vadd.f32 1e-05, %v1408_v55  ;;  %v1153_v33 = vmul.f32 0.0078125, %v821_v56  ;;  %v949_v44 = vpop.xlane.xlu1 %948  ;;  %v1918_v20 = vmul.f32 %v3752_v6, %v1790_v59  ;;  %v3951_v59 = vld [vmem:[%s4327_s23 + $0x190] sm:$0xff] }
 0x274   : > { %v1600_v24 = vadd.f32 1e-05, %v1472_v17  ;;  %v1217_v29 = vmul.f32 0.0078125, %v949_v44  ;;  %v2167_v5 = vpop.f32.mrf.mxu0  ;;  %v1982_v42 = vmul.f32 %v3754_v50, %v1854_v52  ;;  %v2743_v58 = vadd.f32 %v3946_v45, %v2173_v63  ;;  %v3396_v43 = vpop.f32.mrf.mxu1 }
 0x275   : > { %3759 = vrsqrt.f32 %v1536_v41  ;;  %v1409_v25 = vsub.f32 %v1153_v33, %v1281_v2  ;;  %v2168_v46 = vadd.f32 %v5551_v61, %v2167_v5  ;;  %3346 = vmatprep.mubr.f32.mxu0 %v1918_v20  ;;  %v2493_v31 = vadd.f32 %v5551_v61, %v3396_v43  ;;  %v3953_v2 = vld [vmem:[%s4327_s23 + $0x98] sm:$0xff] }
 0x276   : > { %v3756_v39 = vpop.eup %3755  ;;  %3761 = vrsqrt.f32 %v1600_v24  ;;  %v1473_v13 = vsub.f32 %v1217_v29, %v1345_v51  ;;  %3442 = vmatprep.mubr.f32.mxu1 %v1982_v42  ;;  %v439_v62 = vpop.xlane.xlu0 %438  ;;  %2871 = vst [vmem:[%s5273_s28 + $0x88] sm:$0xff] %v2743_v58  ;;  %v1792_v55 = vsub.f32 %v3951_v59, %v5542_v30  ;;  %v3954_v24 = vld [vmem:[%s4327_s23 + $0x90] sm:$0xff] }
 0x277   : > { %v3758_v4 = vpop.eup %3757  ;;  %v1537_v7 = vadd.f32 1e-05, %v1409_v25  ;;  %v2742_v34 = vadd.f32 %v3948_v40, %v2168_v46  ;;  %v567_v35 = vpop.xlane.xlu1 %566  ;;  %v1919_v54 = vmul.f32 %v3756_v39, %v1791_v18  ;;  %v2807_v9 = vadd.f32 %v3949_v38, %v2493_v31  ;;  %v3955_v46 = vld [vmem:[%s4327_s23 + $0x298] sm:$0xff] }
 0x278   : > { %v2487_v53 = vpop.f32.mrf.mxu1  ;;  %v1601_v49 = vadd.f32 1e-05, %v1473_v13  ;;  %v1983_v57 = vmul.f32 %v3758_v4, %v1855_v48  ;;  %v5590_v47 = vmul.f32 0.0078125, %v439_v62  ;;  %v5592_v23 = vmul.f32 0.0078125, %v567_v35  ;;  %v3956_v31 = vld [vmem:[%s4327_s23 + $0x198] sm:$0xff]  ;;  %v3958_v35 = vld [vmem:[%s4327_s23 + $0x290] sm:$0xff] }
 0x279   : > { %v2488_v12 = vadd.f32 %v5551_v61, %v2487_v53  ;;  %3763 = vrsqrt.f32 %v1537_v7  ;;  %2870 = vst [vmem:[%s5273_s28 + $0x80] sm:$0xff] %v2742_v34  ;;  %3347 = vmatmul.mubr.f32.gmra.mxu0 %v1919_v54  ;;  %2935 = vst [vmem:[%s5273_s28 + $0x288] sm:$0xff] %v2807_v9  ;;  %v1856_v18 = vsub.f32 %v3952_v11, %v5545_v14  ;;  %v3957_v7 = vld [vmem:[%s4327_s23 + $0x398] sm:$0xff]  ;;  %v3960_v11 = vld [vmem:[%s4327_s23 + $0xa0] sm:$0xff] }
 0x27a   : > { %3765 = vrsqrt.f32 %v1601_v49  ;;  %v441_v1 = vpop.xlane.xlu0 %440  ;;  %3443 = vmatmul.mubr.f32.gmra.mxu1 %v1983_v57  ;;  %v1282_v15 = vmul.f32 %v5590_v47, %v5590_v47  ;;  %v1346_v6 = vmul.f32 %v5592_v23, %v5592_v23  ;;  %v1793_v62 = vsub.f32 %v3956_v31, %v5556_v26 }
 0x27b   : > { %v2806_v28 = vadd.f32 %v3950_v3, %v2488_v12  ;;  %v569_v21 = vpop.xlane.xlu1 %568  ;;  %v5595_v0 = vmul.f32 0.0078125, %v441_v1  ;;  %v1857_v40 = vsub.f32 %v3957_v7, %v5564_v16 }
 0x27c   : > { %v5597_v60 = vmul.f32 0.0078125, %v569_v21 }
 0x27d   : > { %2934 = vst [vmem:[%s5273_s28 + $0x280] sm:$0xff] %v2806_v28  ;;  %v3303_v19 = vpop.f32.mrf.mxu0  ;;  %v1283_v30 = vmul.f32 %v5595_v0, %v5595_v0 }
 0x27e   : > { %v823_v37 = vpop.xlane.xlu0 %822  ;;  %v2183_v36 = vadd.f32 %v5551_v61, %v3303_v19  ;;  %v1347_v63 = vmul.f32 %v5597_v60, %v5597_v60 }
 0x27f   : > { %v1154_v27 = vmul.f32 0.0078125, %v823_v37  ;;  %v951_v22 = vpop.xlane.xlu1 %950  ;;  %v2177_v52 = vpop.f32.mrf.mxu0 }
 0x280   : > { %v1218_v32 = vmul.f32 0.0078125, %v951_v22  ;;  %v2745_v17 = vadd.f32 %v3953_v2, %v2183_v36  ;;  %v2178_v56 = vadd.f32 %v5551_v61, %v2177_v52  ;;  %v3399_v50 = vpop.f32.mrf.mxu1 }
 0x281   : > { %v1410_v8 = vsub.f32 %v1154_v27, %v1282_v15  ;;  %v2503_v44 = vadd.f32 %v5551_v61, %v3399_v50  ;;  %v3959_v15 = vld [vmem:[%s4327_s23 + $0xa8] sm:$0xff] }
 0x282   : > { %v3760_v41 = vpop.eup %3759  ;;  %v1474_v33 = vsub.f32 %v1218_v32, %v1346_v6  ;;  %v825_v20 = vpop.xlane.xlu0 %824  ;;  %2873 = vst [vmem:[%s5273_s28 + $0x98] sm:$0xff] %v2745_v17  ;;  %v2744_v29 = vadd.f32 %v3954_v24, %v2178_v56  ;;  %v3961_v50 = vld [vmem:[%s4327_s23 + $0x2a8] sm:$0xff] }
 0x283   : > { %v3762_v14 = vpop.eup %3761  ;;  %v1538_v51 = vadd.f32 1e-05, %v1410_v8  ;;  %v1155_v5 = vmul.f32 0.0078125, %v825_v20  ;;  %v953_v42 = vpop.xlane.xlu1 %952  ;;  %v1920_v58 = vmul.f32 %v3760_v41, %v1792_v55  ;;  %v2809_v43 = vadd.f32 %v3955_v46, %v2503_v44 }
 0x284   : > { %v2497_v45 = vpop.f32.mrf.mxu1  ;;  %v1602_v25 = vadd.f32 1e-05, %v1474_v33  ;;  %v1219_v39 = vmul.f32 0.0078125, %v953_v42  ;;  %2872 = vst [vmem:[%s5273_s28 + $0x90] sm:$0xff] %v2744_v29  ;;  %v1984_v10 = vmul.f32 %v3762_v14, %v1856_v18  ;;  %v5648_v33 = vld [vmem:[%s4327_s23 + $0x1a0] sm:$0xff] }
 0x285   : > { %v2498_v13 = vadd.f32 %v5551_v61, %v2497_v45  ;;  %3767 = vrsqrt.f32 %v1538_v51  ;;  %v1411_v4 = vsub.f32 %v1155_v5, %v1283_v30  ;;  %3349 = vmatprep.mubr.f32.mxu0 %v1920_v58  ;;  %2937 = vst [vmem:[%s5273_s28 + $0x298] sm:$0xff] %v2809_v43  ;;  %v1794_v44 = vsub.f32 %v5648_v33, %v5590_v47  ;;  %v5654_v51 = vld [vmem:[%s4327_s23 + $0x3a0] sm:$0xff] }
 0x286   : > { %v3764_v48 = vpop.eup %3763  ;;  %3769 = vrsqrt.f32 %v1602_v25  ;;  %v1475_v34 = vsub.f32 %v1219_v39, %v1347_v63  ;;  %v443_v54 = vpop.xlane.xlu0 %442  ;;  %3445 = vmatprep.mubr.f32.mxu1 %v1984_v10  ;;  %v1858_v24 = vsub.f32 %v5654_v51, %v5592_v23  ;;  %v3964_v5 = vld [vmem:[%s4327_s23 + $0x2a0] sm:$0xff] }
 0x287   : > { %v2808_v53 = vadd.f32 %v3958_v35, %v2498_v13  ;;  %v3766_v49 = vpop.eup %3765  ;;  %v1539_v38 = vadd.f32 1e-05, %v1411_v4  ;;  %v571_v26 = vpop.xlane.xlu1 %570  ;;  %v1921_v9 = vmul.f32 %v3764_v48, %v1793_v62  ;;  %v5627_v3 = vmul.f32 0.0078125, %v443_v54  ;;  %v5666_v4 = vld [vmem:[%s4327_s23 + $0x1a8] sm:$0xff] }
 0x288   : > { %v1603_v12 = vadd.f32 1e-05, %v1475_v34  ;;  %v1985_v57 = vmul.f32 %v3766_v49, %v1857_v40  ;;  %v5629_v1 = vmul.f32 0.0078125, %v571_v26  ;;  %v1795_v10 = vsub.f32 %v5666_v4, %v5595_v0  ;;  %v5671_v40 = vld [vmem:[%s4327_s23 + $0x3a8] sm:$0xff] }
 0x289   : > { %2936 = vst [vmem:[%s5273_s28 + $0x290] sm:$0xff] %v2808_v53  ;;  %3771 = vrsqrt.f32 %v1539_v38  ;;  %3350 = vmatmul.mubr.f32.gmra.mxu0 %v1921_v9  ;;  %v3306_v16 = vpop.f32.mrf.mxu0  ;;  %v1284_v59 = vmul.f32 %v5627_v3, %v5627_v3  ;;  %v1859_v34 = vsub.f32 %v5671_v40, %v5597_v60 }
 0x28a   : > { %3773 = vrsqrt.f32 %v1603_v12  ;;  %3446 = vmatmul.mubr.f32.gmra.mxu1 %v1985_v57  ;;  %v445_v28 = vpop.xlane.xlu0 %444  ;;  %v2193_v21 = vadd.f32 %v5551_v61, %v3306_v16  ;;  %v1348_v32 = vmul.f32 %v5629_v1, %v5629_v1 }
 0x28b   : > { %v573_v19 = vpop.xlane.xlu1 %572  ;;  %v2187_v37 = vpop.f32.mrf.mxu0  ;;  %v5640_v52 = vmul.f32 0.0078125, %v445_v28  ;;  %v3967_v28 = vld [vmem:[%s4327_s23 + $0xb8] sm:$0xff] }
 0x28c   : > { %v2747_v36 = vadd.f32 %v3959_v15, %v2193_v21  ;;  %v2188_v27 = vadd.f32 %v5551_v61, %v2187_v37  ;;  %v3402_v22 = vpop.f32.mrf.mxu1  ;;  %v5643_v56 = vmul.f32 0.0078125, %v573_v19 }
 0x28d   : > { %v2513_v55 = vadd.f32 %v5551_v61, %v3402_v22  ;;  %v1285_v25 = vmul.f32 %v5640_v52, %v5640_v52 }
 0x28e   : > { %v827_v6 = vpop.xlane.xlu0 %826  ;;  %2875 = vst [vmem:[%s5273_s28 + $0xa8] sm:$0xff] %v2747_v36  ;;  %v2746_v18 = vadd.f32 %v3960_v11, %v2188_v27  ;;  %v2507_v8 = vpop.f32.mrf.mxu1  ;;  %v1349_v13 = vmul.f32 %v5643_v56, %v5643_v56  ;;  %v3969_v11 = vld [vmem:[%s4327_s23 + $0x2b8] sm:$0xff] }
 0x28f   : > { %v1156_v2 = vmul.f32 0.0078125, %v827_v6  ;;  %v955_v17 = vpop.xlane.xlu1 %954  ;;  %v2811_v41 = vadd.f32 %v3961_v50, %v2513_v55  ;;  %v2508_v63 = vadd.f32 %v5551_v61, %v2507_v8  ;;  %v3968_v55 = vld [vmem:[%s4327_s23 + $0xb0] sm:$0xff] }
 0x290   : > { %v1220_v30 = vmul.f32 0.0078125, %v955_v17  ;;  %2874 = vst [vmem:[%s5273_s28 + $0xa0] sm:$0xff] %v2746_v18  ;;  %v3970_v17 = vld [vmem:[%s4327_s23 + $0x2b0] sm:$0xff] }
 0x291   : > { %v1412_v20 = vsub.f32 %v1156_v2, %v1284_v59  ;;  %2939 = vst [vmem:[%s5273_s28 + $0x2a8] sm:$0xff] %v2811_v41  ;;  %v2810_v42 = vadd.f32 %v3964_v5, %v2508_v63 }
 0x292   : > { %v3768_v14 = vpop.eup %3767  ;;  %v1476_v29 = vsub.f32 %v1220_v30, %v1348_v32  ;;  %v829_v45 = vpop.xlane.xlu0 %828 }
 0x293   : > { %v3770_v58 = vpop.eup %3769  ;;  %v1540_v47 = vadd.f32 1e-05, %v1412_v20  ;;  %v1157_v46 = vmul.f32 0.0078125, %v829_v45  ;;  %v957_v43 = vpop.xlane.xlu1 %956  ;;  %v1922_v39 = vmul.f32 %v3768_v14, %v1794_v44  ;;  %2938 = vst [vmem:[%s5273_s28 + $0x2a0] sm:$0xff] %v2810_v42  ;;  %v5705_v45 = vld [vmem:[%s4327_s23 + $0x3b0] sm:$0xff] }
 0x294   : > { %v1604_v31 = vadd.f32 1e-05, %v1476_v29  ;;  %v1221_v23 = vmul.f32 0.0078125, %v957_v43  ;;  %v1986_v62 = vmul.f32 %v3770_v58, %v1858_v24  ;;  %v5700_v24 = vld [vmem:[%s4327_s23 + $0x1b0] sm:$0xff]  ;;  %v1860_v58 = vsub.f32 %v5705_v45, %v5629_v1 }
 0x295   : > { %3775 = vrsqrt.f32 %v1540_v47  ;;  %v1413_v48 = vsub.f32 %v1157_v46, %v1285_v25  ;;  %3352 = vmatprep.mubr.f32.mxu0 %v1922_v39  ;;  %v3309_v53 = vpop.f32.mrf.mxu0  ;;  %v1796_v29 = vsub.f32 %v5700_v24, %v5627_v3  ;;  %v5710_v25 = vld [vmem:[%s4327_s23 + $0x1b8] sm:$0xff] }
 0x296   : > { %v3772_v7 = vpop.eup %3771  ;;  %3777 = vrsqrt.f32 %v1604_v31  ;;  %v1477_v35 = vsub.f32 %v1221_v23, %v1349_v13  ;;  %3448 = vmatprep.mubr.f32.mxu1 %v1986_v62  ;;  %v447_v54 = vpop.xlane.xlu0 %446  ;;  %v2203_v0 = vadd.f32 %v5551_v61, %v3309_v53  ;;  %v1797_v47 = vsub.f32 %v5710_v25, %v5640_v52  ;;  %v3974_v53 = vld [vmem:[%s4327_s23 + $0xc8] sm:$0xff] }
 0x297   : > { %v3774_v49 = vpop.eup %3773  ;;  %v1541_v38 = vadd.f32 1e-05, %v1413_v48  ;;  %v575_v26 = vpop.xlane.xlu1 %574  ;;  %v1923_v9 = vmul.f32 %v3772_v7, %v1795_v10  ;;  %v5679_v15 = vmul.f32 0.0078125, %v447_v54 }
 0x298   : > { %v1605_v12 = vadd.f32 1e-05, %v1477_v35  ;;  %v2197_v57 = vpop.f32.mrf.mxu0  ;;  %v1987_v16 = vmul.f32 %v3774_v49, %v1859_v34  ;;  %v2749_v21 = vadd.f32 %v3967_v28, %v2203_v0  ;;  %v3405_v60 = vpop.f32.mrf.mxu1  ;;  %v5682_v59 = vmul.f32 0.0078125, %v575_v26  ;;  %v5723_v28 = vld [vmem:[%s4327_s23 + $0x3b8] sm:$0xff] }
 0x299   : > { %3779 = vrsqrt.f32 %v1541_v38  ;;  %3353 = vmatmul.mubr.f32.gmra.mxu0 %v1923_v9  ;;  %v2198_v19 = vadd.f32 %v5551_v61, %v2197_v57  ;;  %v2523_v36 = vadd.f32 %v5551_v61, %v3405_v60  ;;  %v1286_v41 = vmul.f32 %v5679_v15, %v5679_v15 }
 0x29a   : > { %3781 = vrsqrt.f32 %v1605_v12  ;;  %3449 = vmatmul.mubr.f32.gmra.mxu1 %v1987_v16  ;;  %v449_v37 = vpop.xlane.xlu0 %448  ;;  %2877 = vst [vmem:[%s5273_s28 + $0xb8] sm:$0xff] %v2749_v21  ;;  %v2517_v22 = vpop.f32.mrf.mxu1  ;;  %v1350_v44 = vmul.f32 %v5682_v59, %v5682_v59  ;;  %v1861_v21 = vsub.f32 %v5723_v28, %v5643_v56  ;;  %v3978_v56 = vld [vmem:[%s4327_s23 + $0x2c0] sm:$0xff] }
 0x29b   : > { %v577_v27 = vpop.xlane.xlu1 %576  ;;  %v2748_v6 = vadd.f32 %v3968_v55, %v2198_v19  ;;  %v2518_v32 = vadd.f32 %v5551_v61, %v2517_v22  ;;  %v2813_v18 = vadd.f32 %v3969_v11, %v2523_v36  ;;  %v5688_v2 = vmul.f32 0.0078125, %v449_v37  ;;  %v3976_v19 = vld [vmem:[%s4327_s23 + $0xc0] sm:$0xff] }
 0x29c   : > { %v5696_v20 = vmul.f32 0.0078125, %v577_v27 }
 0x29d   : > { %2876 = vst [vmem:[%s5273_s28 + $0xb0] sm:$0xff] %v2748_v6  ;;  %v2812_v8 = vadd.f32 %v3970_v17, %v2518_v32  ;;  %2941 = vst [vmem:[%s5273_s28 + $0x2b8] sm:$0xff] %v2813_v18  ;;  %v1287_v46 = vmul.f32 %v5688_v2, %v5688_v2  ;;  %v3977_v6 = vld [vmem:[%s4327_s23 + $0x2c8] sm:$0xff] }
 0x29e   : > { %v831_v50 = vpop.xlane.xlu0 %830  ;;  %v1351_v1 = vmul.f32 %v5696_v20, %v5696_v20 }
 0x29f   : > { %v1158_v30 = vmul.f32 0.0078125, %v831_v50  ;;  %v959_v63 = vpop.xlane.xlu1 %958  ;;  %2940 = vst [vmem:[%s5273_s28 + $0x2b0] sm:$0xff] %v2812_v8 }
 0x2a0   : > { %v1222_v14 = vmul.f32 0.0078125, %v959_v63 }
 0x2a1   : > { %v1414_v5 = vsub.f32 %v1158_v30, %v1286_v41  ;;  %v3312_v39 = vpop.f32.mrf.mxu0 }
 0x2a2   : > { %v3776_v42 = vpop.eup %3775  ;;  %v1478_v43 = vsub.f32 %v1222_v14, %v1350_v44  ;;  %v833_v13 = vpop.xlane.xlu0 %832  ;;  %v2213_v23 = vadd.f32 %v5551_v61, %v3312_v39 }
 0x2a3   : > { %v3778_v3 = vpop.eup %3777  ;;  %v1542_v31 = vadd.f32 1e-05, %v1414_v5  ;;  %v1159_v62 = vmul.f32 0.0078125, %v833_v13  ;;  %v961_v10 = vpop.xlane.xlu1 %960  ;;  %v1924_v48 = vmul.f32 %v3776_v42, %v1796_v29 }
 0x2a4   : > { %v1606_v7 = vadd.f32 1e-05, %v1478_v43  ;;  %v1223_v34 = vmul.f32 0.0078125, %v961_v10  ;;  %v2207_v52 = vpop.f32.mrf.mxu0  ;;  %v1988_v35 = vmul.f32 %v3778_v3, %v1860_v58  ;;  %v2751_v54 = vadd.f32 %v3974_v53, %v2213_v23  ;;  %v3408_v0 = vpop.f32.mrf.mxu1 }
 0x2a5   : > { %3783 = vrsqrt.f32 %v1542_v31  ;;  %v1415_v49 = vsub.f32 %v1159_v62, %v1287_v46  ;;  %v2208_v38 = vadd.f32 %v5551_v61, %v2207_v52  ;;  %3355 = vmatprep.mubr.f32.mxu0 %v1924_v48  ;;  %v2533_v12 = vadd.f32 %v5551_v61, %v3408_v0  ;;  %v5747_v46 = vld [vmem:[%s4327_s23 + $0x1c0] sm:$0xff]  ;;  %v3981_v62 = vld [vmem:[%s4327_s23 + $0xd8] sm:$0xff] }
 0x2a6   : > { %v3780_v26 = vpop.eup %3779  ;;  %3785 = vrsqrt.f32 %v1606_v7  ;;  %v1479_v9 = vsub.f32 %v1223_v34, %v1351_v1  ;;  %3451 = vmatprep.mubr.f32.mxu1 %v1988_v35  ;;  %v451_v57 = vpop.xlane.xlu0 %450  ;;  %2879 = vst [vmem:[%s5273_s28 + $0xc8] sm:$0xff] %v2751_v54  ;;  %v1798_v43 = vsub.f32 %v5747_v46, %v5679_v15  ;;  %v5754_v31 = vld [vmem:[%s4327_s23 + $0x3c0] sm:$0xff] }
 0x2a7   : > { %v3782_v16 = vpop.eup %3781  ;;  %v1543_v60 = vadd.f32 1e-05, %v1415_v49  ;;  %v2750_v37 = vadd.f32 %v3976_v19, %v2208_v38  ;;  %v579_v36 = vpop.xlane.xlu1 %578  ;;  %v1925_v22 = vmul.f32 %v3780_v26, %v1797_v47  ;;  %v2815_v32 = vadd.f32 %v3977_v6, %v2533_v12  ;;  %v3982_v38 = vld [vmem:[%s4327_s23 + $0xd0] sm:$0xff] }
 0x2a8   : > { %v2527_v27 = vpop.f32.mrf.mxu1  ;;  %v1607_v55 = vadd.f32 1e-05, %v1479_v9  ;;  %v1989_v18 = vmul.f32 %v3782_v16, %v1861_v21  ;;  %v5734_v50 = vmul.f32 0.0078125, %v451_v57  ;;  %v5736_v30 = vmul.f32 0.0078125, %v579_v36  ;;  %v3983_v21 = vld [vmem:[%s4327_s23 + $0x2d8] sm:$0xff]  ;;  %v5770_v36 = vld [vmem:[%s4327_s23 + $0x1c8] sm:$0xff] }
 0x2a9   : > { %v2528_v11 = vadd.f32 %v5551_v61, %v2527_v27  ;;  %3787 = vrsqrt.f32 %v1543_v60  ;;  %2878 = vst [vmem:[%s5273_s28 + $0xc0] sm:$0xff] %v2750_v37  ;;  %3356 = vmatmul.mubr.f32.gmra.mxu0 %v1925_v22  ;;  %2943 = vst [vmem:[%s5273_s28 + $0x2c8] sm:$0xff] %v2815_v32  ;;  %v1862_v23 = vsub.f32 %v5754_v31, %v5682_v59  ;;  %v5776_v32 = vld [vmem:[%s4327_s23 + $0x3c8] sm:$0xff] }
 0x2aa   : > { %3789 = vrsqrt.f32 %v1607_v55  ;;  %v453_v8 = vpop.xlane.xlu0 %452  ;;  %3452 = vmatmul.mubr.f32.gmra.mxu1 %v1989_v18  ;;  %v1288_v5 = vmul.f32 %v5734_v50, %v5734_v50  ;;  %v1352_v39 = vmul.f32 %v5736_v30, %v5736_v30  ;;  %v1799_v27 = vsub.f32 %v5770_v36, %v5688_v2 }
 0x2ab   : > { %v2814_v17 = vadd.f32 %v3978_v56, %v2528_v11  ;;  %v581_v41 = vpop.xlane.xlu1 %580  ;;  %v5739_v63 = vmul.f32 0.0078125, %v453_v8  ;;  %v1863_v11 = vsub.f32 %v5776_v32, %v5696_v20  ;;  %v3986_v56 = vld [vmem:[%s4327_s23 + $0x2d0] sm:$0xff] }
 0x2ac   : > { %v5741_v44 = vmul.f32 0.0078125, %v581_v41 }
 0x2ad   : > { %2942 = vst [vmem:[%s5273_s28 + $0x2c0] sm:$0xff] %v2814_v17  ;;  %v3315_v14 = vpop.f32.mrf.mxu0  ;;  %v1289_v15 = vmul.f32 %v5739_v63, %v5739_v63 }
 0x2ae   : > { %v835_v29 = vpop.xlane.xlu0 %834  ;;  %v2223_v42 = vadd.f32 %v5551_v61, %v3315_v14  ;;  %v1353_v52 = vmul.f32 %v5741_v44, %v5741_v44 }
 0x2af   : > { %v1160_v58 = vmul.f32 0.0078125, %v835_v29  ;;  %v963_v47 = vpop.xlane.xlu1 %962  ;;  %v2217_v3 = vpop.f32.mrf.mxu0 }
 0x2b0   : > { %v1224_v13 = vmul.f32 0.0078125, %v963_v47  ;;  %v2753_v10 = vadd.f32 %v3981_v62, %v2223_v42  ;;  %v2218_v1 = vadd.f32 %v5551_v61, %v2217_v3  ;;  %v3411_v7 = vpop.f32.mrf.mxu1 }
 0x2b1   : > { %v1416_v48 = vsub.f32 %v1160_v58, %v1288_v5  ;;  %v2543_v53 = vadd.f32 %v5551_v61, %v3411_v7 }
 0x2b2   : > { %v3784_v34 = vpop.eup %3783  ;;  %v1480_v35 = vsub.f32 %v1224_v13, %v1352_v39  ;;  %v837_v54 = vpop.xlane.xlu0 %836  ;;  %2881 = vst [vmem:[%s5273_s28 + $0xd8] sm:$0xff] %v2753_v10  ;;  %v2752_v0 = vadd.f32 %v3982_v38, %v2218_v1 }
 0x2b3   : > { %v3786_v59 = vpop.eup %3785  ;;  %v1544_v49 = vadd.f32 1e-05, %v1416_v48  ;;  %v1161_v26 = vmul.f32 0.0078125, %v837_v54  ;;  %v965_v9 = vpop.xlane.xlu1 %964  ;;  %v1926_v57 = vmul.f32 %v3784_v34, %v1798_v43  ;;  %v2817_v60 = vadd.f32 %v3983_v21, %v2543_v53 }
 0x2b4   : > { %v2537_v12 = vpop.f32.mrf.mxu1  ;;  %v1608_v16 = vadd.f32 1e-05, %v1480_v35  ;;  %v1225_v19 = vmul.f32 0.0078125, %v965_v9  ;;  %2880 = vst [vmem:[%s5273_s28 + $0xd0] sm:$0xff] %v2752_v0  ;;  %v1990_v55 = vmul.f32 %v3786_v59, %v1862_v23  ;;  %v3987_v23 = vld [vmem:[%s4327_s23 + $0xe8] sm:$0xff]  ;;  %v3988_v35 = vld [vmem:[%s4327_s23 + $0xe0] sm:$0xff] }
 0x2b5   : > { %v2538_v37 = vadd.f32 %v5551_v61, %v2537_v12  ;;  %3791 = vrsqrt.f32 %v1544_v49  ;;  %v1417_v22 = vsub.f32 %v1161_v26, %v1289_v15  ;;  %3358 = vmatprep.mubr.f32.mxu0 %v1926_v57  ;;  %2945 = vst [vmem:[%s5273_s28 + $0x2d8] sm:$0xff] %v2817_v60  ;;  %v3989_v0 = vld [vmem:[%s4327_s23 + $0x2e8] sm:$0xff]  ;;  %v5804_v57 = vld [vmem:[%s4327_s23 + $0x1d0] sm:$0xff] }
 0x2b6   : > { %v3788_v6 = vpop.eup %3787  ;;  %3793 = vrsqrt.f32 %v1608_v16  ;;  %v1481_v18 = vsub.f32 %v1225_v19, %v1353_v52  ;;  %v455_v8 = vpop.xlane.xlu0 %454  ;;  %3454 = vmatprep.mubr.f32.mxu1 %v1990_v55  ;;  %v1800_v16 = vsub.f32 %v5804_v57, %v5734_v50  ;;  %v5810_v19 = vld [vmem:[%s4327_s23 + $0x3d0] sm:$0xff] }
 0x2b7   : > { %v2816_v17 = vadd.f32 %v3986_v56, %v2538_v37  ;;  %v3790_v41 = vpop.eup %3789  ;;  %v1545_v2 = vadd.f32 1e-05, %v1417_v22  ;;  %v583_v14 = vpop.xlane.xlu1 %582  ;;  %v1927_v29 = vmul.f32 %v3788_v6, %v1799_v27  ;;  %v5783_v58 = vmul.f32 0.0078125, %v455_v8  ;;  %v3992_v22 = vld [vmem:[%s4327_s23 + $0x2e0] sm:$0xff] }
 0x2b8   : > { %v1609_v5 = vadd.f32 1e-05, %v1481_v18  ;;  %v1991_v42 = vmul.f32 %v3790_v41, %v1863_v11  ;;  %v5785_v43 = vmul.f32 0.0078125, %v583_v14  ;;  %v1864_v37 = vsub.f32 %v5810_v19, %v5736_v30 }
 0x2b9   : > { %2944 = vst [vmem:[%s5273_s28 + $0x2d0] sm:$0xff] %v2816_v17  ;;  %3795 = vrsqrt.f32 %v1545_v2  ;;  %3359 = vmatmul.mubr.f32.gmra.mxu0 %v1927_v29  ;;  %v3318_v20 = vpop.f32.mrf.mxu0  ;;  %v1290_v1 = vmul.f32 %v5783_v58, %v5783_v58  ;;  %v5822_v29 = vld [vmem:[%s4327_s23 + $0x1d8] sm:$0xff] }
 0x2ba   : > { %3797 = vrsqrt.f32 %v1609_v5  ;;  %3455 = vmatmul.mubr.f32.gmra.mxu1 %v1991_v42  ;;  %v457_v47 = vpop.xlane.xlu0 %456  ;;  %v2233_v39 = vadd.f32 %v5551_v61, %v3318_v20  ;;  %v1354_v15 = vmul.f32 %v5785_v43, %v5785_v43  ;;  %v1801_v5 = vsub.f32 %v5822_v29, %v5739_v63 }
 0x2bb   : > { %v585_v13 = vpop.xlane.xlu1 %584  ;;  %v2227_v3 = vpop.f32.mrf.mxu0  ;;  %v5796_v52 = vmul.f32 0.0078125, %v457_v47  ;;  %v5827_v47 = vld [vmem:[%s4327_s23 + $0x3d8] sm:$0xff] }
 0x2bc   : > { %v2755_v62 = vadd.f32 %v3987_v23, %v2233_v39  ;;  %v2228_v10 = vadd.f32 %v5551_v61, %v2227_v3  ;;  %v3414_v48 = vpop.f32.mrf.mxu1  ;;  %v5799_v38 = vmul.f32 0.0078125, %v585_v13  ;;  %v1865_v39 = vsub.f32 %v5827_v47, %v5741_v44 }
 0x2bd   : > { %v2553_v7 = vadd.f32 %v5551_v61, %v3414_v48  ;;  %v1291_v18 = vmul.f32 %v5796_v52, %v5796_v52 }
 0x2be   : > { %v839_v34 = vpop.xlane.xlu0 %838  ;;  %2883 = vst [vmem:[%s5273_s28 + $0xe8] sm:$0xff] %v2755_v62  ;;  %v2754_v53 = vadd.f32 %v3988_v35, %v2228_v10  ;;  %v2547_v49 = vpop.f32.mrf.mxu1  ;;  %v1355_v41 = vmul.f32 %v5799_v38, %v5799_v38  ;;  %v3995_v35 = vld [vmem:[%s4327_s23 + $0xf8] sm:$0xff] }
 0x2bf   : > { %v1162_v54 = vmul.f32 0.0078125, %v839_v34  ;;  %v967_v59 = vpop.xlane.xlu1 %966  ;;  %v2819_v26 = vadd.f32 %v3989_v0, %v2553_v7  ;;  %v2548_v12 = vadd.f32 %v5551_v61, %v2547_v49 }
 0x2c0   : > { %v1226_v9 = vmul.f32 0.0078125, %v967_v59  ;;  %2882 = vst [vmem:[%s5273_s28 + $0xe0] sm:$0xff] %v2754_v53 }
 0x2c1   : > { %v1418_v21 = vsub.f32 %v1162_v54, %v1290_v1  ;;  %2947 = vst [vmem:[%s5273_s28 + $0x2e8] sm:$0xff] %v2819_v26  ;;  %v2818_v55 = vadd.f32 %v3992_v22, %v2548_v12 }
 0x2c2   : > { %v3792_v60 = vpop.eup %3791  ;;  %v1482_v27 = vsub.f32 %v1226_v9, %v1354_v15  ;;  %v841_v6 = vpop.xlane.xlu0 %840 }
 0x2c3   : > { %v3794_v11 = vpop.eup %3793  ;;  %v1546_v50 = vadd.f32 1e-05, %v1418_v21  ;;  %v1163_v56 = vmul.f32 0.0078125, %v841_v6  ;;  %v969_v17 = vpop.xlane.xlu1 %968  ;;  %v1928_v8 = vmul.f32 %v3792_v60, %v1800_v16  ;;  %2946 = vst [vmem:[%s5273_s28 + $0x2e0] sm:$0xff] %v2818_v55  ;;  %v3996_v16 = vld [vmem:[%s4327_s23 + $0xf0] sm:$0xff] }
 0x2c4   : > { %v1610_v2 = vadd.f32 1e-05, %v1482_v27  ;;  %v1227_v30 = vmul.f32 0.0078125, %v969_v17  ;;  %v1992_v14 = vmul.f32 %v3794_v11, %v1864_v37  ;;  %v3997_v37 = vld [vmem:[%s4327_s23 + $0x2f8] sm:$0xff]  ;;  %v3998_v55 = vld [vmem:[%s4327_s23 + $0x2f0] sm:$0xff] }
 0x2c5   : > { %3799 = vrsqrt.f32 %v1546_v50  ;;  %v1419_v42 = vsub.f32 %v1163_v56, %v1291_v18  ;;  %3361 = vmatprep.mubr.f32.mxu0 %v1928_v8  ;;  %v3321_v3 = vpop.f32.mrf.mxu0 }
 0x2c6   : > { %v3796_v20 = vpop.eup %3795  ;;  %3801 = vrsqrt.f32 %v1610_v2  ;;  %v1483_v13 = vsub.f32 %v1227_v30, %v1355_v41  ;;  %3457 = vmatprep.mubr.f32.mxu1 %v1992_v14  ;;  %v459_v23 = vpop.xlane.xlu0 %458  ;;  %v2243_v63 = vadd.f32 %v5551_v61, %v3321_v3  ;;  %v5856_v2 = vld [vmem:[%s4327_s23 + $0x1e0] sm:$0xff] }
 0x2c7   : > { %v3798_v62 = vpop.eup %3797  ;;  %v1547_v10 = vadd.f32 1e-05, %v1419_v42  ;;  %v587_v48 = vpop.xlane.xlu1 %586  ;;  %v1929_v1 = vmul.f32 %v3796_v20, %v1801_v5  ;;  %v5835_v49 = vmul.f32 0.0078125, %v459_v23  ;;  %v1802_v30 = vsub.f32 %v5856_v2, %v5783_v58  ;;  %v5861_v42 = vld [vmem:[%s4327_s23 + $0x3e0] sm:$0xff] }
 0x2c8   : > { %v1611_v7 = vadd.f32 1e-05, %v1483_v13  ;;  %v2237_v34 = vpop.f32.mrf.mxu0  ;;  %v1993_v15 = vmul.f32 %v3798_v62, %v1865_v39  ;;  %v2757_v53 = vadd.f32 %v3995_v35, %v2243_v63  ;;  %v3417_v44 = vpop.f32.mrf.mxu1  ;;  %v5838_v12 = vmul.f32 0.0078125, %v587_v48  ;;  %v5866_v39 = vld [vmem:[%s4327_s23 + $0x1e8] sm:$0xff] }
 0x2c9   : > { %3803 = vrsqrt.f32 %v1547_v10  ;;  %3362 = vmatmul.mubr.f32.gmra.mxu0 %v1929_v1  ;;  %v2238_v54 = vadd.f32 %v5551_v61, %v2237_v34  ;;  %v2563_v0 = vadd.f32 %v5551_v61, %v3417_v44  ;;  %v1292_v18 = vmul.f32 %v5835_v49, %v5835_v49  ;;  %v4002_v44 = vld [vmem:[%s4327_s23 + $0x108] sm:$0xff] }
 0x2ca   : > { %3805 = vrsqrt.f32 %v1611_v7  ;;  %3458 = vmatmul.mubr.f32.gmra.mxu1 %v1993_v15  ;;  %v461_v59 = vpop.xlane.xlu0 %460  ;;  %2885 = vst [vmem:[%s5273_s28 + $0xf8] sm:$0xff] %v2757_v53  ;;  %v2557_v9 = vpop.f32.mrf.mxu1  ;;  %v1356_v17 = vmul.f32 %v5838_v12, %v5838_v12  ;;  %v1866_v20 = vsub.f32 %v5861_v42, %v5785_v43  ;;  %v1803_v13 = vsub.f32 %v5866_v39, %v5796_v52 }
 0x2cb   : > { %v589_v26 = vpop.xlane.xlu1 %588  ;;  %v2756_v21 = vadd.f32 %v3996_v16, %v2238_v54  ;;  %v2558_v60 = vadd.f32 %v5551_v61, %v2557_v9  ;;  %v2821_v27 = vadd.f32 %v3997_v37, %v2563_v0  ;;  %v5844_v22 = vmul.f32 0.0078125, %v461_v59  ;;  %v5878_v16 = vld [vmem:[%s4327_s23 + $0x3e8] sm:$0xff] }
 0x2cc   : > { %v5852_v8 = vmul.f32 0.0078125, %v589_v26 }
 0x2cd   : > { %2884 = vst [vmem:[%s5273_s28 + $0xf0] sm:$0xff] %v2756_v21  ;;  %v2820_v6 = vadd.f32 %v3998_v55, %v2558_v60  ;;  %2949 = vst [vmem:[%s5273_s28 + $0x2f8] sm:$0xff] %v2821_v27  ;;  %v1293_v3 = vmul.f32 %v5844_v22, %v5844_v22  ;;  %v1867_v21 = vsub.f32 %v5878_v16, %v5799_v38 }
 0x2ce   : > { %v843_v11 = vpop.xlane.xlu0 %842  ;;  %v1357_v34 = vmul.f32 %v5852_v8, %v5852_v8 }
 0x2cf   : > { %v1164_v50 = vmul.f32 0.0078125, %v843_v11  ;;  %v971_v56 = vpop.xlane.xlu1 %970  ;;  %2948 = vst [vmem:[%s5273_s28 + $0x2f0] sm:$0xff] %v2820_v6  ;;  %v4004_v6 = vld [vmem:[%s4327_s23 + $0x100] sm:$0xff] }
 0x2d0   : > { %v1228_v41 = vmul.f32 0.0078125, %v971_v56 }
 0x2d1   : > { %v1420_v14 = vsub.f32 %v1164_v50, %v1292_v18  ;;  %v3324_v62 = vpop.f32.mrf.mxu0 }
 0x2d2   : > { %v3800_v5 = vpop.eup %3799  ;;  %v1484_v23 = vsub.f32 %v1228_v41, %v1356_v17  ;;  %v845_v10 = vpop.xlane.xlu0 %844  ;;  %v2253_v48 = vadd.f32 %v5551_v61, %v3324_v62  ;;  %v4005_v17 = vld [vmem:[%s4327_s23 + $0x308] sm:$0xff] }
 0x2d3   : > { %v3802_v58 = vpop.eup %3801  ;;  %v1548_v63 = vadd.f32 1e-05, %v1420_v14  ;;  %v1165_v1 = vmul.f32 0.0078125, %v845_v10  ;;  %v973_v7 = vpop.xlane.xlu1 %972  ;;  %v1930_v43 = vmul.f32 %v3800_v5, %v1802_v30  ;;  %v4006_v14 = vld [vmem:[%s4327_s23 + $0x300] sm:$0xff]  ;;  %v4008_v10 = vld [vmem:[%s4327_s23 + $0x118] sm:$0xff] }
 0x2d4   : > { %v1612_v15 = vadd.f32 1e-05, %v1484_v23  ;;  %v1229_v52 = vmul.f32 0.0078125, %v973_v7  ;;  %v2247_v35 = vpop.f32.mrf.mxu0  ;;  %v1994_v53 = vmul.f32 %v3802_v58, %v1866_v20  ;;  %v2759_v54 = vadd.f32 %v4002_v44, %v2253_v48  ;;  %v3420_v26 = vpop.f32.mrf.mxu1  ;;  %v5893_v23 = vld [vmem:[%s4327_s23 + $0x1f0] sm:$0xff]  ;;  %v4011_v44 = vld [vmem:[%s4327_s23 + $0x318] sm:$0xff] }
 0x2d5   : > { %3807 = vrsqrt.f32 %v1548_v63  ;;  %v1421_v59 = vsub.f32 %v1165_v1, %v1293_v3  ;;  %v2248_v0 = vadd.f32 %v5551_v61, %v2247_v35  ;;  %3364 = vmatprep.mubr.f32.mxu0 %v1930_v43  ;;  %v2573_v37 = vadd.f32 %v5551_v61, %v3420_v26  ;;  %v5900_v7 = vld [vmem:[%s4327_s23 + $0x3f0] sm:$0xff]  ;;  %v5910_v26 = vld [vmem:[%s4327_s23 + $0x1f8] sm:$0xff] }
 0x2d6   : > { %v3804_v9 = vpop.eup %3803  ;;  %3809 = vrsqrt.f32 %v1612_v15  ;;  %v1485_v60 = vsub.f32 %v1229_v52, %v1357_v34  ;;  %3460 = vmatprep.mubr.f32.mxu1 %v1994_v53  ;;  %2887 = vst [vmem:[%s5273_s28 + $0x108] sm:$0xff] %v2759_v54  ;;  %v2567_v18 = vpop.f32.mrf.mxu1  ;;  %v1804_v62 = vsub.f32 %v5893_v23, %v5835_v49  ;;  %v1868_v43 = vsub.f32 %v5900_v7, %v5838_v12  ;;  %v4010_v49 = vld [vmem:[%s4327_s23 + $0x110] sm:$0xff] }
 0x2d7   : > { %v3806_v27 = vpop.eup %3805  ;;  %v1549_v55 = vadd.f32 1e-05, %v1421_v59  ;;  %v2758_v11 = vadd.f32 %v4004_v6, %v2248_v0  ;;  %v1931_v50 = vmul.f32 %v3804_v9, %v1803_v13  ;;  %v2823_v38 = vadd.f32 %v4005_v17, %v2573_v37  ;;  %v4014_v37 = vld [vmem:[%s4327_s23 + $0x310] sm:$0xff] }
 0x2d8   : > { %v1613_v56 = vadd.f32 1e-05, %v1485_v60  ;;  %v2568_v41 = vadd.f32 %v5551_v61, %v2567_v18  ;;  %v1995_v30 = vmul.f32 %v3806_v27, %v1867_v21  ;;  %v1805_v12 = vsub.f32 %v5910_v26, %v5844_v22  ;;  %v5916_v21 = vld [vmem:[%s4327_s23 + $0x3f8] sm:$0xff] }
 0x2d9   : > { %3811 = vrsqrt.f32 %v1549_v55  ;;  %2886 = vst [vmem:[%s5273_s28 + $0x100] sm:$0xff] %v2758_v11  ;;  %3365 = vmatmul.mubr.f32.gmra.mxu0 %v1931_v50  ;;  %2951 = vst [vmem:[%s5273_s28 + $0x308] sm:$0xff] %v2823_v38  ;;  %v1869_v60 = vsub.f32 %v5916_v21, %v5852_v8  ;;  %v5926_v11 = vld [vmem:[%s6148_s2] ss:$0 sm:$0xff]  ;;  %v4016_v50 = vld [vmem:[%s4327_s23 + $0x128] sm:$0xff] }
 0x2da   : > { %3813 = vrsqrt.f32 %v1613_v56  ;;  %v2822_v5 = vadd.f32 %v4006_v14, %v2568_v41  ;;  %3461 = vmatmul.mubr.f32.gmra.mxu1 %v1995_v30  ;;  %v4017_v30 = vld [vmem:[%s4327_s23 + $0x120] sm:$0xff] }
 0x2dc   : > { %2950 = vst [vmem:[%s5273_s28 + $0x300] sm:$0xff] %v2822_v5 }
 0x2dd   : > { %v3327_v20 = vpop.f32.mrf.mxu0 }
 0x2de   : > { %v2263_v13 = vadd.f32 %v5551_v61, %v3327_v20  ;;  %v4018_v20 = vld [vmem:[%s4327_s23 + $0x328] sm:$0xff] }
 0x2df   : > { %v2257_v3 = vpop.f32.mrf.mxu0 }
 0x2e0   : > { %v2761_v58 = vadd.f32 %v4008_v10, %v2263_v13  ;;  %v2258_v63 = vadd.f32 %v5551_v61, %v2257_v3  ;;  %v3423_v48 = vpop.f32.mrf.mxu1 }
 0x2e1   : > { %v2583_v34 = vadd.f32 %v5551_v61, %v3423_v48 }
 0x2e2   : > { %v3808_v1 = vpop.eup %3807  ;;  %2889 = vst [vmem:[%s5273_s28 + $0x118] sm:$0xff] %v2761_v58  ;;  %v2760_v52 = vadd.f32 %v4010_v49, %v2258_v63  ;;  %v2577_v35 = vpop.f32.mrf.mxu1 }
 0x2e3   : > { %v3810_v15 = vpop.eup %3809  ;;  %v1932_v53 = vmul.f32 %v3808_v1, %v1804_v62  ;;  %v2825_v54 = vadd.f32 %v4011_v44, %v2583_v34  ;;  %v2578_v59 = vadd.f32 %v5551_v61, %v2577_v35  ;;  %v4019_v62 = vld [vmem:[%s4327_s23 + $0x320] sm:$0xff]  ;;  %v4020_v1 = vld [vmem:[%s4327_s23 + $0x138] sm:$0xff] }
 0x2e4   : > { %v1996_v0 = vmul.f32 %v3810_v15, %v1868_v43  ;;  %2888 = vst [vmem:[%s5273_s28 + $0x110] sm:$0xff] %v2760_v52  ;;  %v4021_v52 = vld [vmem:[%s4327_s23 + $0x130] sm:$0xff]  ;;  %v4022_v44 = vld [vmem:[%s4327_s23 + $0x338] sm:$0xff] }
 0x2e5   : > { %3367 = vmatprep.mubr.f32.mxu0 %v1932_v53  ;;  %2953 = vst [vmem:[%s5273_s28 + $0x318] sm:$0xff] %v2825_v54  ;;  %v2824_v27 = vadd.f32 %v4014_v37, %v2578_v59 }
 0x2e6   : > { %v3812_v9 = vpop.eup %3811  ;;  %3463 = vmatprep.mubr.f32.mxu1 %v1996_v0  ;;  %v4023_v0 = vld [vmem:[%s4327_s23 + $0x330] sm:$0xff] }
 0x2e7   : > { %v3814_v61 = vpop.eup %3813  ;;  %v1933_v55 = vmul.f32 %v3812_v9, %v1805_v12  ;;  %2952 = vst [vmem:[%s5273_s28 + $0x310] sm:$0xff] %v2824_v27  ;;  %v4024_v27 = vld [vmem:[%s4327_s23 + $0x148] sm:$0xff] }
 0x2e8   : > { %v1997_v6 = vmul.f32 %v3814_v61, %v1869_v60 }
 0x2e9   : > { %3368 = vmatmul.mubr.f32.gmra.mxu0 %v1933_v55 }
 0x2ea   : > { %v3330_v22 = vpop.f32.mrf.mxu0  ;;  %3464 = vmatmul.mubr.f32.gmra.mxu1 %v1997_v6 }
 0x2eb   : > { %v2273_v8 = vadd.f32 %v5926_v11, %v3330_v22 }
 0x2ec   : > { %v2267_v18 = vpop.f32.mrf.mxu0 }
 0x2ed   : > { %v2763_v56 = vadd.f32 %v4016_v50, %v2273_v8  ;;  %v2268_v17 = vadd.f32 %v5926_v11, %v2267_v18  ;;  %v3426_v38 = vpop.f32.mrf.mxu1  ;;  %v4025_v8 = vld [vmem:[%s4327_s23 + $0x140] sm:$0xff] }
 0x2ee   : > { %v2593_v41 = vadd.f32 %v5926_v11, %v3426_v38 }
 0x2ef   : > { %2891 = vst [vmem:[%s5273_s28 + $0x128] sm:$0xff] %v2763_v56  ;;  %v2762_v14 = vadd.f32 %v4017_v30, %v2268_v17  ;;  %v2587_v5 = vpop.f32.mrf.mxu1  ;;  %v4026_v56 = vld [vmem:[%s4327_s23 + $0x348] sm:$0xff] }
 0x2f0   : > { %v2827_v13 = vadd.f32 %v4018_v20, %v2593_v41  ;;  %v2588_v3 = vadd.f32 %v5926_v11, %v2587_v5  ;;  %v4027_v41 = vld [vmem:[%s4327_s23 + $0x340] sm:$0xff] }
 0x2f1   : > { %2890 = vst [vmem:[%s5273_s28 + $0x120] sm:$0xff] %v2762_v14 }
 0x2f2   : > { %2955 = vst [vmem:[%s5273_s28 + $0x328] sm:$0xff] %v2827_v13  ;;  %v2826_v10 = vadd.f32 %v4019_v62, %v2588_v3  ;;  %v4028_v13 = vld [vmem:[%s4327_s23 + $0x158] sm:$0xff] }
 0x2f4   : > { %2954 = vst [vmem:[%s5273_s28 + $0x320] sm:$0xff] %v2826_v10 }
 0x2f6   : > { %v3333_v58 = vpop.f32.mrf.mxu0 }
 0x2f7   : > { %v2283_v63 = vadd.f32 %v5926_v11, %v3333_v58 }
 0x2f8   : > { %v2277_v48 = vpop.f32.mrf.mxu0 }
 0x2f9   : > { %v2765_v43 = vadd.f32 %v4020_v1, %v2283_v63  ;;  %v2278_v34 = vadd.f32 %v5926_v11, %v2277_v48  ;;  %v3429_v15 = vpop.f32.mrf.mxu1  ;;  %v4029_v63 = vld [vmem:[%s4327_s23 + $0x150] sm:$0xff] }
 0x2fa   : > { %v2603_v49 = vadd.f32 %v5926_v11, %v3429_v15 }
 0x2fb   : > { %2893 = vst [vmem:[%s5273_s28 + $0x138] sm:$0xff] %v2765_v43  ;;  %v2764_v35 = vadd.f32 %v4021_v52, %v2278_v34  ;;  %v2597_v53 = vpop.f32.mrf.mxu1  ;;  %v4030_v43 = vld [vmem:[%s4327_s23 + $0x358] sm:$0xff] }
 0x2fc   : > { %v2829_v54 = vadd.f32 %v4022_v44, %v2603_v49  ;;  %v2598_v59 = vadd.f32 %v5926_v11, %v2597_v53  ;;  %v4031_v49 = vld [vmem:[%s4327_s23 + $0x350] sm:$0xff] }
 0x2fd   : > { %2892 = vst [vmem:[%s5273_s28 + $0x130] sm:$0xff] %v2764_v35 }
 0x2fe   : > { %2957 = vst [vmem:[%s5273_s28 + $0x338] sm:$0xff] %v2829_v54  ;;  %v2828_v12 = vadd.f32 %v4023_v0, %v2598_v59  ;;  %v4032_v54 = vld [vmem:[%s4327_s23 + $0x168] sm:$0xff] }
 0x300   : > { %2956 = vst [vmem:[%s5273_s28 + $0x330] sm:$0xff] %v2828_v12 }
 0x302   : > { %v3336_v9 = vpop.f32.mrf.mxu0 }
 0x303   : > { %v2293_v60 = vadd.f32 %v5926_v11, %v3336_v9 }
 0x304   : > { %v2287_v37 = vpop.f32.mrf.mxu0 }
 0x305   : > { %v2767_v61 = vadd.f32 %v4024_v27, %v2293_v60  ;;  %v2288_v55 = vadd.f32 %v5926_v11, %v2287_v37  ;;  %v3432_v6 = vpop.f32.mrf.mxu1  ;;  %v4033_v60 = vld [vmem:[%s4327_s23 + $0x160] sm:$0xff] }
 0x306   : > { %v2613_v22 = vadd.f32 %v5926_v11, %v3432_v6 }
 0x307   : > { %2895 = vst [vmem:[%s5273_s28 + $0x148] sm:$0xff] %v2767_v61  ;;  %v2766_v18 = vadd.f32 %v4025_v8, %v2288_v55  ;;  %v2607_v50 = vpop.f32.mrf.mxu1  ;;  %v4034_v61 = vld [vmem:[%s4327_s23 + $0x368] sm:$0xff] }
 0x308   : > { %v2831_v17 = vadd.f32 %v4026_v56, %v2613_v22  ;;  %v2608_v38 = vadd.f32 %v5926_v11, %v2607_v50  ;;  %v4035_v22 = vld [vmem:[%s4327_s23 + $0x360] sm:$0xff] }
 0x309   : > { %2894 = vst [vmem:[%s5273_s28 + $0x140] sm:$0xff] %v2766_v18 }
 0x30a   : > { %2959 = vst [vmem:[%s5273_s28 + $0x348] sm:$0xff] %v2831_v17  ;;  %v2830_v30 = vadd.f32 %v4027_v41, %v2608_v38  ;;  %v4036_v41 = vld [vmem:[%s4327_s23 + $0x178] sm:$0xff] }
 0x30c   : > { %2958 = vst [vmem:[%s5273_s28 + $0x340] sm:$0xff] %v2830_v30 }
 0x30e   : > { %v3339_v14 = vpop.f32.mrf.mxu0 }
 0x30f   : > { %v2303_v5 = vadd.f32 %v5926_v11, %v3339_v14 }
 0x310   : > { %v2297_v20 = vpop.f32.mrf.mxu0 }
 0x311   : > { %v2769_v3 = vadd.f32 %v4028_v13, %v2303_v5  ;;  %v2298_v62 = vadd.f32 %v5926_v11, %v2297_v20  ;;  %v3435_v10 = vpop.f32.mrf.mxu1  ;;  %v4037_v20 = vld [vmem:[%s4327_s23 + $0x378] sm:$0xff] }
 0x312   : > { %v2623_v58 = vadd.f32 %v5926_v11, %v3435_v10 }
 0x313   : > { %2897 = vst [vmem:[%s5273_s28 + $0x158] sm:$0xff] %v2769_v3  ;;  %v2768_v48 = vadd.f32 %v4029_v63, %v2298_v62  ;;  %v2617_v1 = vpop.f32.mrf.mxu1  ;;  %v4038_v62 = vld [vmem:[%s4327_s23 + $0x170] sm:$0xff] }
 0x314   : > { %v2833_v34 = vadd.f32 %v4030_v43, %v2623_v58  ;;  %v2618_v15 = vadd.f32 %v5926_v11, %v2617_v1  ;;  %v4039_v58 = vld [vmem:[%s4327_s23 + $0x370] sm:$0xff] }
 0x315   : > { %2896 = vst [vmem:[%s5273_s28 + $0x150] sm:$0xff] %v2768_v48 }
 0x316   : > { %2961 = vst [vmem:[%s5273_s28 + $0x358] sm:$0xff] %v2833_v34  ;;  %v2832_v52 = vadd.f32 %v4031_v49, %v2618_v15  ;;  %v4040_v15 = vld [vmem:[%s4327_s23 + $0x188] sm:$0xff] }
 0x318   : > { %2960 = vst [vmem:[%s5273_s28 + $0x350] sm:$0xff] %v2832_v52 }
 0x31a   : > { %v3342_v35 = vpop.f32.mrf.mxu0 }
 0x31b   : > { %v2313_v53 = vadd.f32 %v5926_v11, %v3342_v35 }
 0x31c   : > { %v2307_v44 = vpop.f32.mrf.mxu0 }
 0x31d   : > { %v2771_v59 = vadd.f32 %v4032_v54, %v2313_v53  ;;  %v2308_v0 = vadd.f32 %v5926_v11, %v2307_v44  ;;  %v3438_v12 = vpop.f32.mrf.mxu1  ;;  %v4041_v44 = vld [vmem:[%s4327_s23 + $0x388] sm:$0xff] }
 0x31e   : > { %v2633_v9 = vadd.f32 %v5926_v11, %v3438_v12 }
 0x31f   : > { %2899 = vst [vmem:[%s5273_s28 + $0x168] sm:$0xff] %v2771_v59  ;;  %v2770_v37 = vadd.f32 %v4033_v60, %v2308_v0  ;;  %v2627_v27 = vpop.f32.mrf.mxu1  ;;  %v4042_v59 = vld [vmem:[%s4327_s23 + $0x180] sm:$0xff] }
 0x320   : > { %v2835_v55 = vadd.f32 %v4034_v61, %v2633_v9  ;;  %v2628_v6 = vadd.f32 %v5926_v11, %v2627_v27  ;;  %v4043_v9 = vld [vmem:[%s4327_s23 + $0x380] sm:$0xff] }
 0x321   : > { %2898 = vst [vmem:[%s5273_s28 + $0x160] sm:$0xff] %v2770_v37 }
 0x322   : > { %2963 = vst [vmem:[%s5273_s28 + $0x368] sm:$0xff] %v2835_v55  ;;  %v2834_v8 = vadd.f32 %v4035_v22, %v2628_v6  ;;  %v4044_v22 = vld [vmem:[%s4327_s23 + $0x198] sm:$0xff] }
 0x324   : > { %2962 = vst [vmem:[%s5273_s28 + $0x360] sm:$0xff] %v2834_v8 }
 0x329   : > { %v3345_v18 = vpop.f32.mrf.mxu0 }
 0x32a   : > { %v2323_v50 = vadd.f32 %v5926_v11, %v3345_v18  ;;  %v3441_v56 = vpop.f32.mrf.mxu1 }
 0x32b   : > { %v2643_v17 = vadd.f32 %v5926_v11, %v3441_v56  ;;  %v2317_v38 = vpop.f32.mrf.mxu0  ;;  %v4045_v56 = vld [vmem:[%s4327_s23 + $0x398] sm:$0xff] }
 0x32c   : > { %v2773_v30 = vadd.f32 %v4036_v41, %v2323_v50  ;;  %v2318_v14 = vadd.f32 %v5926_v11, %v2317_v38  ;;  %v2637_v5 = vpop.f32.mrf.mxu1  ;;  %v4046_v41 = vld [vmem:[%s4327_s23 + $0x190] sm:$0xff] }
 0x32d   : > { %v2837_v13 = vadd.f32 %v4037_v20, %v2643_v17  ;;  %v2638_v3 = vadd.f32 %v5926_v11, %v2637_v5 }
 0x32e   : > { %2901 = vst [vmem:[%s5273_s28 + $0x178] sm:$0xff] %v2773_v30  ;;  %v2772_v10 = vadd.f32 %v4038_v62, %v2318_v14  ;;  %v4047_v14 = vld [vmem:[%s4327_s23 + $0x390] sm:$0xff] }
 0x32f   : > { %2965 = vst [vmem:[%s5273_s28 + $0x378] sm:$0xff] %v2837_v13  ;;  %v2836_v63 = vadd.f32 %v4039_v58, %v2638_v3 }
 0x330   : > { %2900 = vst [vmem:[%s5273_s28 + $0x170] sm:$0xff] %v2772_v10 }
 0x331   : > { %2964 = vst [vmem:[%s5273_s28 + $0x370] sm:$0xff] %v2836_v63 }
 0x339   : > { %v3348_v48 = vpop.f32.mrf.mxu0 }
 0x33a   : > { %v2333_v1 = vadd.f32 %v5926_v11, %v3348_v48  ;;  %v3444_v43 = vpop.f32.mrf.mxu1 }
 0x33b   : > { %v2327_v34 = vpop.f32.mrf.mxu0  ;;  %v2653_v52 = vadd.f32 %v5926_v11, %v3444_v43 }
 0x33c   : > { %v2775_v49 = vadd.f32 %v4040_v15, %v2333_v1  ;;  %v2328_v35 = vadd.f32 %v5926_v11, %v2327_v34  ;;  %v2647_v53 = vpop.f32.mrf.mxu1 }
 0x33d   : > { %v2839_v54 = vadd.f32 %v4041_v44, %v2653_v52  ;;  %v2648_v12 = vadd.f32 %v5926_v11, %v2647_v53 }
 0x33e   : > { %2903 = vst [vmem:[%s5273_s28 + $0x188] sm:$0xff] %v2775_v49  ;;  %v2774_v0 = vadd.f32 %v4042_v59, %v2328_v35 }
 0x33f   : > { %2967 = vst [vmem:[%s5273_s28 + $0x388] sm:$0xff] %v2839_v54  ;;  %v2838_v60 = vadd.f32 %v4043_v9, %v2648_v12 }
 0x340   : > { %2902 = vst [vmem:[%s5273_s28 + $0x180] sm:$0xff] %v2774_v0 }
 0x341   : > { %2966 = vst [vmem:[%s5273_s28 + $0x380] sm:$0xff] %v2838_v60 }
 0x349   : > { %v3351_v37 = vpop.f32.mrf.mxu0 }
 0x34a   : > { %v2343_v27 = vadd.f32 %v5926_v11, %v3351_v37  ;;  %v3447_v61 = vpop.f32.mrf.mxu1 }
 0x34b   : > { %v2663_v55 = vadd.f32 %v5926_v11, %v3447_v61  ;;  %v2337_v6 = vpop.f32.mrf.mxu0 }
 0x34c   : > { %v2777_v8 = vadd.f32 %v4044_v22, %v2343_v27  ;;  %v2338_v18 = vadd.f32 %v5926_v11, %v2337_v6  ;;  %v2657_v50 = vpop.f32.mrf.mxu1 }
 0x34d   : > { %v2841_v17 = vadd.f32 %v4045_v56, %v2663_v55  ;;  %v2658_v38 = vadd.f32 %v5926_v11, %v2657_v50 }
 0x34e   : > { %2905 = vst [vmem:[%s5273_s28 + $0x198] sm:$0xff] %v2777_v8  ;;  %v2776_v30 = vadd.f32 %v4046_v41, %v2338_v18 }
 0x34f   : > { %2969 = vst [vmem:[%s5273_s28 + $0x398] sm:$0xff] %v2841_v17  ;;  %v2840_v5 = vadd.f32 %v4047_v14, %v2658_v38 }
 0x350   : > { %2904 = vst [vmem:[%s5273_s28 + $0x190] sm:$0xff] %v2776_v30 }
 0x351   : > { %2968 = vst [vmem:[%s5273_s28 + $0x390] sm:$0xff] %v2840_v5 }
 0x359   : > { %v3354_v20 = vpop.f32.mrf.mxu0 }
 0x35a   : > { %v2353_v13 = vadd.f32 %v5926_v11, %v3354_v20  ;;  %v3450_v3 = vpop.f32.mrf.mxu1 }
 0x35b   : > { %v2673_v62 = vadd.f32 %v5926_v11, %v3450_v3  ;;  %v2347_v10 = vpop.f32.mrf.mxu0 }
 0x35c   : > { %v2779_v58 = vadd.f32 %v5666_v4, %v2353_v13  ;;  %v2348_v63 = vadd.f32 %v5926_v11, %v2347_v10  ;;  %v2667_v48 = vpop.f32.mrf.mxu1 }
 0x35d   : > { %v2843_v1 = vadd.f32 %v5671_v40, %v2673_v62  ;;  %v2668_v43 = vadd.f32 %v5926_v11, %v2667_v48 }
 0x35e   : > { %2907 = vst [vmem:[%s5273_s28 + $0x1a8] sm:$0xff] %v2779_v58  ;;  %v2778_v34 = vadd.f32 %v5648_v33, %v2348_v63 }
 0x35f   : > { %2971 = vst [vmem:[%s5273_s28 + $0x3a8] sm:$0xff] %v2843_v1  ;;  %v2842_v15 = vadd.f32 %v5654_v51, %v2668_v43 }
 0x360   : > { %2906 = vst [vmem:[%s5273_s28 + $0x1a0] sm:$0xff] %v2778_v34 }
 0x361   : > { %2970 = vst [vmem:[%s5273_s28 + $0x3a0] sm:$0xff] %v2842_v15 }
 0x369   : > { %v3357_v4 = vpop.f32.mrf.mxu0 }
 0x36a   : > { %v2363_v49 = vadd.f32 %v5926_v11, %v3357_v4  ;;  %v3453_v52 = vpop.f32.mrf.mxu1 }
 0x36b   : > { %v2357_v35 = vpop.f32.mrf.mxu0  ;;  %v2683_v53 = vadd.f32 %v5926_v11, %v3453_v52 }
 0x36c   : > { %v2781_v40 = vadd.f32 %v5710_v25, %v2363_v49  ;;  %v2358_v44 = vadd.f32 %v5926_v11, %v2357_v35  ;;  %v2677_v33 = vpop.f32.mrf.mxu1 }
 0x36d   : > { %v2845_v54 = vadd.f32 %v5723_v28, %v2683_v53  ;;  %v2678_v59 = vadd.f32 %v5926_v11, %v2677_v33 }
 0x36e   : > { %2909 = vst [vmem:[%s5273_s28 + $0x1b8] sm:$0xff] %v2781_v40  ;;  %v2780_v51 = vadd.f32 %v5700_v24, %v2358_v44 }
 0x36f   : > { %2973 = vst [vmem:[%s5273_s28 + $0x3b8] sm:$0xff] %v2845_v54  ;;  %v2844_v0 = vadd.f32 %v5705_v45, %v2678_v59 }
 0x370   : > { %2908 = vst [vmem:[%s5273_s28 + $0x1b0] sm:$0xff] %v2780_v51 }
 0x371   : > { %2972 = vst [vmem:[%s5273_s28 + $0x3b0] sm:$0xff] %v2844_v0 }
 0x379   : > { %v3360_v25 = vpop.f32.mrf.mxu0 }
 0x37a   : > { %v2373_v12 = vadd.f32 %v5926_v11, %v3360_v25  ;;  %v3456_v9 = vpop.f32.mrf.mxu1 }
 0x37b   : > { %v2693_v60 = vadd.f32 %v5926_v11, %v3456_v9  ;;  %v2367_v28 = vpop.f32.mrf.mxu0 }
 0x37c   : > { %v2783_v24 = vadd.f32 %v5770_v36, %v2373_v12  ;;  %v2368_v37 = vadd.f32 %v5926_v11, %v2367_v28  ;;  %v2687_v27 = vpop.f32.mrf.mxu1 }
 0x37d   : > { %v2847_v61 = vadd.f32 %v5776_v32, %v2693_v60  ;;  %v2688_v55 = vadd.f32 %v5926_v11, %v2687_v27 }
 0x37e   : > { %2911 = vst [vmem:[%s5273_s28 + $0x1c8] sm:$0xff] %v2783_v24  ;;  %v2782_v45 = vadd.f32 %v5747_v46, %v2368_v37 }
 0x37f   : > { %2975 = vst [vmem:[%s5273_s28 + $0x3c8] sm:$0xff] %v2847_v61  ;;  %v2846_v6 = vadd.f32 %v5754_v31, %v2688_v55 }
 0x380   : > { %2910 = vst [vmem:[%s5273_s28 + $0x1c0] sm:$0xff] %v2782_v45 }
 0x381   : > { %2974 = vst [vmem:[%s5273_s28 + $0x3c0] sm:$0xff] %v2846_v6 }
 0x389   : > { %v3363_v36 = vpop.f32.mrf.mxu0 }
 0x38a   : > { %v2383_v22 = vadd.f32 %v5926_v11, %v3363_v36  ;;  %v3459_v8 = vpop.f32.mrf.mxu1 }
 0x38b   : > { %v2703_v32 = vadd.f32 %v5926_v11, %v3459_v8  ;;  %v2377_v18 = vpop.f32.mrf.mxu0 }
 0x38c   : > { %v2785_v50 = vadd.f32 %v5822_v29, %v2383_v22  ;;  %v2378_v56 = vadd.f32 %v5926_v11, %v2377_v18  ;;  %v2697_v46 = vpop.f32.mrf.mxu1 }
 0x38d   : > { %v2849_v17 = vadd.f32 %v5827_v47, %v2703_v32  ;;  %v2698_v31 = vadd.f32 %v5926_v11, %v2697_v46 }
 0x38e   : > { %2913 = vst [vmem:[%s5273_s28 + $0x1d8] sm:$0xff] %v2785_v50  ;;  %v2784_v38 = vadd.f32 %v5804_v57, %v2378_v56 }
 0x38f   : > { %2977 = vst [vmem:[%s5273_s28 + $0x3d8] sm:$0xff] %v2849_v17  ;;  %v2848_v41 = vadd.f32 %v5810_v19, %v2698_v31 }
 0x390   : > { %2912 = vst [vmem:[%s5273_s28 + $0x1d0] sm:$0xff] %v2784_v38 }
 0x391   : > { %2976 = vst [vmem:[%s5273_s28 + $0x3d0] sm:$0xff] %v2848_v41 }
 0x399   : > { %v3366_v29 = vpop.f32.mrf.mxu0 }
 0x39a   : > { %v2393_v30 = vadd.f32 %v5926_v11, %v3366_v29  ;;  %v3462_v14 = vpop.f32.mrf.mxu1 }
 0x39b   : > { %v2713_v47 = vadd.f32 %v5926_v11, %v3462_v14  ;;  %v2387_v5 = vpop.f32.mrf.mxu0 }
 0x39c   : > { %v2787_v20 = vadd.f32 %v5866_v39, %v2393_v30  ;;  %v2388_v57 = vadd.f32 %v5926_v11, %v2387_v5  ;;  %v2707_v13 = vpop.f32.mrf.mxu1 }
 0x39d   : > { %v2851_v19 = vadd.f32 %v5878_v16, %v2713_v47  ;;  %v2708_v3 = vadd.f32 %v5926_v11, %v2707_v13 }
 0x39e   : > { %2915 = vst [vmem:[%s5273_s28 + $0x1e8] sm:$0xff] %v2787_v20  ;;  %v2786_v62 = vadd.f32 %v5856_v2, %v2388_v57 }
 0x39f   : > { %2979 = vst [vmem:[%s5273_s28 + $0x3e8] sm:$0xff] %v2851_v19  ;;  %v2850_v10 = vadd.f32 %v5861_v42, %v2708_v3 }
 0x3a0   : > { %2914 = vst [vmem:[%s5273_s28 + $0x1e0] sm:$0xff] %v2786_v62 }
 0x3a1   : > { %2978 = vst [vmem:[%s5273_s28 + $0x3e0] sm:$0xff] %v2850_v10 }
 0x3a9   : > { %v3369_v58 = vpop.f32.mrf.mxu0 }
 0x3aa   : > { %v2403_v39 = vadd.f32 %v5926_v11, %v3369_v58  ;;  %v3465_v63 = vpop.f32.mrf.mxu1 }
 0x3ab   : > { %v2723_v48 = vadd.f32 %v5926_v11, %v3465_v63  ;;  %v2397_v16 = vpop.f32.mrf.mxu0 }
 0x3ac   : > { %v2789_v2 = vadd.f32 %v5910_v26, %v2403_v39  ;;  %v2398_v42 = vadd.f32 %v5926_v11, %v2397_v16  ;;  %v2717_v1 = vpop.f32.mrf.mxu1 }
 0x3ad   : > { %v2853_v43 = vadd.f32 %v5916_v21, %v2723_v48  ;;  %v2718_v34 = vadd.f32 %v5926_v11, %v2717_v1 }
 0x3ae   : > { %2917 = vst [vmem:[%s5273_s28 + $0x1f8] sm:$0xff] %v2789_v2  ;;  %v2788_v15 = vadd.f32 %v5893_v23, %v2398_v42 }
 0x3af   : > { %2981 = vst [vmem:[%s5273_s28 + $0x3f8] sm:$0xff] %v2853_v43  ;;  %v2852_v26 = vadd.f32 %v5900_v7, %v2718_v34 }
 0x3b0   : > { %2916 = vst [vmem:[%s5273_s28 + $0x1f0] sm:$0xff] %v2788_v15 }
 0x3b1   : > { %2980 = vst [vmem:[%s5273_s28 + $0x3f0] sm:$0xff] %v2852_v26 }
 0x3b2   : > { %4115 = shalt.err (!%p4112_p0)
}
 0x3b3   : > { %s4116_s23 = scalar_lea.hbm %s6097_s10, 16384  ;;  %s4120_s28 = scalar_lea.hbm %s6149_s3, 32768 }
 0x3b4   : > { %p4117_p5 = scmp.ne.s32.totalorder %s6097_s10, %s4116_s23  ;;  %p4121_p4 = scmp.lt.s32.totalorder %s6097_s10, %s6149_s3 }
 0x3b5   : > { %p4122_p6 = scmp.lt.s32.totalorder %s4120_s28, %s4116_s23 }
 0x3b6   : > { %p4118_p2 = pnand %p4117_p5, %p6221_p11 }
 0x3b7   : > { %p4123_p8 = por %p4122_p6, %p4121_p4 }
 0x3b8   : > { %p4119_p1 = pneg %p4118_p2 }
 0x3ba   : > { %p4124_p3 = pnand %p4123_p8, %p4119_p1 }
 0x3bc   : > { %4127 = shalt.err (!%p4124_p3)
}
 0x3bd   : > { %s4177_s22 = smov 128   ;;  %s4178_s25 = smov 8  }
 0x3be   : > { %3504 = dma.vmem_to_hbm [thread:$0]  (%p6221_p11), %s6099_s8, 16384, %s6097_s10, %s2983_s16, %s4177_s22, %s4177_s22, %s4178_s25  }
 0x3bf PF: > { %s3011_s4 = sand.u32 1, %s4158_s12   ;;  %p6222_p7 = scmp.ne.s32.totalorder %s6155_s19, 0 }
 0x3c0   : > { %p6223_p9 = scmp.ge.s32.totalorder %s4170_s15, 2  ;;  %s3012_s9 = scalar_lea.sflag [#allocation4], %s3011_s4 }
 0x3c2   : > { %p3515_p10 = pnand %p6223_p9, %p6222_p7 }
 0x3c4   : > { %p3516_p12 = pneg %p3515_p10 }
 0x3c6   : > { %4153 = dma.done.wait (%p3516_p12), %s3012_s9, 16384  }
 0x3c7   : > { %4155 = vsyncadd (%p3516_p12), %s3012_s9, 4294950912  ;;  %p17_p13 = scmp.ge.s32.totalorder %s4253_s24, 4   ;;  %s6224_s12 = smov %s4162_s13 }
 0x3c8   : > { %s6225_s13 = smov %s4166_s14  ;;  %s6226_s14 = smov %s4273_s5 }
 0x3c9   : > { %s6227_s15 = smov %s4253_s24  ;;  %19 = sbr.rel (!%p17_p13) target bundleno = 6 (0x6), region = 81 }
 0x3ce   :  { %3017 = vsyncpa [#allocation3], 1 }
 0x3cf   :  { %3019 = vsyncpa [#allocation3 + $0x1], 1 }
 0x3d0   :  { %3020 = vsyncpa [#allocation6], 1 }
 0x3d1   :  { %3021 = vsyncpa [#allocation4], 1 }
 0x3d2   :  { %3023 = vsyncpa [#allocation4 + $0x1], 1 }

</bundles_post_ra>
